<compile_context>
chip_gen: v6e
topology: v6e:2x2x1
jax: 0.10.0
libtpu: 0.0.40
codegen_flags: <defaults>
</compile_context>

<pallas_src>
import functools
import math

import jax
import jax.numpy as jnp
from jax import lax
from jax.experimental import pallas as pl
from jax.experimental.pallas import tpu as pltpu


# ----------------------------- Fused Pallas kernel -----------------------------

def fused_encoder_kernel(pe_w_ref, x_ref, pe_ref,
                         wqkv_ref, bqkv_ref, wo_ref, bo_ref,
                         ln1w_ref, ln1b_ref, w1_ref, b1_ref, w2_ref, b2_ref,
                         ln2w_ref, ln2b_ref, o_ref, *, num_heads, num_layers, batch):
    eps = 1e-5
    B = batch
    x3 = x_ref[...]                                    # (B, S, D)
    _, S, D = x3.shape
    H = num_heads
    Dh = D // H
    scale = 1.0 / math.sqrt(Dh)

    # PositionalEncoding: x = x + pe[:S] * weight  (weight is an SMEM scalar)
    pe = pe_ref[...] * pe_w_ref[0]                     # (S, D)
    x = (x3 + pe[None]).reshape(B * S, D)              # (B*S, D) — flat for matmuls

    for l in range(num_layers):                        # static loop, weights resident
        # ---- QKV projection on the flattened batch ----
        qkv = jnp.dot(x, wqkv_ref[l],
                      preferred_element_type=jnp.float32) + bqkv_ref[l]     # (B*S, 3D)

        wo_l = wo_ref[l]                               # (D, D)

        # ---- attention: unrolled per-batch / per-head 2-D dots ----
        attn_rows = []
        for b in range(B):
            qkv_b = qkv[b * S:(b + 1) * S]             # (S, 3D) static row slice
            attn_b = jnp.zeros((S, D), jnp.float32)
            for h in range(H):
                q = qkv_b[:, h * Dh:(h + 1) * Dh] * scale           # (S, Dh)
                k = qkv_b[:, D + h * Dh:D + (h + 1) * Dh]           # (S, Dh)
                v = qkv_b[:, 2 * D + h * Dh:2 * D + (h + 1) * Dh]   # (S, Dh)

                s = lax.dot_general(q, k, (((1,), (1,)), ((), ())),
                                    preferred_element_type=jnp.float32)     # (S, S)
                s = s - jnp.max(s, axis=-1, keepdims=True)
                p = jnp.exp(s)
                p = p / jnp.sum(p, axis=-1, keepdims=True)
                ctx = jnp.dot(p, v, preferred_element_type=jnp.float32)     # (S, Dh)
                # fold output projection per head (no head concat needed)
                attn_b = attn_b + jnp.dot(ctx, wo_l[h * Dh:(h + 1) * Dh, :],
                                          preferred_element_type=jnp.float32)
            attn_rows.append(attn_b)
        attn = jnp.concatenate(attn_rows, axis=0) + bo_ref[l]               # (B*S, D)

        # ---- residual + LayerNorm 1 (post-norm) ----
        x = x + attn
        mu = jnp.mean(x, axis=-1, keepdims=True)
        var = jnp.mean((x - mu) ** 2, axis=-1, keepdims=True)
        x = (x - mu) * jax.lax.rsqrt(var + eps) * ln1w_ref[l] + ln1b_ref[l]

        # ---- feed-forward (ReLU), w2 stored lane-dense (D, dff) ----
        h1 = jnp.dot(x, w1_ref[l], preferred_element_type=jnp.float32) + b1_ref[l]
        h1 = jnp.maximum(h1, 0.0)
        h2 = lax.dot_general(h1, w2_ref[l], (((1,), (1,)), ((), ())),
                             preferred_element_type=jnp.float32) + b2_ref[l]

        # ---- residual + LayerNorm 2 ----
        x2 = x + h2
        mu2 = jnp.mean(x2, axis=-1, keepdims=True)
        var2 = jnp.mean((x2 - mu2) ** 2, axis=-1, keepdims=True)
        x = (x2 - mu2) * jax.lax.rsqrt(var2 + eps) * ln2w_ref[l] + ln2b_ref[l]

    o_ref[...] = x.reshape(B, S, D)


# ----------------------------- Wrapper -----------------------------

def positional_encoding_table(max_seq_len, hidden_size):
    position = jnp.arange(max_seq_len, dtype=jnp.float32)[:, None]
    div_term = jnp.exp(jnp.arange(0, hidden_size, 2, dtype=jnp.float32)
                       * (-math.log(10000.0) / hidden_size))
    pe = jnp.zeros((max_seq_len, hidden_size), dtype=jnp.float32)
    pe = pe.at[:, 0::2].set(jnp.sin(position * div_term))
    pe = pe.at[:, 1::2].set(jnp.cos(position * div_term))
    return pe


def transformer_encoder_forward(x, params):
    """Equivalent of TransformerEncoder.forward(batch_traj_feat) (mask=None)."""
    B, S, D = x.shape
    L, _, dff = params["w1"].shape
    H = params["num_heads"]
    pe = params["pe"][:S]                                   # (S, D)

    kernel = functools.partial(fused_encoder_kernel,
                               num_heads=H, num_layers=L, batch=B)

    # Advisory cost estimate: matmul flops + exp count + bytes moved.
    flops = L * (2 * B * S * D * (3 * D + D + 2 * dff) + 4 * B * S * S * D)
    transcendentals = L * B * H * S * S
    weight_bytes = 4 * sum(int(params[k].size) for k in
                           ("wqkv", "bqkv", "wo", "bo", "ln1w", "ln1b",
                            "w1", "b1", "w2", "b2", "ln2w", "ln2b"))
    bytes_accessed = 2 * B * S * D * 4 + S * D * 4 + weight_bytes

    vmem = pl.BlockSpec(memory_space=pltpu.MemorySpace.VMEM)
    return pl.pallas_call(
        kernel,
        out_shape=jax.ShapeDtypeStruct((B, S, D), jnp.float32),
        in_specs=[
            pl.BlockSpec(memory_space=pltpu.MemorySpace.SMEM),  # pe_weight scalar
            vmem,                                               # x (whole array)
            vmem,                                               # pe table
            vmem,                                               # wqkv (stacked)
            vmem,                                               # bqkv
            vmem,                                               # wo
            vmem,                                               # bo
            vmem,                                               # ln1w
            vmem,                                               # ln1b
            vmem,                                               # w1
            vmem,                                               # b1
            vmem,                                               # w2 (lane-dense)
            vmem,                                               # b2
            vmem,                                               # ln2w
            vmem,                                               # ln2b
        ],
        out_specs=pl.BlockSpec(memory_space=pltpu.MemorySpace.VMEM),
        cost_estimate=pl.CostEstimate(flops=flops,
                                      transcendentals=transcendentals,
                                      bytes_accessed=bytes_accessed),
    )(params["pe_weight"], x, pe,
      params["wqkv"], params["bqkv"], params["wo"], params["bo"],
      params["ln1w"], params["ln1b"], params["w1"], params["b1"],
      params["w2"], params["b2"], params["ln2w"], params["ln2b"])


# ----------------------------- Parameter init (stacked per-layer) -----------------------------

def init_params(key, feature_dim, num_layer, head, dff=2048, max_seq_len=500):
    D = feature_dim
    s = 0.05

    def one_layer(i):
        ks = jax.random.split(jax.random.fold_in(key, i), 8)
        return {
            # stored transposed to [in, out] layout for the kernel (x @ W)
            "wqkv": (jax.random.normal(ks[0], (3 * D, D)) * s).T,
            "bqkv": (jax.random.normal(ks[1], (3 * D,)) * s).reshape(1, 3 * D),
            "wo":   (jax.random.normal(ks[2], (D, D)) * s).T,
            "bo":   (jax.random.normal(ks[3], (D,)) * s).reshape(1, D),
            "ln1w": jnp.ones((1, D)), "ln1b": jnp.zeros((1, D)),
            "w1":   (jax.random.normal(ks[4], (dff, D)) * s).T,
            "b1":   (jax.random.normal(ks[5], (dff,)) * s).reshape(1, dff),
            # w2 kept lane-dense as (D, dff): dff (2048) on the 128-lane axis
            "w2":   (jax.random.normal(ks[6], (D, dff)) * s),
            "b2":   (jax.random.normal(ks[7], (D,)) * s).reshape(1, D),
            "ln2w": jnp.ones((1, D)), "ln2b": jnp.zeros((1, D)),
        }

    per_layer = [one_layer(i) for i in range(num_layer)]
    params = {k: jnp.stack([lp[k] for lp in per_layer]).astype(jnp.float32)
              for k in per_layer[0]}
    params.update({
        "pe": positional_encoding_table(max_seq_len, D),
        "pe_weight": jnp.ones((1,), jnp.float32),
        "num_heads": head,
    })
    return params


# ----------------------------- Pure-JAX reference -----------------------------

def ref_forward(x, params):
    eps = 1e-5
    H = params["num_heads"]
    B, S, D = x.shape
    L = params["wqkv"].shape[0]
    Dh = D // H
    x = x + params["pe"][:S][None] * params["pe_weight"][0]
    for l in range(L):
        qkv = x @ params["wqkv"][l] + params["bqkv"][l]
        q, k, v = qkv[..., :D], qkv[..., D:2 * D], qkv[..., 2 * D:]

        def split(t):  # (B,S,D) -> (B,H,S,Dh)
            return t.reshape(B, S, H, Dh).transpose(0, 2, 1, 3)

        qh, kh, vh = split(q), split(k), split(v)
        sc = jnp.einsum("bhqd,bhkd->bhqk", qh, kh) / math.sqrt(Dh)
        p = jax.nn.softmax(sc, axis=-1)
        attn = jnp.einsum("bhqk,bhkd->bhqd", p, vh).transpose(0, 2, 1, 3).reshape(B, S, D)
        attn = attn @ params["wo"][l] + params["bo"][l]
        x = x + attn
        mu = x.mean(-1, keepdims=True)
        var = ((x - mu) ** 2).mean(-1, keepdims=True)
        x = (x - mu) * jax.lax.rsqrt(var + eps) * params["ln1w"][l] + params["ln1b"][l]
        h = jnp.maximum(x @ params["w1"][l] + params["b1"][l], 0.0)
        h = h @ params["w2"][l].T + params["b2"][l]
        x2 = x + h
        mu2 = x2.mean(-1, keepdims=True)
        var2 = ((x2 - mu2) ** 2).mean(-1, keepdims=True)
        x = (x2 - mu2) * jax.lax.rsqrt(var2 + eps) * params["ln2w"][l] + params["ln2b"][l]
    return x


# ----------------------------- Main -----------------------------

if __name__ == "__main__":
    B, S, D = 2, 8, 32          # batch, seq, feature_dim
    NUM_LAYER, HEAD, DFF = 2, 2, 2048

    key = jax.random.PRNGKey(0)
    kx, kp = jax.random.split(key)
    x = jax.random.normal(kx, (B, S, D), dtype=jnp.float32)
    params = init_params(kp, D, NUM_LAYER, HEAD, dff=DFF)

    out = jax.block_until_ready(transformer_encoder_forward(x, params))
    ref = jax.block_until_ready(ref_forward(x, params))

    assert out.shape == (B, S, D)
    assert jnp.allclose(out, ref, atol=1e-4, rtol=1e-4), float(jnp.max(jnp.abs(out - ref)))

    print("KERNEL_OK")
</pallas_src>

<mosaic_0001>
module attributes {stable_mosaic.version = 11 : i64} {
  func.func @fused_encoder_kernel(%arg0: memref<1xf32, #tpu.memory_space<smem>>, %arg1: memref<2x8x32xf32, #tpu.memory_space<vmem>>, %arg2: memref<8x32xf32, #tpu.memory_space<vmem>>, %arg3: memref<2x32x96xf32, #tpu.memory_space<vmem>>, %arg4: memref<2x1x96xf32, #tpu.memory_space<vmem>>, %arg5: memref<2x32x32xf32, #tpu.memory_space<vmem>>, %arg6: memref<2x1x32xf32, #tpu.memory_space<vmem>>, %arg7: memref<2x1x32xf32, #tpu.memory_space<vmem>>, %arg8: memref<2x1x32xf32, #tpu.memory_space<vmem>>, %arg9: memref<2x32x2048xf32, #tpu.memory_space<vmem>>, %arg10: memref<2x1x2048xf32, #tpu.memory_space<vmem>>, %arg11: memref<2x32x2048xf32, #tpu.memory_space<vmem>>, %arg12: memref<2x1x32xf32, #tpu.memory_space<vmem>>, %arg13: memref<2x1x32xf32, #tpu.memory_space<vmem>>, %arg14: memref<2x1x32xf32, #tpu.memory_space<vmem>>, %arg15: memref<2x8x32xf32, #tpu.memory_space<vmem>>) attributes {dimension_semantics = [], scalar_prefetch = 0 : i64, scratch_operands = 0 : i64, tpu.core_type = #tpu.core_type<tc>} {
    %c0 = arith.constant 0 : index
    %c0_0 = arith.constant 0 : index
    %c0_1 = arith.constant 0 : index
    %0 = vector.load %arg1[%c0, %c0_0, %c0_1] : memref<2x8x32xf32, #tpu.memory_space<vmem>>, vector<2x8x32xf32>
    %c0_2 = arith.constant 0 : index
    %c0_3 = arith.constant 0 : index
    %1 = vector.load %arg2[%c0_2, %c0_3] : memref<8x32xf32, #tpu.memory_space<vmem>>, vector<8x32xf32>
    %c0_4 = arith.constant 0 : index
    %2 = memref.load %arg0[%c0_4] : memref<1xf32, #tpu.memory_space<smem>>
    %3 = vector.broadcast %2 : f32 to vector<8x32xf32>
    %4 = arith.mulf %1, %3 : vector<8x32xf32>
    %5 = vector.shape_cast %4 : vector<8x32xf32> to vector<1x8x32xf32>
    %6 = vector.broadcast %5 : vector<1x8x32xf32> to vector<2x8x32xf32>
    %7 = arith.addf %0, %6 : vector<2x8x32xf32>
    %8 = vector.shape_cast %7 : vector<2x8x32xf32> to vector<16x32xf32>
    %c0_5 = arith.constant 0 : index
    %c0_6 = arith.constant 0 : index
    %c0_7 = arith.constant 0 : index
    %9 = vector.load %arg3[%c0_5, %c0_6, %c0_7] : memref<2x32x96xf32, #tpu.memory_space<vmem>>, vector<1x32x96xf32>
    %10 = vector.shape_cast %9 : vector<1x32x96xf32> to vector<32x96xf32>
    %cst = arith.constant dense<0.000000e+00> : vector<16x96xf32>
    %11 = tpu.matmul %8, %10, %cst {dimension_numbers = #tpu.dot_dimension_numbers<[1], [0], [0], [1], [0, 0, 1, 1], [], []>} : vector<16x32xf32>, vector<32x96xf32>, vector<16x96xf32> -> vector<16x96xf32>
    %c0_8 = arith.constant 0 : index
    %c0_9 = arith.constant 0 : index
    %c0_10 = arith.constant 0 : index
    %12 = vector.load %arg4[%c0_8, %c0_9, %c0_10] : memref<2x1x96xf32, #tpu.memory_space<vmem>>, vector<1x1x96xf32>
    %13 = vector.shape_cast %12 : vector<1x1x96xf32> to vector<1x96xf32>
    %14 = vector.broadcast %13 : vector<1x96xf32> to vector<16x96xf32>
    %15 = arith.addf %11, %14 : vector<16x96xf32>
    %c0_11 = arith.constant 0 : index
    %c0_12 = arith.constant 0 : index
    %c0_13 = arith.constant 0 : index
    %16 = vector.load %arg5[%c0_11, %c0_12, %c0_13] : memref<2x32x32xf32, #tpu.memory_space<vmem>>, vector<1x32x32xf32>
    %17 = vector.shape_cast %16 : vector<1x32x32xf32> to vector<32x32xf32>
    %18 = vector.extract_strided_slice %15 {offsets = [0, 0], sizes = [8, 96], strides = [1, 1]} : vector<16x96xf32> to vector<8x96xf32>
    %cst_14 = arith.constant 0.000000e+00 : f32
    %19 = vector.broadcast %cst_14 : f32 to vector<8x32xf32>
    %20 = vector.extract_strided_slice %18 {offsets = [0, 0], sizes = [8, 16], strides = [1, 1]} : vector<8x96xf32> to vector<8x16xf32>
    %cst_15 = arith.constant 2.500000e-01 : f32
    %21 = vector.broadcast %cst_15 : f32 to vector<8x16xf32>
    %22 = arith.mulf %20, %21 : vector<8x16xf32>
    %23 = vector.extract_strided_slice %18 {offsets = [0, 32], sizes = [8, 16], strides = [1, 1]} : vector<8x96xf32> to vector<8x16xf32>
    %24 = vector.extract_strided_slice %18 {offsets = [0, 64], sizes = [8, 16], strides = [1, 1]} : vector<8x96xf32> to vector<8x16xf32>
    %cst_16 = arith.constant dense<0.000000e+00> : vector<8x8xf32>
    %25 = tpu.matmul %22, %23, %cst_16 {dimension_numbers = #tpu.dot_dimension_numbers<[1], [1], [0], [0], [0, 0, 1, 0], [], []>} : vector<8x16xf32>, vector<8x16xf32>, vector<8x8xf32> -> vector<8x8xf32>
    %cst_17 = arith.constant dense<0xFF800000> : vector<8xf32>
    %26 = vector.multi_reduction <maximumf>, %25, %cst_17 [1] : vector<8x8xf32> to vector<8xf32>
    %27 = vector.shape_cast %26 : vector<8xf32> to vector<8x1xf32>
    %28 = vector.broadcast %27 : vector<8x1xf32> to vector<8x8xf32>
    %29 = arith.subf %25, %28 : vector<8x8xf32>
    %30 = math.exp %29 : vector<8x8xf32>
    %cst_18 = arith.constant dense<0.000000e+00> : vector<8xf32>
    %31 = vector.multi_reduction <add>, %30, %cst_18 [1] : vector<8x8xf32> to vector<8xf32>
    %32 = vector.shape_cast %31 : vector<8xf32> to vector<8x1xf32>
    %33 = vector.broadcast %32 : vector<8x1xf32> to vector<8x8xf32>
    %34 = arith.divf %30, %33 : vector<8x8xf32>
    %cst_19 = arith.constant dense<0.000000e+00> : vector<8x16xf32>
    %35 = tpu.matmul %34, %24, %cst_19 {dimension_numbers = #tpu.dot_dimension_numbers<[1], [0], [0], [1], [0, 0, 1, 1], [], []>} : vector<8x8xf32>, vector<8x16xf32>, vector<8x16xf32> -> vector<8x16xf32>
    %36 = vector.extract_strided_slice %17 {offsets = [0, 0], sizes = [16, 32], strides = [1, 1]} : vector<32x32xf32> to vector<16x32xf32>
    %cst_20 = arith.constant dense<0.000000e+00> : vector<8x32xf32>
    %37 = tpu.matmul %35, %36, %cst_20 {dimension_numbers = #tpu.dot_dimension_numbers<[1], [0], [0], [1], [0, 0, 1, 1], [], []>} : vector<8x16xf32>, vector<16x32xf32>, vector<8x32xf32> -> vector<8x32xf32>
    %38 = arith.addf %19, %37 : vector<8x32xf32>
    %39 = vector.extract_strided_slice %18 {offsets = [0, 16], sizes = [8, 16], strides = [1, 1]} : vector<8x96xf32> to vector<8x16xf32>
    %cst_21 = arith.constant 2.500000e-01 : f32
    %40 = vector.broadcast %cst_21 : f32 to vector<8x16xf32>
    %41 = arith.mulf %39, %40 : vector<8x16xf32>
    %42 = vector.extract_strided_slice %18 {offsets = [0, 48], sizes = [8, 16], strides = [1, 1]} : vector<8x96xf32> to vector<8x16xf32>
    %43 = vector.extract_strided_slice %18 {offsets = [0, 80], sizes = [8, 16], strides = [1, 1]} : vector<8x96xf32> to vector<8x16xf32>
    %cst_22 = arith.constant dense<0.000000e+00> : vector<8x8xf32>
    %44 = tpu.matmul %41, %42, %cst_22 {dimension_numbers = #tpu.dot_dimension_numbers<[1], [1], [0], [0], [0, 0, 1, 0], [], []>} : vector<8x16xf32>, vector<8x16xf32>, vector<8x8xf32> -> vector<8x8xf32>
    %cst_23 = arith.constant dense<0xFF800000> : vector<8xf32>
    %45 = vector.multi_reduction <maximumf>, %44, %cst_23 [1] : vector<8x8xf32> to vector<8xf32>
    %46 = vector.shape_cast %45 : vector<8xf32> to vector<8x1xf32>
    %47 = vector.broadcast %46 : vector<8x1xf32> to vector<8x8xf32>
    %48 = arith.subf %44, %47 : vector<8x8xf32>
    %49 = math.exp %48 : vector<8x8xf32>
    %cst_24 = arith.constant dense<0.000000e+00> : vector<8xf32>
    %50 = vector.multi_reduction <add>, %49, %cst_24 [1] : vector<8x8xf32> to vector<8xf32>
    %51 = vector.shape_cast %50 : vector<8xf32> to vector<8x1xf32>
    %52 = vector.broadcast %51 : vector<8x1xf32> to vector<8x8xf32>
    %53 = arith.divf %49, %52 : vector<8x8xf32>
    %cst_25 = arith.constant dense<0.000000e+00> : vector<8x16xf32>
    %54 = tpu.matmul %53, %43, %cst_25 {dimension_numbers = #tpu.dot_dimension_numbers<[1], [0], [0], [1], [0, 0, 1, 1], [], []>} : vector<8x8xf32>, vector<8x16xf32>, vector<8x16xf32> -> vector<8x16xf32>
    %55 = vector.extract_strided_slice %17 {offsets = [16, 0], sizes = [16, 32], strides = [1, 1]} : vector<32x32xf32> to vector<16x32xf32>
    %cst_26 = arith.constant dense<0.000000e+00> : vector<8x32xf32>
    %56 = tpu.matmul %54, %55, %cst_26 {dimension_numbers = #tpu.dot_dimension_numbers<[1], [0], [0], [1], [0, 0, 1, 1], [], []>} : vector<8x16xf32>, vector<16x32xf32>, vector<8x32xf32> -> vector<8x32xf32>
    %57 = arith.addf %38, %56 : vector<8x32xf32>
    %58 = vector.extract_strided_slice %15 {offsets = [8, 0], sizes = [8, 96], strides = [1, 1]} : vector<16x96xf32> to vector<8x96xf32>
    %cst_27 = arith.constant 0.000000e+00 : f32
    %59 = vector.broadcast %cst_27 : f32 to vector<8x32xf32>
    %60 = vector.extract_strided_slice %58 {offsets = [0, 0], sizes = [8, 16], strides = [1, 1]} : vector<8x96xf32> to vector<8x16xf32>
    %cst_28 = arith.constant 2.500000e-01 : f32
    %61 = vector.broadcast %cst_28 : f32 to vector<8x16xf32>
    %62 = arith.mulf %60, %61 : vector<8x16xf32>
    %63 = vector.extract_strided_slice %58 {offsets = [0, 32], sizes = [8, 16], strides = [1, 1]} : vector<8x96xf32> to vector<8x16xf32>
    %64 = vector.extract_strided_slice %58 {offsets = [0, 64], sizes = [8, 16], strides = [1, 1]} : vector<8x96xf32> to vector<8x16xf32>
    %cst_29 = arith.constant dense<0.000000e+00> : vector<8x8xf32>
    %65 = tpu.matmul %62, %63, %cst_29 {dimension_numbers = #tpu.dot_dimension_numbers<[1], [1], [0], [0], [0, 0, 1, 0], [], []>} : vector<8x16xf32>, vector<8x16xf32>, vector<8x8xf32> -> vector<8x8xf32>
    %cst_30 = arith.constant dense<0xFF800000> : vector<8xf32>
    %66 = vector.multi_reduction <maximumf>, %65, %cst_30 [1] : vector<8x8xf32> to vector<8xf32>
    %67 = vector.shape_cast %66 : vector<8xf32> to vector<8x1xf32>
    %68 = vector.broadcast %67 : vector<8x1xf32> to vector<8x8xf32>
    %69 = arith.subf %65, %68 : vector<8x8xf32>
    %70 = math.exp %69 : vector<8x8xf32>
    %cst_31 = arith.constant dense<0.000000e+00> : vector<8xf32>
    %71 = vector.multi_reduction <add>, %70, %cst_31 [1] : vector<8x8xf32> to vector<8xf32>
    %72 = vector.shape_cast %71 : vector<8xf32> to vector<8x1xf32>
    %73 = vector.broadcast %72 : vector<8x1xf32> to vector<8x8xf32>
    %74 = arith.divf %70, %73 : vector<8x8xf32>
    %cst_32 = arith.constant dense<0.000000e+00> : vector<8x16xf32>
    %75 = tpu.matmul %74, %64, %cst_32 {dimension_numbers = #tpu.dot_dimension_numbers<[1], [0], [0], [1], [0, 0, 1, 1], [], []>} : vector<8x8xf32>, vector<8x16xf32>, vector<8x16xf32> -> vector<8x16xf32>
    %76 = vector.extract_strided_slice %17 {offsets = [0, 0], sizes = [16, 32], strides = [1, 1]} : vector<32x32xf32> to vector<16x32xf32>
    %cst_33 = arith.constant dense<0.000000e+00> : vector<8x32xf32>
    %77 = tpu.matmul %75, %76, %cst_33 {dimension_numbers = #tpu.dot_dimension_numbers<[1], [0], [0], [1], [0, 0, 1, 1], [], []>} : vector<8x16xf32>, vector<16x32xf32>, vector<8x32xf32> -> vector<8x32xf32>
    %78 = arith.addf %59, %77 : vector<8x32xf32>
    %79 = vector.extract_strided_slice %58 {offsets = [0, 16], sizes = [8, 16], strides = [1, 1]} : vector<8x96xf32> to vector<8x16xf32>
    %cst_34 = arith.constant 2.500000e-01 : f32
    %80 = vector.broadcast %cst_34 : f32 to vector<8x16xf32>
    %81 = arith.mulf %79, %80 : vector<8x16xf32>
    %82 = vector.extract_strided_slice %58 {offsets = [0, 48], sizes = [8, 16], strides = [1, 1]} : vector<8x96xf32> to vector<8x16xf32>
    %83 = vector.extract_strided_slice %58 {offsets = [0, 80], sizes = [8, 16], strides = [1, 1]} : vector<8x96xf32> to vector<8x16xf32>
    %cst_35 = arith.constant dense<0.000000e+00> : vector<8x8xf32>
    %84 = tpu.matmul %81, %82, %cst_35 {dimension_numbers = #tpu.dot_dimension_numbers<[1], [1], [0], [0], [0, 0, 1, 0], [], []>} : vector<8x16xf32>, vector<8x16xf32>, vector<8x8xf32> -> vector<8x8xf32>
    %cst_36 = arith.constant dense<0xFF800000> : vector<8xf32>
    %85 = vector.multi_reduction <maximumf>, %84, %cst_36 [1] : vector<8x8xf32> to vector<8xf32>
    %86 = vector.shape_cast %85 : vector<8xf32> to vector<8x1xf32>
    %87 = vector.broadcast %86 : vector<8x1xf32> to vector<8x8xf32>
    %88 = arith.subf %84, %87 : vector<8x8xf32>
    %89 = math.exp %88 : vector<8x8xf32>
    %cst_37 = arith.constant dense<0.000000e+00> : vector<8xf32>
    %90 = vector.multi_reduction <add>, %89, %cst_37 [1] : vector<8x8xf32> to vector<8xf32>
    %91 = vector.shape_cast %90 : vector<8xf32> to vector<8x1xf32>
    %92 = vector.broadcast %91 : vector<8x1xf32> to vector<8x8xf32>
    %93 = arith.divf %89, %92 : vector<8x8xf32>
    %cst_38 = arith.constant dense<0.000000e+00> : vector<8x16xf32>
    %94 = tpu.matmul %93, %83, %cst_38 {dimension_numbers = #tpu.dot_dimension_numbers<[1], [0], [0], [1], [0, 0, 1, 1], [], []>} : vector<8x8xf32>, vector<8x16xf32>, vector<8x16xf32> -> vector<8x16xf32>
    %95 = vector.extract_strided_slice %17 {offsets = [16, 0], sizes = [16, 32], strides = [1, 1]} : vector<32x32xf32> to vector<16x32xf32>
    %cst_39 = arith.constant dense<0.000000e+00> : vector<8x32xf32>
    %96 = tpu.matmul %94, %95, %cst_39 {dimension_numbers = #tpu.dot_dimension_numbers<[1], [0], [0], [1], [0, 0, 1, 1], [], []>} : vector<8x16xf32>, vector<16x32xf32>, vector<8x32xf32> -> vector<8x32xf32>
    %97 = arith.addf %78, %96 : vector<8x32xf32>
    %98 = tpu.concatenate %57, %97 in 0 : vector<8x32xf32>, vector<8x32xf32> -> vector<16x32xf32>
    %c0_40 = arith.constant 0 : index
    %c0_41 = arith.constant 0 : index
    %c0_42 = arith.constant 0 : index
    %99 = vector.load %arg6[%c0_40, %c0_41, %c0_42] : memref<2x1x32xf32, #tpu.memory_space<vmem>>, vector<1x1x32xf32>
    %100 = vector.shape_cast %99 : vector<1x1x32xf32> to vector<1x32xf32>
    %101 = vector.broadcast %100 : vector<1x32xf32> to vector<16x32xf32>
    %102 = arith.addf %98, %101 : vector<16x32xf32>
    %103 = arith.addf %8, %102 : vector<16x32xf32>
    %cst_43 = arith.constant dense<0.000000e+00> : vector<16xf32>
    %104 = vector.multi_reduction <add>, %103, %cst_43 [1] : vector<16x32xf32> to vector<16xf32>
    %105 = vector.shape_cast %104 : vector<16xf32> to vector<16x1xf32>
    %cst_44 = arith.constant 3.200000e+01 : f32
    %106 = vector.broadcast %cst_44 : f32 to vector<16x1xf32>
    %107 = arith.divf %105, %106 : vector<16x1xf32>
    %108 = vector.broadcast %107 : vector<16x1xf32> to vector<16x32xf32>
    %109 = arith.subf %103, %108 : vector<16x32xf32>
    %110 = arith.mulf %109, %109 : vector<16x32xf32>
    %cst_45 = arith.constant dense<0.000000e+00> : vector<16xf32>
    %111 = vector.multi_reduction <add>, %110, %cst_45 [1] : vector<16x32xf32> to vector<16xf32>
    %112 = vector.shape_cast %111 : vector<16xf32> to vector<16x1xf32>
    %cst_46 = arith.constant 3.200000e+01 : f32
    %113 = vector.broadcast %cst_46 : f32 to vector<16x1xf32>
    %114 = arith.divf %112, %113 : vector<16x1xf32>
    %115 = vector.broadcast %107 : vector<16x1xf32> to vector<16x32xf32>
    %116 = arith.subf %103, %115 : vector<16x32xf32>
    %cst_47 = arith.constant 9.99999974E-6 : f32
    %117 = vector.broadcast %cst_47 : f32 to vector<16x1xf32>
    %118 = arith.addf %114, %117 : vector<16x1xf32>
    %119 = math.rsqrt %118 : vector<16x1xf32>
    %120 = vector.broadcast %119 : vector<16x1xf32> to vector<16x32xf32>
    %121 = arith.mulf %116, %120 : vector<16x32xf32>
    %c0_48 = arith.constant 0 : index
    %c0_49 = arith.constant 0 : index
    %c0_50 = arith.constant 0 : index
    %122 = vector.load %arg7[%c0_48, %c0_49, %c0_50] : memref<2x1x32xf32, #tpu.memory_space<vmem>>, vector<1x1x32xf32>
    %123 = vector.shape_cast %122 : vector<1x1x32xf32> to vector<1x32xf32>
    %124 = vector.broadcast %123 : vector<1x32xf32> to vector<16x32xf32>
    %125 = arith.mulf %121, %124 : vector<16x32xf32>
    %c0_51 = arith.constant 0 : index
    %c0_52 = arith.constant 0 : index
    %c0_53 = arith.constant 0 : index
    %126 = vector.load %arg8[%c0_51, %c0_52, %c0_53] : memref<2x1x32xf32, #tpu.memory_space<vmem>>, vector<1x1x32xf32>
    %127 = vector.shape_cast %126 : vector<1x1x32xf32> to vector<1x32xf32>
    %128 = vector.broadcast %127 : vector<1x32xf32> to vector<16x32xf32>
    %129 = arith.addf %125, %128 : vector<16x32xf32>
    %c0_54 = arith.constant 0 : index
    %c0_55 = arith.constant 0 : index
    %c0_56 = arith.constant 0 : index
    %130 = vector.load %arg9[%c0_54, %c0_55, %c0_56] : memref<2x32x2048xf32, #tpu.memory_space<vmem>>, vector<1x32x2048xf32>
    %131 = vector.shape_cast %130 : vector<1x32x2048xf32> to vector<32x2048xf32>
    %cst_57 = arith.constant dense<0.000000e+00> : vector<16x2048xf32>
    %132 = tpu.matmul %129, %131, %cst_57 {dimension_numbers = #tpu.dot_dimension_numbers<[1], [0], [0], [1], [0, 0, 1, 1], [], []>} : vector<16x32xf32>, vector<32x2048xf32>, vector<16x2048xf32> -> vector<16x2048xf32>
    %c0_58 = arith.constant 0 : index
    %c0_59 = arith.constant 0 : index
    %c0_60 = arith.constant 0 : index
    %133 = vector.load %arg10[%c0_58, %c0_59, %c0_60] : memref<2x1x2048xf32, #tpu.memory_space<vmem>>, vector<1x1x2048xf32>
    %134 = vector.shape_cast %133 : vector<1x1x2048xf32> to vector<1x2048xf32>
    %135 = vector.broadcast %134 : vector<1x2048xf32> to vector<16x2048xf32>
    %136 = arith.addf %132, %135 : vector<16x2048xf32>
    %cst_61 = arith.constant 0.000000e+00 : f32
    %137 = vector.broadcast %cst_61 : f32 to vector<16x2048xf32>
    %138 = arith.maximumf %136, %137 : vector<16x2048xf32>
    %c0_62 = arith.constant 0 : index
    %c0_63 = arith.constant 0 : index
    %c0_64 = arith.constant 0 : index
    %139 = vector.load %arg11[%c0_62, %c0_63, %c0_64] : memref<2x32x2048xf32, #tpu.memory_space<vmem>>, vector<1x32x2048xf32>
    %140 = vector.shape_cast %139 : vector<1x32x2048xf32> to vector<32x2048xf32>
    %cst_65 = arith.constant dense<0.000000e+00> : vector<16x32xf32>
    %141 = tpu.matmul %138, %140, %cst_65 {dimension_numbers = #tpu.dot_dimension_numbers<[1], [1], [0], [0], [0, 0, 1, 0], [], []>} : vector<16x2048xf32>, vector<32x2048xf32>, vector<16x32xf32> -> vector<16x32xf32>
    %c0_66 = arith.constant 0 : index
    %c0_67 = arith.constant 0 : index
    %c0_68 = arith.constant 0 : index
    %142 = vector.load %arg12[%c0_66, %c0_67, %c0_68] : memref<2x1x32xf32, #tpu.memory_space<vmem>>, vector<1x1x32xf32>
    %143 = vector.shape_cast %142 : vector<1x1x32xf32> to vector<1x32xf32>
    %144 = vector.broadcast %143 : vector<1x32xf32> to vector<16x32xf32>
    %145 = arith.addf %141, %144 : vector<16x32xf32>
    %146 = arith.addf %129, %145 : vector<16x32xf32>
    %cst_69 = arith.constant dense<0.000000e+00> : vector<16xf32>
    %147 = vector.multi_reduction <add>, %146, %cst_69 [1] : vector<16x32xf32> to vector<16xf32>
    %148 = vector.shape_cast %147 : vector<16xf32> to vector<16x1xf32>
    %cst_70 = arith.constant 3.200000e+01 : f32
    %149 = vector.broadcast %cst_70 : f32 to vector<16x1xf32>
    %150 = arith.divf %148, %149 : vector<16x1xf32>
    %151 = vector.broadcast %150 : vector<16x1xf32> to vector<16x32xf32>
    %152 = arith.subf %146, %151 : vector<16x32xf32>
    %153 = arith.mulf %152, %152 : vector<16x32xf32>
    %cst_71 = arith.constant dense<0.000000e+00> : vector<16xf32>
    %154 = vector.multi_reduction <add>, %153, %cst_71 [1] : vector<16x32xf32> to vector<16xf32>
    %155 = vector.shape_cast %154 : vector<16xf32> to vector<16x1xf32>
    %cst_72 = arith.constant 3.200000e+01 : f32
    %156 = vector.broadcast %cst_72 : f32 to vector<16x1xf32>
    %157 = arith.divf %155, %156 : vector<16x1xf32>
    %158 = vector.broadcast %150 : vector<16x1xf32> to vector<16x32xf32>
    %159 = arith.subf %146, %158 : vector<16x32xf32>
    %cst_73 = arith.constant 9.99999974E-6 : f32
    %160 = vector.broadcast %cst_73 : f32 to vector<16x1xf32>
    %161 = arith.addf %157, %160 : vector<16x1xf32>
    %162 = math.rsqrt %161 : vector<16x1xf32>
    %163 = vector.broadcast %162 : vector<16x1xf32> to vector<16x32xf32>
    %164 = arith.mulf %159, %163 : vector<16x32xf32>
    %c0_74 = arith.constant 0 : index
    %c0_75 = arith.constant 0 : index
    %c0_76 = arith.constant 0 : index
    %165 = vector.load %arg13[%c0_74, %c0_75, %c0_76] : memref<2x1x32xf32, #tpu.memory_space<vmem>>, vector<1x1x32xf32>
    %166 = vector.shape_cast %165 : vector<1x1x32xf32> to vector<1x32xf32>
    %167 = vector.broadcast %166 : vector<1x32xf32> to vector<16x32xf32>
    %168 = arith.mulf %164, %167 : vector<16x32xf32>
    %c0_77 = arith.constant 0 : index
    %c0_78 = arith.constant 0 : index
    %c0_79 = arith.constant 0 : index
    %169 = vector.load %arg14[%c0_77, %c0_78, %c0_79] : memref<2x1x32xf32, #tpu.memory_space<vmem>>, vector<1x1x32xf32>
    %170 = vector.shape_cast %169 : vector<1x1x32xf32> to vector<1x32xf32>
    %171 = vector.broadcast %170 : vector<1x32xf32> to vector<16x32xf32>
    %172 = arith.addf %168, %171 : vector<16x32xf32>
    %c1 = arith.constant 1 : index
    %c0_80 = arith.constant 0 : index
    %c0_81 = arith.constant 0 : index
    %173 = vector.load %arg3[%c1, %c0_80, %c0_81] : memref<2x32x96xf32, #tpu.memory_space<vmem>>, vector<1x32x96xf32>
    %174 = vector.shape_cast %173 : vector<1x32x96xf32> to vector<32x96xf32>
    %cst_82 = arith.constant dense<0.000000e+00> : vector<16x96xf32>
    %175 = tpu.matmul %172, %174, %cst_82 {dimension_numbers = #tpu.dot_dimension_numbers<[1], [0], [0], [1], [0, 0, 1, 1], [], []>} : vector<16x32xf32>, vector<32x96xf32>, vector<16x96xf32> -> vector<16x96xf32>
    %c1_83 = arith.constant 1 : index
    %c0_84 = arith.constant 0 : index
    %c0_85 = arith.constant 0 : index
    %176 = vector.load %arg4[%c1_83, %c0_84, %c0_85] : memref<2x1x96xf32, #tpu.memory_space<vmem>>, vector<1x1x96xf32>
    %177 = vector.shape_cast %176 : vector<1x1x96xf32> to vector<1x96xf32>
    %178 = vector.broadcast %177 : vector<1x96xf32> to vector<16x96xf32>
    %179 = arith.addf %175, %178 : vector<16x96xf32>
    %c1_86 = arith.constant 1 : index
    %c0_87 = arith.constant 0 : index
    %c0_88 = arith.constant 0 : index
    %180 = vector.load %arg5[%c1_86, %c0_87, %c0_88] : memref<2x32x32xf32, #tpu.memory_space<vmem>>, vector<1x32x32xf32>
    %181 = vector.shape_cast %180 : vector<1x32x32xf32> to vector<32x32xf32>
    %182 = vector.extract_strided_slice %179 {offsets = [0, 0], sizes = [8, 96], strides = [1, 1]} : vector<16x96xf32> to vector<8x96xf32>
    %cst_89 = arith.constant 0.000000e+00 : f32
    %183 = vector.broadcast %cst_89 : f32 to vector<8x32xf32>
    %184 = vector.extract_strided_slice %182 {offsets = [0, 0], sizes = [8, 16], strides = [1, 1]} : vector<8x96xf32> to vector<8x16xf32>
    %cst_90 = arith.constant 2.500000e-01 : f32
    %185 = vector.broadcast %cst_90 : f32 to vector<8x16xf32>
    %186 = arith.mulf %184, %185 : vector<8x16xf32>
    %187 = vector.extract_strided_slice %182 {offsets = [0, 32], sizes = [8, 16], strides = [1, 1]} : vector<8x96xf32> to vector<8x16xf32>
    %188 = vector.extract_strided_slice %182 {offsets = [0, 64], sizes = [8, 16], strides = [1, 1]} : vector<8x96xf32> to vector<8x16xf32>
    %cst_91 = arith.constant dense<0.000000e+00> : vector<8x8xf32>
    %189 = tpu.matmul %186, %187, %cst_91 {dimension_numbers = #tpu.dot_dimension_numbers<[1], [1], [0], [0], [0, 0, 1, 0], [], []>} : vector<8x16xf32>, vector<8x16xf32>, vector<8x8xf32> -> vector<8x8xf32>
    %cst_92 = arith.constant dense<0xFF800000> : vector<8xf32>
    %190 = vector.multi_reduction <maximumf>, %189, %cst_92 [1] : vector<8x8xf32> to vector<8xf32>
    %191 = vector.shape_cast %190 : vector<8xf32> to vector<8x1xf32>
    %192 = vector.broadcast %191 : vector<8x1xf32> to vector<8x8xf32>
    %193 = arith.subf %189, %192 : vector<8x8xf32>
    %194 = math.exp %193 : vector<8x8xf32>
    %cst_93 = arith.constant dense<0.000000e+00> : vector<8xf32>
    %195 = vector.multi_reduction <add>, %194, %cst_93 [1] : vector<8x8xf32> to vector<8xf32>
    %196 = vector.shape_cast %195 : vector<8xf32> to vector<8x1xf32>
    %197 = vector.broadcast %196 : vector<8x1xf32> to vector<8x8xf32>
    %198 = arith.divf %194, %197 : vector<8x8xf32>
    %cst_94 = arith.constant dense<0.000000e+00> : vector<8x16xf32>
    %199 = tpu.matmul %198, %188, %cst_94 {dimension_numbers = #tpu.dot_dimension_numbers<[1], [0], [0], [1], [0, 0, 1, 1], [], []>} : vector<8x8xf32>, vector<8x16xf32>, vector<8x16xf32> -> vector<8x16xf32>
    %200 = vector.extract_strided_slice %181 {offsets = [0, 0], sizes = [16, 32], strides = [1, 1]} : vector<32x32xf32> to vector<16x32xf32>
    %cst_95 = arith.constant dense<0.000000e+00> : vector<8x32xf32>
    %201 = tpu.matmul %199, %200, %cst_95 {dimension_numbers = #tpu.dot_dimension_numbers<[1], [0], [0], [1], [0, 0, 1, 1], [], []>} : vector<8x16xf32>, vector<16x32xf32>, vector<8x32xf32> -> vector<8x32xf32>
    %202 = arith.addf %183, %201 : vector<8x32xf32>
    %203 = vector.extract_strided_slice %182 {offsets = [0, 16], sizes = [8, 16], strides = [1, 1]} : vector<8x96xf32> to vector<8x16xf32>
    %cst_96 = arith.constant 2.500000e-01 : f32
    %204 = vector.broadcast %cst_96 : f32 to vector<8x16xf32>
    %205 = arith.mulf %203, %204 : vector<8x16xf32>
    %206 = vector.extract_strided_slice %182 {offsets = [0, 48], sizes = [8, 16], strides = [1, 1]} : vector<8x96xf32> to vector<8x16xf32>
    %207 = vector.extract_strided_slice %182 {offsets = [0, 80], sizes = [8, 16], strides = [1, 1]} : vector<8x96xf32> to vector<8x16xf32>
    %cst_97 = arith.constant dense<0.000000e+00> : vector<8x8xf32>
    %208 = tpu.matmul %205, %206, %cst_97 {dimension_numbers = #tpu.dot_dimension_numbers<[1], [1], [0], [0], [0, 0, 1, 0], [], []>} : vector<8x16xf32>, vector<8x16xf32>, vector<8x8xf32> -> vector<8x8xf32>
    %cst_98 = arith.constant dense<0xFF800000> : vector<8xf32>
    %209 = vector.multi_reduction <maximumf>, %208, %cst_98 [1] : vector<8x8xf32> to vector<8xf32>
    %210 = vector.shape_cast %209 : vector<8xf32> to vector<8x1xf32>
    %211 = vector.broadcast %210 : vector<8x1xf32> to vector<8x8xf32>
    %212 = arith.subf %208, %211 : vector<8x8xf32>
    %213 = math.exp %212 : vector<8x8xf32>
    %cst_99 = arith.constant dense<0.000000e+00> : vector<8xf32>
    %214 = vector.multi_reduction <add>, %213, %cst_99 [1] : vector<8x8xf32> to vector<8xf32>
    %215 = vector.shape_cast %214 : vector<8xf32> to vector<8x1xf32>
    %216 = vector.broadcast %215 : vector<8x1xf32> to vector<8x8xf32>
    %217 = arith.divf %213, %216 : vector<8x8xf32>
    %cst_100 = arith.constant dense<0.000000e+00> : vector<8x16xf32>
    %218 = tpu.matmul %217, %207, %cst_100 {dimension_numbers = #tpu.dot_dimension_numbers<[1], [0], [0], [1], [0, 0, 1, 1], [], []>} : vector<8x8xf32>, vector<8x16xf32>, vector<8x16xf32> -> vector<8x16xf32>
    %219 = vector.extract_strided_slice %181 {offsets = [16, 0], sizes = [16, 32], strides = [1, 1]} : vector<32x32xf32> to vector<16x32xf32>
    %cst_101 = arith.constant dense<0.000000e+00> : vector<8x32xf32>
    %220 = tpu.matmul %218, %219, %cst_101 {dimension_numbers = #tpu.dot_dimension_numbers<[1], [0], [0], [1], [0, 0, 1, 1], [], []>} : vector<8x16xf32>, vector<16x32xf32>, vector<8x32xf32> -> vector<8x32xf32>
    %221 = arith.addf %202, %220 : vector<8x32xf32>
    %222 = vector.extract_strided_slice %179 {offsets = [8, 0], sizes = [8, 96], strides = [1, 1]} : vector<16x96xf32> to vector<8x96xf32>
    %cst_102 = arith.constant 0.000000e+00 : f32
    %223 = vector.broadcast %cst_102 : f32 to vector<8x32xf32>
    %224 = vector.extract_strided_slice %222 {offsets = [0, 0], sizes = [8, 16], strides = [1, 1]} : vector<8x96xf32> to vector<8x16xf32>
    %cst_103 = arith.constant 2.500000e-01 : f32
    %225 = vector.broadcast %cst_103 : f32 to vector<8x16xf32>
    %226 = arith.mulf %224, %225 : vector<8x16xf32>
    %227 = vector.extract_strided_slice %222 {offsets = [0, 32], sizes = [8, 16], strides = [1, 1]} : vector<8x96xf32> to vector<8x16xf32>
    %228 = vector.extract_strided_slice %222 {offsets = [0, 64], sizes = [8, 16], strides = [1, 1]} : vector<8x96xf32> to vector<8x16xf32>
    %cst_104 = arith.constant dense<0.000000e+00> : vector<8x8xf32>
    %229 = tpu.matmul %226, %227, %cst_104 {dimension_numbers = #tpu.dot_dimension_numbers<[1], [1], [0], [0], [0, 0, 1, 0], [], []>} : vector<8x16xf32>, vector<8x16xf32>, vector<8x8xf32> -> vector<8x8xf32>
    %cst_105 = arith.constant dense<0xFF800000> : vector<8xf32>
    %230 = vector.multi_reduction <maximumf>, %229, %cst_105 [1] : vector<8x8xf32> to vector<8xf32>
    %231 = vector.shape_cast %230 : vector<8xf32> to vector<8x1xf32>
    %232 = vector.broadcast %231 : vector<8x1xf32> to vector<8x8xf32>
    %233 = arith.subf %229, %232 : vector<8x8xf32>
    %234 = math.exp %233 : vector<8x8xf32>
    %cst_106 = arith.constant dense<0.000000e+00> : vector<8xf32>
    %235 = vector.multi_reduction <add>, %234, %cst_106 [1] : vector<8x8xf32> to vector<8xf32>
    %236 = vector.shape_cast %235 : vector<8xf32> to vector<8x1xf32>
    %237 = vector.broadcast %236 : vector<8x1xf32> to vector<8x8xf32>
    %238 = arith.divf %234, %237 : vector<8x8xf32>
    %cst_107 = arith.constant dense<0.000000e+00> : vector<8x16xf32>
    %239 = tpu.matmul %238, %228, %cst_107 {dimension_numbers = #tpu.dot_dimension_numbers<[1], [0], [0], [1], [0, 0, 1, 1], [], []>} : vector<8x8xf32>, vector<8x16xf32>, vector<8x16xf32> -> vector<8x16xf32>
    %240 = vector.extract_strided_slice %181 {offsets = [0, 0], sizes = [16, 32], strides = [1, 1]} : vector<32x32xf32> to vector<16x32xf32>
    %cst_108 = arith.constant dense<0.000000e+00> : vector<8x32xf32>
    %241 = tpu.matmul %239, %240, %cst_108 {dimension_numbers = #tpu.dot_dimension_numbers<[1], [0], [0], [1], [0, 0, 1, 1], [], []>} : vector<8x16xf32>, vector<16x32xf32>, vector<8x32xf32> -> vector<8x32xf32>
    %242 = arith.addf %223, %241 : vector<8x32xf32>
    %243 = vector.extract_strided_slice %222 {offsets = [0, 16], sizes = [8, 16], strides = [1, 1]} : vector<8x96xf32> to vector<8x16xf32>
    %cst_109 = arith.constant 2.500000e-01 : f32
    %244 = vector.broadcast %cst_109 : f32 to vector<8x16xf32>
    %245 = arith.mulf %243, %244 : vector<8x16xf32>
    %246 = vector.extract_strided_slice %222 {offsets = [0, 48], sizes = [8, 16], strides = [1, 1]} : vector<8x96xf32> to vector<8x16xf32>
    %247 = vector.extract_strided_slice %222 {offsets = [0, 80], sizes = [8, 16], strides = [1, 1]} : vector<8x96xf32> to vector<8x16xf32>
    %cst_110 = arith.constant dense<0.000000e+00> : vector<8x8xf32>
    %248 = tpu.matmul %245, %246, %cst_110 {dimension_numbers = #tpu.dot_dimension_numbers<[1], [1], [0], [0], [0, 0, 1, 0], [], []>} : vector<8x16xf32>, vector<8x16xf32>, vector<8x8xf32> -> vector<8x8xf32>
    %cst_111 = arith.constant dense<0xFF800000> : vector<8xf32>
    %249 = vector.multi_reduction <maximumf>, %248, %cst_111 [1] : vector<8x8xf32> to vector<8xf32>
    %250 = vector.shape_cast %249 : vector<8xf32> to vector<8x1xf32>
    %251 = vector.broadcast %250 : vector<8x1xf32> to vector<8x8xf32>
    %252 = arith.subf %248, %251 : vector<8x8xf32>
    %253 = math.exp %252 : vector<8x8xf32>
    %cst_112 = arith.constant dense<0.000000e+00> : vector<8xf32>
    %254 = vector.multi_reduction <add>, %253, %cst_112 [1] : vector<8x8xf32> to vector<8xf32>
    %255 = vector.shape_cast %254 : vector<8xf32> to vector<8x1xf32>
    %256 = vector.broadcast %255 : vector<8x1xf32> to vector<8x8xf32>
    %257 = arith.divf %253, %256 : vector<8x8xf32>
    %cst_113 = arith.constant dense<0.000000e+00> : vector<8x16xf32>
    %258 = tpu.matmul %257, %247, %cst_113 {dimension_numbers = #tpu.dot_dimension_numbers<[1], [0], [0], [1], [0, 0, 1, 1], [], []>} : vector<8x8xf32>, vector<8x16xf32>, vector<8x16xf32> -> vector<8x16xf32>
    %259 = vector.extract_strided_slice %181 {offsets = [16, 0], sizes = [16, 32], strides = [1, 1]} : vector<32x32xf32> to vector<16x32xf32>
    %cst_114 = arith.constant dense<0.000000e+00> : vector<8x32xf32>
    %260 = tpu.matmul %258, %259, %cst_114 {dimension_numbers = #tpu.dot_dimension_numbers<[1], [0], [0], [1], [0, 0, 1, 1], [], []>} : vector<8x16xf32>, vector<16x32xf32>, vector<8x32xf32> -> vector<8x32xf32>
    %261 = arith.addf %242, %260 : vector<8x32xf32>
    %262 = tpu.concatenate %221, %261 in 0 : vector<8x32xf32>, vector<8x32xf32> -> vector<16x32xf32>
    %c1_115 = arith.constant 1 : index
    %c0_116 = arith.constant 0 : index
    %c0_117 = arith.constant 0 : index
    %263 = vector.load %arg6[%c1_115, %c0_116, %c0_117] : memref<2x1x32xf32, #tpu.memory_space<vmem>>, vector<1x1x32xf32>
    %264 = vector.shape_cast %263 : vector<1x1x32xf32> to vector<1x32xf32>
    %265 = vector.broadcast %264 : vector<1x32xf32> to vector<16x32xf32>
    %266 = arith.addf %262, %265 : vector<16x32xf32>
    %267 = arith.addf %172, %266 : vector<16x32xf32>
    %cst_118 = arith.constant dense<0.000000e+00> : vector<16xf32>
    %268 = vector.multi_reduction <add>, %267, %cst_118 [1] : vector<16x32xf32> to vector<16xf32>
    %269 = vector.shape_cast %268 : vector<16xf32> to vector<16x1xf32>
    %cst_119 = arith.constant 3.200000e+01 : f32
    %270 = vector.broadcast %cst_119 : f32 to vector<16x1xf32>
    %271 = arith.divf %269, %270 : vector<16x1xf32>
    %272 = vector.broadcast %271 : vector<16x1xf32> to vector<16x32xf32>
    %273 = arith.subf %267, %272 : vector<16x32xf32>
    %274 = arith.mulf %273, %273 : vector<16x32xf32>
    %cst_120 = arith.constant dense<0.000000e+00> : vector<16xf32>
    %275 = vector.multi_reduction <add>, %274, %cst_120 [1] : vector<16x32xf32> to vector<16xf32>
    %276 = vector.shape_cast %275 : vector<16xf32> to vector<16x1xf32>
    %cst_121 = arith.constant 3.200000e+01 : f32
    %277 = vector.broadcast %cst_121 : f32 to vector<16x1xf32>
    %278 = arith.divf %276, %277 : vector<16x1xf32>
    %279 = vector.broadcast %271 : vector<16x1xf32> to vector<16x32xf32>
    %280 = arith.subf %267, %279 : vector<16x32xf32>
    %cst_122 = arith.constant 9.99999974E-6 : f32
    %281 = vector.broadcast %cst_122 : f32 to vector<16x1xf32>
    %282 = arith.addf %278, %281 : vector<16x1xf32>
    %283 = math.rsqrt %282 : vector<16x1xf32>
    %284 = vector.broadcast %283 : vector<16x1xf32> to vector<16x32xf32>
    %285 = arith.mulf %280, %284 : vector<16x32xf32>
    %c1_123 = arith.constant 1 : index
    %c0_124 = arith.constant 0 : index
    %c0_125 = arith.constant 0 : index
    %286 = vector.load %arg7[%c1_123, %c0_124, %c0_125] : memref<2x1x32xf32, #tpu.memory_space<vmem>>, vector<1x1x32xf32>
    %287 = vector.shape_cast %286 : vector<1x1x32xf32> to vector<1x32xf32>
    %288 = vector.broadcast %287 : vector<1x32xf32> to vector<16x32xf32>
    %289 = arith.mulf %285, %288 : vector<16x32xf32>
    %c1_126 = arith.constant 1 : index
    %c0_127 = arith.constant 0 : index
    %c0_128 = arith.constant 0 : index
    %290 = vector.load %arg8[%c1_126, %c0_127, %c0_128] : memref<2x1x32xf32, #tpu.memory_space<vmem>>, vector<1x1x32xf32>
    %291 = vector.shape_cast %290 : vector<1x1x32xf32> to vector<1x32xf32>
    %292 = vector.broadcast %291 : vector<1x32xf32> to vector<16x32xf32>
    %293 = arith.addf %289, %292 : vector<16x32xf32>
    %c1_129 = arith.constant 1 : index
    %c0_130 = arith.constant 0 : index
    %c0_131 = arith.constant 0 : index
    %294 = vector.load %arg9[%c1_129, %c0_130, %c0_131] : memref<2x32x2048xf32, #tpu.memory_space<vmem>>, vector<1x32x2048xf32>
    %295 = vector.shape_cast %294 : vector<1x32x2048xf32> to vector<32x2048xf32>
    %cst_132 = arith.constant dense<0.000000e+00> : vector<16x2048xf32>
    %296 = tpu.matmul %293, %295, %cst_132 {dimension_numbers = #tpu.dot_dimension_numbers<[1], [0], [0], [1], [0, 0, 1, 1], [], []>} : vector<16x32xf32>, vector<32x2048xf32>, vector<16x2048xf32> -> vector<16x2048xf32>
    %c1_133 = arith.constant 1 : index
    %c0_134 = arith.constant 0 : index
    %c0_135 = arith.constant 0 : index
    %297 = vector.load %arg10[%c1_133, %c0_134, %c0_135] : memref<2x1x2048xf32, #tpu.memory_space<vmem>>, vector<1x1x2048xf32>
    %298 = vector.shape_cast %297 : vector<1x1x2048xf32> to vector<1x2048xf32>
    %299 = vector.broadcast %298 : vector<1x2048xf32> to vector<16x2048xf32>
    %300 = arith.addf %296, %299 : vector<16x2048xf32>
    %cst_136 = arith.constant 0.000000e+00 : f32
    %301 = vector.broadcast %cst_136 : f32 to vector<16x2048xf32>
    %302 = arith.maximumf %300, %301 : vector<16x2048xf32>
    %c1_137 = arith.constant 1 : index
    %c0_138 = arith.constant 0 : index
    %c0_139 = arith.constant 0 : index
    %303 = vector.load %arg11[%c1_137, %c0_138, %c0_139] : memref<2x32x2048xf32, #tpu.memory_space<vmem>>, vector<1x32x2048xf32>
    %304 = vector.shape_cast %303 : vector<1x32x2048xf32> to vector<32x2048xf32>
    %cst_140 = arith.constant dense<0.000000e+00> : vector<16x32xf32>
    %305 = tpu.matmul %302, %304, %cst_140 {dimension_numbers = #tpu.dot_dimension_numbers<[1], [1], [0], [0], [0, 0, 1, 0], [], []>} : vector<16x2048xf32>, vector<32x2048xf32>, vector<16x32xf32> -> vector<16x32xf32>
    %c1_141 = arith.constant 1 : index
    %c0_142 = arith.constant 0 : index
    %c0_143 = arith.constant 0 : index
    %306 = vector.load %arg12[%c1_141, %c0_142, %c0_143] : memref<2x1x32xf32, #tpu.memory_space<vmem>>, vector<1x1x32xf32>
    %307 = vector.shape_cast %306 : vector<1x1x32xf32> to vector<1x32xf32>
    %308 = vector.broadcast %307 : vector<1x32xf32> to vector<16x32xf32>
    %309 = arith.addf %305, %308 : vector<16x32xf32>
    %310 = arith.addf %293, %309 : vector<16x32xf32>
    %cst_144 = arith.constant dense<0.000000e+00> : vector<16xf32>
    %311 = vector.multi_reduction <add>, %310, %cst_144 [1] : vector<16x32xf32> to vector<16xf32>
    %312 = vector.shape_cast %311 : vector<16xf32> to vector<16x1xf32>
    %cst_145 = arith.constant 3.200000e+01 : f32
    %313 = vector.broadcast %cst_145 : f32 to vector<16x1xf32>
    %314 = arith.divf %312, %313 : vector<16x1xf32>
    %315 = vector.broadcast %314 : vector<16x1xf32> to vector<16x32xf32>
    %316 = arith.subf %310, %315 : vector<16x32xf32>
    %317 = arith.mulf %316, %316 : vector<16x32xf32>
    %cst_146 = arith.constant dense<0.000000e+00> : vector<16xf32>
    %318 = vector.multi_reduction <add>, %317, %cst_146 [1] : vector<16x32xf32> to vector<16xf32>
    %319 = vector.shape_cast %318 : vector<16xf32> to vector<16x1xf32>
    %cst_147 = arith.constant 3.200000e+01 : f32
    %320 = vector.broadcast %cst_147 : f32 to vector<16x1xf32>
    %321 = arith.divf %319, %320 : vector<16x1xf32>
    %322 = vector.broadcast %314 : vector<16x1xf32> to vector<16x32xf32>
    %323 = arith.subf %310, %322 : vector<16x32xf32>
    %cst_148 = arith.constant 9.99999974E-6 : f32
    %324 = vector.broadcast %cst_148 : f32 to vector<16x1xf32>
    %325 = arith.addf %321, %324 : vector<16x1xf32>
    %326 = math.rsqrt %325 : vector<16x1xf32>
    %327 = vector.broadcast %326 : vector<16x1xf32> to vector<16x32xf32>
    %328 = arith.mulf %323, %327 : vector<16x32xf32>
    %c1_149 = arith.constant 1 : index
    %c0_150 = arith.constant 0 : index
    %c0_151 = arith.constant 0 : index
    %329 = vector.load %arg13[%c1_149, %c0_150, %c0_151] : memref<2x1x32xf32, #tpu.memory_space<vmem>>, vector<1x1x32xf32>
    %330 = vector.shape_cast %329 : vector<1x1x32xf32> to vector<1x32xf32>
    %331 = vector.broadcast %330 : vector<1x32xf32> to vector<16x32xf32>
    %332 = arith.mulf %328, %331 : vector<16x32xf32>
    %c1_152 = arith.constant 1 : index
    %c0_153 = arith.constant 0 : index
    %c0_154 = arith.constant 0 : index
    %333 = vector.load %arg14[%c1_152, %c0_153, %c0_154] : memref<2x1x32xf32, #tpu.memory_space<vmem>>, vector<1x1x32xf32>
    %334 = vector.shape_cast %333 : vector<1x1x32xf32> to vector<1x32xf32>
    %335 = vector.broadcast %334 : vector<1x32xf32> to vector<16x32xf32>
    %336 = arith.addf %332, %335 : vector<16x32xf32>
    %337 = vector.shape_cast %336 : vector<16x32xf32> to vector<2x8x32xf32>
    %c0_155 = arith.constant 0 : index
    %c0_156 = arith.constant 0 : index
    %c0_157 = arith.constant 0 : index
    %338 = vector.load %arg15[%c0_155, %c0_156, %c0_157] : memref<2x8x32xf32, #tpu.memory_space<vmem>>, vector<2x8x32xf32>
    tpu.vector_store %arg15[%c0_155, %c0_156, %c0_157], %337 {strides = array<i32>} : memref<2x8x32xf32, #tpu.memory_space<vmem>>, vector<2x8x32xf32>,
    return
  }
}

</mosaic_0001>

<bundles_post_ra>
// kernel: tpu_custom_call.1
= control target key start
LH: loop header
LB: loop body
LE: loop exit
PB: predicated region body
PF: predicated region fallthrough
CT: control target
= control target key end

     0   :  { %21 = vsyncpa [#allocation4], 0  ;;  %s6677_s0 = inlined_call_operand.<no memory space> [shape: f32[1], index: 0, kind: input, shape index: {}]   ;;  %s6678_s1 = inlined_call_operand.hbm [shape: f32[2,8,32], index: 1, kind: input, shape index: {}]   ;;  %s6679_s2 = inlined_call_operand.hbm [shape: f32[8,32], index: 2, kind: input, shape index: {}]   ;;  %s6680_s3 = inlined_call_operand.hbm [shape: f32[2,32,96], index: 3, kind: input, shape index: {}]   ;;  %s6681_s4 = inlined_call_operand.vmem [shape: f32[2,1,96], index: 4, kind: input, shape index: {}]   ;;  %s6682_s5 = inlined_call_operand.hbm [shape: f32[2,32,32], index: 5, kind: input, shape index: {}]   ;;  %s6683_s6 = inlined_call_operand.vmem [shape: f32[2,1,32], index: 6, kind: input, shape index: {}]   ;;  %s6684_s7 = inlined_call_operand.vmem [shape: f32[2,1,32], index: 7, kind: input, shape index: {}]   ;;  %s6685_s8 = inlined_call_operand.vmem [shape: f32[2,1,32], index: 8, kind: input, shape index: {}]   ;;  %s6686_s9 = inlined_call_operand.hbm [shape: f32[2,32,2048], index: 9, kind: input, shape index: {}]   ;;  %s6687_s10 = inlined_call_operand.hbm [shape: f32[2,1,2048], index: 10, kind: input, shape index: {}]   ;;  %s6688_s11 = inlined_call_operand.hbm [shape: f32[2,32,2048], index: 11, kind: input, shape index: {}]   ;;  %s6689_s12 = inlined_call_operand.vmem [shape: f32[2,1,32], index: 12, kind: input, shape index: {}]   ;;  %s6690_s13 = inlined_call_operand.vmem [shape: f32[2,1,32], index: 13, kind: input, shape index: {}]   ;;  %s6691_s14 = inlined_call_operand.vmem [shape: f32[2,1,32], index: 14, kind: input, shape index: {}]   ;;  %s6692_s15 = inlined_call_operand.hbm [shape: f32[2,8,32], index: 15, kind: output, shape index: {}]  }
   0x1   :  { %22 = vsyncpa [#allocation7], 0 }
   0x2   :  { %23 = vsyncpa [#allocation10], 0 }
   0x3   :  { %24 = vsyncpa [#allocation13], 0 }
   0x4   :  { %25 = vsyncpa [#allocation5], 0  ;;  %s5992_s18 = smov [#allocation6]  }
   0x5   :  { %s46_s19 = sshll.u32 %s5992_s18, 4  ;;  %s47_s19 = int_to_ptr.vmem [resolvable:$true] %s46_s19 }
   0x6   :  { %s5830_s20 = scalar_lea.vmem %s47_s19, 128  ;;  %p5835_p1 = scmp.lt.s32.totalorder %s47_s19, %s47_s19 }
   0x7   :  { %p5831_p0 = scmp.ne.s32.totalorder %s47_s19, %s5830_s20  ;;  %p5836_p2 = scmp.lt.s32.totalorder %s5830_s20, %s5830_s20 }
   0x9   :  { %p5837_p3 = por %p5836_p2, %p5835_p1 }
   0xb   :  { %p5838_p4 = pnand %p5837_p3, %p5831_p0 }
   0xd   :  { %5841 = shalt.err (!%p5838_p4)
}
   0xe   :  { %49 = dma.hbm_to_vmem [thread:$0]  %s6679_s2, 128, %s47_s19, [#allocation7]  }
   0xf   :  { %s5993_s23 = smov [#allocation9]   ;;  %s5994_s25 = smov [#allocation12]  }
  0x10   :  { %s69_s24 = sshll.u32 %s5993_s23, 4  ;;  %s99_s26 = sshll.u32 %s5994_s25, 4  ;;  %s70_s24 = int_to_ptr.vmem [resolvable:$true] %s69_s24  ;;  %s100_s26 = int_to_ptr.vmem [resolvable:$true] %s99_s26 }
  0x11   :  { %s5850_s27 = scalar_lea.vmem %s70_s24, 1024  ;;  %p5855_p6 = scmp.lt.s32.totalorder %s70_s24, %s70_s24 }
  0x12   :  { %p5851_p5 = scmp.ne.s32.totalorder %s70_s24, %s5850_s27  ;;  %p5856_p7 = scmp.lt.s32.totalorder %s5850_s27, %s5850_s27 }
  0x14   :  { %p5857_p8 = por %p5856_p7, %p5855_p6 }
  0x16   :  { %p5858_p9 = pnand %p5857_p8, %p5851_p5 }
  0x18   :  { %5861 = shalt.err (!%p5858_p9)
}
  0x19   :  { %s5995_s28 = smov 128   ;;  %s5996_s29 = smov 8  }
  0x1a   :  { %75 = dma.hbm_to_vmem [thread:$0]  %s6682_s5, 1024, %s70_s24, [#allocation10], %s5995_s28, %s5995_s28, %s5996_s29  }
  0x1b   :  { %s5870_s2 = scalar_lea.vmem %s100_s26, 512  ;;  %p5875_p11 = scmp.lt.s32.totalorder %s100_s26, %s100_s26 }
  0x1c   :  { %p5871_p10 = scmp.ne.s32.totalorder %s100_s26, %s5870_s2  ;;  %p5876_p12 = scmp.lt.s32.totalorder %s5870_s2, %s5870_s2 }
  0x1e   :  { %p5877_p13 = por %p5876_p12, %p5875_p11 }
  0x20   :  { %p5878_p0 = pnand %p5877_p13, %p5871_p10 }
  0x22   :  { %5881 = shalt.err (!%p5878_p0)
}
  0x23   :  { %s5997_s17 = smov 256   ;;  %s5998_s18 = smov 16  }
  0x24   :  { %105 = dma.hbm_to_vmem [thread:$0]  %s6687_s10, 512, %s100_s26, [#allocation13], %s5997_s17, %s5997_s17, %s5998_s18  }
  0x25   :  { %s5999_s21 = smov [#allocation3]   ;;  %s6000_s23 = smov [#allocation8]  }
  0x26   :  { %s33_s22 = sshll.u32 %s5999_s21, 4  ;;  %s55_s25 = sshll.u32 %s6000_s23, 4  ;;  %s34_s22 = int_to_ptr.vmem [resolvable:$true] %s33_s22  ;;  %s56_s25 = int_to_ptr.vmem [resolvable:$true] %s55_s25 }
  0x27   :  { %s5890_s5 = scalar_lea.vmem %s34_s22, 256  ;;  %p5895_p2 = scmp.lt.s32.totalorder %s34_s22, %s34_s22 }
  0x28   :  { %p5891_p1 = scmp.ne.s32.totalorder %s34_s22, %s5890_s5  ;;  %p5896_p3 = scmp.lt.s32.totalorder %s5890_s5, %s5890_s5 }
  0x2a   :  { %p5897_p4 = por %p5896_p3, %p5895_p2 }
  0x2c   :  { %p5898_p5 = pnand %p5897_p4, %p5891_p1 }
  0x2e   :  { %5901 = shalt.err (!%p5898_p5)
}
  0x2f   :  { %39 = dma.hbm_to_vmem [thread:$0]  %s6678_s1, 256, %s34_s22, [#allocation4], %s5995_s28, %s5995_s28, %s5996_s29  }
  0x30   :  { %s5910_s10 = scalar_lea.vmem %s56_s25, 1024  ;;  %p5915_p7 = scmp.lt.s32.totalorder %s56_s25, %s56_s25 }
  0x31   :  { %p5911_p6 = scmp.ne.s32.totalorder %s56_s25, %s5910_s10  ;;  %p5916_p8 = scmp.lt.s32.totalorder %s5910_s10, %s5910_s10 }
  0x33   :  { %p5917_p9 = por %p5916_p8, %p5915_p7 }
  0x35   :  { %p5918_p10 = pnand %p5917_p9, %p5911_p6 }
  0x37   :  { %5921 = shalt.err (!%p5918_p10)
}
  0x38   :  { %61 = dma.hbm_to_vmem [thread:$0]  %s6680_s3, 1024, %s56_s25, [#allocation7], %s5995_s28, %s5995_s28, %s5996_s29  }
  0x39   :  { %s6001_s16 = smov [#allocation11]  }
  0x3a   :  { %s87_s2 = sshll.u32 %s6001_s16, 4  ;;  %s88_s2 = int_to_ptr.vmem [resolvable:$true] %s87_s2 }
  0x3b   :  { %s5930_s17 = scalar_lea.vmem %s88_s2, 16384  ;;  %p5935_p12 = scmp.lt.s32.totalorder %s88_s2, %s88_s2 }
  0x3c   :  { %p5931_p11 = scmp.ne.s32.totalorder %s88_s2, %s5930_s17  ;;  %p5936_p13 = scmp.lt.s32.totalorder %s5930_s17, %s5930_s17 }
  0x3e   :  { %p5937_p0 = por %p5936_p13, %p5935_p12 }
  0x40   :  { %p5938_p1 = pnand %p5937_p0, %p5931_p11 }
  0x42   :  { %5941 = shalt.err (!%p5938_p1)
}
  0x43   :  { %s6002_s1 = smov 2048   ;;  %s6003_s20 = smov [#allocation14]  }
  0x44   :  { %93 = dma.hbm_to_vmem [thread:$0]  %s6686_s9, 16384, %s88_s2, [#allocation10], %s6002_s1, %s6002_s1, %s5995_s28  }
  0x45   :  { %s111_s21 = sshll.u32 %s6003_s20, 4  ;;  %s112_s21 = int_to_ptr.vmem [resolvable:$true] %s111_s21 }
  0x46   :  { %s5950_s3 = scalar_lea.vmem %s112_s21, 16384  ;;  %p5955_p3 = scmp.lt.s32.totalorder %s112_s21, %s112_s21 }
  0x47   :  { %p5951_p2 = scmp.ne.s32.totalorder %s112_s21, %s5950_s3  ;;  %p5956_p4 = scmp.lt.s32.totalorder %s5950_s3, %s5950_s3 }
  0x49   :  { %p5957_p5 = por %p5956_p4, %p5955_p3 }
  0x4b   :  { %p5958_p6 = pnand %p5957_p5, %p5951_p2 }
  0x4d   :  { %5961 = shalt.err (!%p5958_p6)
}
  0x4e   :  { %117 = dma.hbm_to_vmem [thread:$0]  %s6688_s11, 16384, %s112_s21, [#allocation13], %s6002_s1, %s6002_s1, %s5995_s28  }
  0x4f   :  { %5982 = dma.done.wait [#allocation4], 256  }
  0x50   :  { %5983 = vsyncadd [#allocation4], 4294967040 }
  0x51   :  { %5984 = dma.done.wait [#allocation7], 1152  }
  0x52   :  { %5985 = vsyncadd [#allocation7], 4294966144 }
  0x53   :  { %5986 = dma.done.wait [#allocation10], 17408  }
  0x54   :  { %5987 = vsyncadd [#allocation10], 4294949888 }
  0x55   :  { %5988 = dma.done.wait [#allocation13], 16896  }
  0x56   :  { %5989 = vsyncadd [#allocation13], 4294950400  ;;  %v156_v0 = vld [vmem:[#allocation8 + $0x18] sm:$0xff]  ;;  %v155_v1 = vld [vmem:[#allocation8 + $0x10] sm:$0xff]  ;;  %v149_v2 = vstv %s6677_s0  ;;  %vm164_vm0 = vcmask 261120   ;;  %v6004_v11 = vmov 0.0  }
  0x57   :  { %5596 = vmatprep.subr.mxu0 %v156_v0  ;;  %v154_v3 = vld [vmem:[#allocation8 + $0x8] sm:$0xff]  ;;  %v146_v5 = vld [vmem:[#allocation3 + $0x8] sm:$0xff]  ;;  %v147_v6 = vld [vmem:[#allocation6] sm:$0xff]  ;;  %5607 = vmatprep.subr.mxu1 %v6004_v11  ;;  %vm6005_vm1 = vmmov 0   ;;  %s6006_s5 = smov 96   ;;  %s6007_s24 = smov 112  }
  0x58   :  { %5597 = vmatpush3.msra.mxu0 %v156_v0  ;;  %v145_v4 = vld [vmem:[#allocation3] sm:$0xff]  ;;  %v150_v7 = vmul.f32 %v149_v2, %v147_v6  ;;  %v153_v8 = vld [vmem:[#allocation8] sm:$0xff]  ;;  %5609 = vmatprep.mubr.msk.f32.mxu1 %vm6005_vm1, %v6004_v11  ;;  %s6008_s27 = smov 80   ;;  %vm254_vm2 = vcmask 130048   ;;  %vm330_vm3 = vcmask 64512   ;;  %s6009_s10 = smov 48  }
  0x59   :  { %5598 = vmatprep.subr.mxu0 %v155_v1  ;;  %v5439_v12 = vld [vmem:[%s6681_s4] ss:$0 sm:$0xff]  ;;  %s6010_s26 = smov 64   ;;  %v6183_v47 = vld [vmem:[#allocation9] sm:$0xff]  ;;  %v249_v48 = vld [vmem:[#allocation9 + $0x18] sm:$0xff]  ;;  %s6011_s30 = smov [#allocation15]  }
  0x5a   :  { %5599 = vmatpush3.msra.mxu0 %v155_v1  ;;  %v6127_v9 = vadd.f32 %v150_v7, %v145_v4  ;;  %v6129_v10 = vadd.f32 %v150_v7, %v146_v5  ;;  %v6176_v46 = vld [vmem:[#allocation9 + $0x8] sm:$0xff]  ;;  %v248_v49 = vld [vmem:[#allocation9 + $0x10] sm:$0xff]  ;;  %s5424_s16 = sshll.u32 %s6011_s30, 4  ;;  %s5425_s16 = int_to_ptr.vmem [resolvable:$true] %s5424_s16 }
  0x5b   :  { %5600 = vmatprep.subr.mxu0 %v154_v3  ;;  %v6213_v4 = vld [vmem:[%s6683_s6] ss:$0 sm:$0xff]  ;;  %s5962_s2 = scalar_lea.vmem %s5425_s16, 256  ;;  %p5967_p8 = scmp.lt.s32.totalorder %s5425_s16, %s5425_s16 }
  0x5c   :  { %5601 = vmatpush3.msra.mxu0 %v154_v3  ;;  %5604 = vmatprep.mubr.msk.f32.mxu0 %vm164_vm0, %v6127_v9  ;;  %p5963_p7 = scmp.ne.s32.totalorder %s5425_s16, %s5962_s2  ;;  %p5968_p9 = scmp.lt.s32.totalorder %s5962_s2, %s5962_s2 }
  0x5d   :  { %5602 = vmatprep.subr.mxu0 %v153_v8 }
  0x5e   :  { %5603 = vmatpush3.msra.mxu0 %v153_v8  ;;  %p5969_p10 = por %p5968_p9, %p5967_p8 }
  0x5f   :  { %5605 = vmatmul.mubr.msk.f32.vlgmr.msra.gmra.mxu0 %vm164_vm0, %v6129_v10  ;;  %5617 = vmatprep.subr.mxu0 %v6004_v11 }
  0x60   :  { %5619 = vmatprep.mubr.msk.f32.mxu0 %vm6005_vm1, %v6004_v11  ;;  %p5970_p11 = pnand %p5969_p10, %p5963_p7 }
 0x11f   :  { %v5606_v13 = vpop.f32.mrf.mxu0 }
 0x120   :  { %v6144_v14 = vadd.f32 %v5606_v13, %v5439_v12 }
 0x121   :  { %v237_v15 = vpop.f32.mrf.mxu0 }
 0x122   :  { %v238_v16 = vadd.f32 %v5439_v12, %v237_v15  ;;  %v729_v37 = vmul.f32 0.25, %v6144_v14 }
 0x124   :  { %252 = vrot.lane.b32.xlu0 %v238_v16, %s6006_s5  ;;  %v250_v17 = vmul.f32 0.25, %v238_v16 }
 0x126   :  { %418 = vrot.lane.b32.xlu1 %v250_v17, %s6007_s24 }
 0x128   :  { %420 = vrot.lane.b32.xlu0 %v238_v16, %s6008_s27 }
 0x196   :  { %v253_v18 = vpop.permute.xlu0 %252 }
 0x197   :  { %5608 = vmatpush3.xpose.msk.msra.mxu1 %vm254_vm2, %v253_v18 }
 0x198   :  { %5612 = vmatprep.subr.mxu1 %v6004_v11  ;;  %v419_v20 = vpop.permute.xlu1 %418 }
 0x19a   :  { %v421_v19 = vpop.permute.xlu0 %420  ;;  %5610 = vmatmul.mubr.msk.f32.vlgmr.msra.gmra.mxu1 %vm254_vm2, %v250_v17 }
 0x19b   :  { %5618 = vmatpush3.xpose.msk.msra.mxu0 %vm254_vm2, %v421_v19  ;;  %5614 = vmatprep.mubr.msk.f32.mxu1 %vm6005_vm1, %v6004_v11 }
 0x19c   :  { %5627 = vmatprep.subr.mxu0 %v6004_v11 }
 0x19e   :  { %5620 = vmatmul.mubr.msk.f32.vlgmr.msra.gmra.mxu0 %vm254_vm2, %v419_v20 }
 0x19f   :  { %5631 = vmatprep.mubr.msk.f32.mxu0 %vm6005_vm1, %v6004_v11  ;;  %5628 = vmatpush3.msra.mxu0 %v249_v48 }
 0x1a0   :  { %5629 = vmatprep.subr.mxu0 %v6004_v11 }
 0x1a1   :  { %5630 = vmatpush3.msra.mxu0 %v248_v49 }
 0x1a2   :  { %5641 = vmatprep.subr.mxu0 %v6004_v11 }
 0x25a   :  { %v326_v21 = vpop.f32.mrf.mxu1 }
 0x25b   :  { %v331_v22 = vsel %vm330_vm3, %v326_v21, -inf }
 0x25c   :  { %332 = vmax.xlane.f32.xlu1 %v331_v22  ;;  %v5611_v23 = vpop.f32.mrf.mxu1 }
 0x25e   :  { %v492_v24 = vpop.f32.mrf.mxu0 }
 0x25f   :  { %v496_v25 = vsel %vm330_vm3, %v492_v24, -inf }
 0x260   :  { %497 = vmax.xlane.f32.xlu0 %v496_v25  ;;  %v5621_v26 = vpop.f32.mrf.mxu0 }
 0x2e5   :  { %v333_v27 = vpop.xlane.xlu1 %332 }
 0x2e6   :  { %v334_v28 = vsub.f32 %v326_v21, %v333_v27 }
 0x2e8   :  { %v335_v29 = vmul.f32 1.442695, %v334_v28 }
 0x2e9   :  { %v498_v30 = vpop.xlane.xlu0 %497 }
 0x2ea   :  { %5774 = vpow2.f32 %v335_v29  ;;  %v499_v31 = vsub.f32 %v492_v24, %v498_v30 }
 0x2ec   :  { %v500_v32 = vmul.f32 1.442695, %v499_v31 }
 0x2ee   :  { %5776 = vpow2.f32 %v500_v32 }
 0x2f7   :  { %v5775_v33 = vpop.eup %5774 }
 0x2f8   :  { %v337_v34 = vsel %vm330_vm3, %v5775_v33, 0.0 }
 0x2f9   :  { %338 = vadd.xlane.f32.xlu0 %v337_v34  ;;  %v1311_v34 = vld [vmem:[#allocation11 + $0x188] sm:$0xff] }
 0x2fb   :  { %v5777_v35 = vpop.eup %5776 }
 0x2fc   :  { %v502_v36 = vsel %vm330_vm3, %v5777_v35, 0.0 }
 0x2fd   :  { %503 = vadd.xlane.f32.xlu1 %v502_v36 }
 0x30e   :  { %507 = vrot.lane.b32.xlu1 %v238_v16, %s6009_s10 }
 0x30f   :  { %342 = vrot.lane.b32.xlu0 %v238_v16, %s6010_s26 }
 0x312   :  { %731 = vrot.lane.b32.xlu1 %v6144_v14, %s6006_s5 }
 0x313   :  { %897 = vrot.lane.b32.xlu0 %v6144_v14, %s6008_s27 }
 0x316   :  { %895 = vrot.lane.b32.xlu1 %v729_v37, %s6007_s24 }
 0x382   :  { %v339_v38 = vpop.xlane.xlu0 %338 }
 0x383   :  { %5778 = vrcp.f32 %v339_v38 }
 0x386   :  { %v343_v39 = vpop.permute.xlu0 %342  ;;  %v504_v40 = vpop.xlane.xlu1 %503 }
 0x387   :  { %5780 = vrcp.f32 %v504_v40  ;;  %5613 = vmatpush3.msra.mxu1 %v343_v39  ;;  %v1312_v40 = vld [vmem:[#allocation11 + $0x190] sm:$0xff] }
 0x388   :  { %5622 = vmatprep.subr.mxu1 %v6004_v11 }
 0x38a   :  { %v508_v43 = vpop.permute.xlu1 %507  ;;  %v898_v55 = vpop.permute.xlu0 %897 }
 0x38e   :  { %v732_v53 = vpop.permute.xlu1 %731 }
 0x390   :  { %v5779_v41 = vpop.eup %5778 }
 0x391   :  { %v341_v42 = vmul.f32 %v5779_v41, %v5775_v33  ;;  %v1313_v33 = vld [vmem:[#allocation11 + $0x198] sm:$0xff]  ;;  %v6237_v41 = vld [vmem:[%s6684_s7] ss:$0 sm:$0xff] }
 0x392   :  { %v896_v56 = vpop.permute.xlu1 %895 }
 0x393   :  { %5615 = vmatmul.mubr.msk.f32.vlgmr.msra.gmra.mxu1 %vm330_vm3, %v341_v42 }
 0x394   :  { %v5781_v44 = vpop.eup %5780  ;;  %5623 = vmatpush3.msra.mxu1 %v508_v43  ;;  %5624 = vmatprep.mubr.msk.f32.mxu1 %vm6005_vm1, %v6004_v11  ;;  %v1297_v43 = vld [vmem:[#allocation11 + $0x118] sm:$0xff] }
 0x395   :  { %v506_v45 = vmul.f32 %v5781_v44, %v5777_v35  ;;  %5634 = vmatprep.subr.mxu1 %v6004_v11  ;;  %v1296_v44 = vld [vmem:[#allocation11 + $0x110] sm:$0xff] }
 0x397   :  { %5625 = vmatmul.mubr.msk.f32.vlgmr.msra.gmra.mxu1 %vm330_vm3, %v506_v45 }
 0x398   :  { %5635 = vmatpush3.msra.mxu1 %v6176_v46  ;;  %5638 = vmatprep.mubr.msk.f32.mxu1 %vm6005_vm1, %v6004_v11 }
 0x399   :  { %5636 = vmatprep.subr.mxu1 %v6004_v11 }
 0x39a   :  { %5637 = vmatpush3.msra.mxu1 %v6183_v47 }
 0x39b   :  { %5646 = vmatprep.subr.mxu1 %v6004_v11 }
 0x453   :  { %v414_v50 = vpop.f32.mrf.mxu1 }
 0x454   :  { %5639 = vmatmul.mubr.msk.f32.vlgmr.msra.gmra.mxu1 %vm254_vm2, %v414_v50  ;;  %v6245_v50 = vld [vmem:[%s6685_s8] ss:$0 sm:$0xff] }
 0x455   :  { %v5616_v51 = vpop.f32.mrf.mxu1  ;;  %5648 = vmatprep.mubr.msk.f32.mxu1 %vm6005_vm1, %v6004_v11 }
 0x457   :  { %v579_v52 = vpop.f32.mrf.mxu1 }
 0x458   :  { %5632 = vmatmul.mubr.msk.f32.vlgmr.msra.gmra.mxu0 %vm254_vm2, %v579_v52  ;;  %v1295_v52 = vld [vmem:[#allocation11 + $0x108] sm:$0xff] }
 0x459   :  { %5642 = vmatpush3.xpose.msk.msra.mxu0 %vm254_vm2, %v732_v53  ;;  %v5626_v54 = vpop.f32.mrf.mxu1  ;;  %5643 = vmatprep.mubr.msk.f32.mxu0 %vm6005_vm1, %v6004_v11  ;;  %v1265_v53 = vld [vmem:[#allocation11 + $0x18] sm:$0xff] }
 0x45a   :  { %5651 = vmatprep.subr.mxu0 %v6004_v11  ;;  %v1294_v54 = vld [vmem:[#allocation11 + $0x100] sm:$0xff] }
 0x45c   :  { %5644 = vmatmul.mubr.msk.f32.vlgmr.msra.gmra.mxu0 %vm254_vm2, %v729_v37 }
 0x45d   :  { %5652 = vmatpush3.xpose.msk.msra.mxu0 %vm254_vm2, %v898_v55  ;;  %5653 = vmatprep.mubr.msk.f32.mxu0 %vm6005_vm1, %v6004_v11  ;;  %v1264_v55 = vld [vmem:[#allocation11 + $0x10] sm:$0xff] }
 0x45e   :  { %5661 = vmatprep.subr.mxu0 %v6004_v11 }
 0x460   :  { %5654 = vmatmul.mubr.msk.f32.vlgmr.msra.gmra.mxu0 %vm254_vm2, %v896_v56 }
 0x461   :  { %5662 = vmatpush3.msra.mxu0 %v249_v48  ;;  %5665 = vmatprep.mubr.msk.f32.mxu0 %vm6005_vm1, %v6004_v11  ;;  %v1310_v48 = vld [vmem:[#allocation11 + $0x180] sm:$0xff] }
 0x462   :  { %5663 = vmatprep.subr.mxu0 %v6004_v11 }
 0x463   :  { %5664 = vmatpush3.msra.mxu0 %v248_v49  ;;  %v1280_v49 = vld [vmem:[#allocation11 + $0x90] sm:$0xff] }
 0x464   :  { %1440 = vmatprep.subr.mxu0 %v1311_v34 }
 0x514   :  { %v725_v57 = vpop.f32.mrf.mxu1 }
 0x516   :  { %v5640_v58 = vpop.f32.mrf.mxu1 }
 0x518   :  { %v652_v59 = vpop.f32.mrf.mxu0 }
 0x519   :  { %v726_v3 = vadd.f32 %v725_v57, %v652_v59  ;;  %v1279_v57 = vld [vmem:[#allocation11 + $0x88] sm:$0xff]  ;;  %v1278_v59 = vld [vmem:[#allocation11 + $0x80] sm:$0xff] }
 0x51a   :  { %v5633_v60 = vpop.f32.mrf.mxu0 }
 0x51b   :  { %v1213_v5 = vadd.f32 %v6213_v4, %v726_v3  ;;  %v1263_v60 = vld [vmem:[#allocation11 + $0x8] sm:$0xff] }
 0x51c   :  { %v804_v61 = vpop.f32.mrf.mxu0 }
 0x51d   :  { %v808_v62 = vsel %vm330_vm3, %v804_v61, -inf  ;;  %v1215_v6 = vadd.f32 %v1213_v5, %v6127_v9 }
 0x51e   :  { %809 = vmax.xlane.f32.xlu0 %v808_v62  ;;  %v5645_v63 = vpop.f32.mrf.mxu0 }
 0x51f   :  { %v1217_v7 = vsel %vm164_vm0, %v1215_v6, 0.0 }
 0x520   :  { %v969_v0 = vpop.f32.mrf.mxu0 }
 0x521   :  { %v973_v1 = vsel %vm330_vm3, %v969_v0, -inf }
 0x522   :  { %974 = vmax.xlane.f32.xlu1 %v973_v1  ;;  %v5655_v2 = vpop.f32.mrf.mxu0 }
 0x533   :  { %819 = vrot.lane.b32.xlu1 %v6144_v14, %s6010_s26 }
 0x557   :  { %1218 = vadd.xlane.f32.xlu1 %v1217_v7 }
 0x5a7   :  { %v810_v8 = vpop.xlane.xlu0 %809 }
 0x5a8   :  { %v811_v12 = vsub.f32 %v804_v61, %v810_v8  ;;  %v1262_v61 = vld [vmem:[#allocation11] sm:$0xff] }
 0x5aa   :  { %v812_v13 = vmul.f32 1.442695, %v811_v12 }
 0x5ab   :  { %v975_v15 = vpop.xlane.xlu1 %974 }
 0x5ac   :  { %5782 = vpow2.f32 %v812_v13  ;;  %v976_v16 = vsub.f32 %v969_v0, %v975_v15 }
 0x5ae   :  { %v977_v17 = vmul.f32 1.442695, %v976_v16  ;;  %v1315_v16 = vld [vmem:[#allocation11 + $0x1a8] sm:$0xff] }
 0x5af   :  { %v820_v18 = vpop.permute.xlu1 %819 }
 0x5b0   :  { %5784 = vpow2.f32 %v977_v17  ;;  %5647 = vmatpush3.msra.mxu1 %v820_v18  ;;  %v1317_v17 = vld [vmem:[#allocation11 + $0x1b8] sm:$0xff]  ;;  %v1314_v18 = vld [vmem:[#allocation11 + $0x1a0] sm:$0xff] }
 0x5b1   :  { %5656 = vmatprep.subr.mxu1 %v6004_v11 }
 0x5b9   :  { %v5783_v19 = vpop.eup %5782 }
 0x5ba   :  { %v814_v20 = vsel %vm330_vm3, %v5783_v19, 0.0 }
 0x5bb   :  { %815 = vadd.xlane.f32.xlu0 %v814_v20  ;;  %v1298_v20 = vld [vmem:[#allocation11 + $0x120] sm:$0xff] }
 0x5bd   :  { %v5785_v9 = vpop.eup %5784 }
 0x5be   :  { %v979_v21 = vsel %vm330_vm3, %v5785_v9, 0.0 }
 0x5bf   :  { %980 = vadd.xlane.f32.xlu0 %v979_v21  ;;  %v1283_v21 = vld [vmem:[#allocation11 + $0xa8] sm:$0xff] }
 0x5d5   :  { %984 = vrot.lane.b32.xlu0 %v6144_v14, %s6009_s10 }
 0x5e0   :  { %v1219_v22 = vpop.xlane.xlu1 %1218 }
 0x5e1   :  { %v1224_v23 = vmul.f32 0.03125, %v1219_v22  ;;  %v1285_v22 = vld [vmem:[#allocation11 + $0xb8] sm:$0xff] }
 0x5e3   :  { %v1226_v24 = vsub.f32 %v1215_v6, %v1224_v23  ;;  %v1282_v23 = vld [vmem:[#allocation11 + $0xa0] sm:$0xff] }
 0x5e5   :  { %v1228_v25 = vmul.f32 %v1226_v24, %v1226_v24 }
 0x5e7   :  { %v1230_v26 = vsel %vm164_vm0, %v1228_v25, 0.0  ;;  %v1267_v25 = vld [vmem:[#allocation11 + $0x28] sm:$0xff] }
 0x5e8   :  { %1231 = vadd.xlane.f32.xlu1 %v1230_v26  ;;  %v1269_v26 = vld [vmem:[#allocation11 + $0x38] sm:$0xff] }
 0x644   :  { %v816_v27 = vpop.xlane.xlu0 %815 }
 0x645   :  { %5786 = vrcp.f32 %v816_v27  ;;  %v1266_v27 = vld [vmem:[#allocation11 + $0x20] sm:$0xff] }
 0x648   :  { %v981_v28 = vpop.xlane.xlu0 %980 }
 0x649   :  { %5788 = vrcp.f32 %v981_v28  ;;  %v1268_v28 = vld [vmem:[#allocation11 + $0x30] sm:$0xff] }
 0x64c   :  { %v985_v31 = vpop.permute.xlu0 %984 }
 0x652   :  { %v5787_v29 = vpop.eup %5786 }
 0x653   :  { %v818_v30 = vmul.f32 %v5787_v29, %v5783_v19  ;;  %v1316_v19 = vld [vmem:[#allocation11 + $0x1b0] sm:$0xff]  ;;  %v1319_v29 = vld [vmem:[#allocation11 + $0x1c8] sm:$0xff] }
 0x655   :  { %5649 = vmatmul.mubr.msk.f32.vlgmr.msra.gmra.mxu1 %vm330_vm3, %v818_v30  ;;  %v1321_v30 = vld [vmem:[#allocation11 + $0x1d8] sm:$0xff] }
 0x656   :  { %v5789_v32 = vpop.eup %5788  ;;  %5657 = vmatpush3.msra.mxu1 %v985_v31  ;;  %5658 = vmatprep.mubr.msk.f32.mxu1 %vm6005_vm1, %v6004_v11 }
 0x657   :  { %v983_v14 = vmul.f32 %v5789_v32, %v5785_v9  ;;  %5668 = vmatprep.subr.mxu1 %v6004_v11  ;;  %v1300_v9 = vld [vmem:[#allocation11 + $0x130] sm:$0xff] }
 0x659   :  { %5659 = vmatmul.mubr.msk.f32.vlgmr.msra.gmra.mxu1 %vm330_vm3, %v983_v14 }
 0x65a   :  { %5669 = vmatpush3.msra.mxu1 %v6176_v46  ;;  %5672 = vmatprep.mubr.msk.f32.mxu1 %vm6005_vm1, %v6004_v11  ;;  %v1281_v46 = vld [vmem:[#allocation11 + $0x98] sm:$0xff] }
 0x65b   :  { %5670 = vmatprep.subr.mxu1 %v6004_v11 }
 0x65c   :  { %5671 = vmatpush3.msra.mxu1 %v6183_v47 }
 0x65d   :  { %1517 = vmatprep.subr.mxu1 %v1313_v33 }
 0x671   :  { %v1232_v35 = vpop.xlane.xlu1 %1231 }
 0x672   :  { %v1236_v36 = vmul.f32 0.03125, %v1232_v35 }
 0x674   :  { %v1238_v37 = vadd.f32 1e-05, %v1236_v36 }
 0x676   :  { %5790 = vrsqrt.f32 %v1238_v37  ;;  %v1318_v37 = vld [vmem:[#allocation11 + $0x1c0] sm:$0xff] }
 0x683   :  { %v5791_v38 = vpop.eup %5790 }
 0x684   :  { %v1242_v39 = vmul.f32 %v5791_v38, %v1226_v24  ;;  %v1284_v24 = vld [vmem:[#allocation11 + $0xb0] sm:$0xff] }
 0x685   :  { %v1320_v38 = vld [vmem:[#allocation11 + $0x1d0] sm:$0xff] }
 0x686   :  { %v1251_v47 = vmul.f32 %v6237_v41, %v1242_v39  ;;  %v1303_v39 = vld [vmem:[#allocation11 + $0x148] sm:$0xff] }
 0x688   :  { %v6249_v58 = vadd.f32 %v6245_v50, %v1251_v47  ;;  %v1271_v47 = vld [vmem:[#allocation11 + $0x48] sm:$0xff] }
 0x715   :  { %v891_v42 = vpop.f32.mrf.mxu1 }
 0x716   :  { %5673 = vmatmul.mubr.msk.f32.vlgmr.msra.gmra.mxu1 %vm254_vm2, %v891_v42  ;;  %v1304_v42 = vld [vmem:[#allocation11 + $0x150] sm:$0xff] }
 0x717   :  { %1518 = vmatpush1.msra.mxu1 %v1312_v40  ;;  %v5650_v45 = vpop.f32.mrf.mxu1  ;;  %1557 = vmatprep.mubr.f32.mxu1 %v6004_v11  ;;  %v1305_v40 = vld [vmem:[#allocation11 + $0x158] sm:$0xff] }
 0x718   :  { %1519 = vmatprep.subr.mxu1 %v1297_v43  ;;  %v1287_v43 = vld [vmem:[#allocation11 + $0xc8] sm:$0xff]  ;;  %v1286_v45 = vld [vmem:[#allocation11 + $0xc0] sm:$0xff] }
 0x719   :  { %1520 = vmatpush1.msra.mxu1 %v1296_v44  ;;  %v1056_v51 = vpop.f32.mrf.mxu1  ;;  %v1289_v44 = vld [vmem:[#allocation11 + $0xd8] sm:$0xff] }
 0x71a   :  { %1521 = vmatprep.subr.mxu1 %v1281_v46  ;;  %5666 = vmatmul.mubr.msk.f32.vlgmr.msra.gmra.mxu0 %vm254_vm2, %v1056_v51  ;;  %v1288_v46 = vld [vmem:[#allocation11 + $0xd0] sm:$0xff]  ;;  %v1323_v51 = vld [vmem:[#allocation11 + $0x1e8] sm:$0xff] }
 0x71b   :  { %1441 = vmatpush1.msra.mxu0 %v1310_v48  ;;  %1522 = vmatpush1.msra.mxu1 %v1280_v49  ;;  %v5660_v56 = vpop.f32.mrf.mxu1  ;;  %v1273_v48 = vld [vmem:[#allocation11 + $0x58] sm:$0xff]  ;;  %v1270_v49 = vld [vmem:[#allocation11 + $0x40] sm:$0xff] }
 0x71c   :  { %1442 = vmatprep.subr.mxu0 %v1295_v52  ;;  %1523 = vmatprep.subr.mxu1 %v1265_v53  ;;  %v1325_v52 = vld [vmem:[#allocation11 + $0x1f8] sm:$0xff]  ;;  %v1330_v53 = vlaneseq  ;;  %v1307_v56 = vld [vmem:[#allocation11 + $0x168] sm:$0xff] }
 0x71d   :  { %1443 = vmatpush1.msra.mxu0 %v1294_v54  ;;  %1524 = vmatpush1.msra.mxu1 %v1264_v55  ;;  %v1322_v54 = vld [vmem:[#allocation11 + $0x1e0] sm:$0xff]  ;;  %v1324_v55 = vld [vmem:[#allocation11 + $0x1f0] sm:$0xff] }
 0x71e   :  { %1444 = vmatprep.subr.mxu0 %v1279_v57  ;;  %5463 = vmatmul.mubr.msk.f32.vlgmr.msra.gmra.mxu1 %vm164_vm0, %v6249_v58  ;;  %v1309_v57 = vld [vmem:[#allocation11 + $0x178] sm:$0xff] }
 0x71f   :  { %1445 = vmatpush1.msra.mxu0 %v1278_v59  ;;  %1480 = vmatprep.mubr.f32.mxu0 %v6004_v11  ;;  %v1306_v59 = vld [vmem:[#allocation11 + $0x160] sm:$0xff] }
 0x720   :  { %1446 = vmatprep.subr.mxu0 %v1263_v60  ;;  %1563 = vmatprep.mubr.f32.mxu1 %v6004_v11  ;;  %v1308_v60 = vld [vmem:[#allocation11 + $0x170] sm:$0xff] }
 0x721   :  { %1447 = vmatpush1.msra.mxu0 %v1262_v61  ;;  %1671 = vmatprep.subr.mxu1 %v1317_v17  ;;  %v6288_v61 = vshrl.u32 %v1330_v53, 7  ;;  %v2085_v53 = vld [vmem:[#allocation14 + $0xa8] sm:$0xff] }
 0x722   :  { %5461 = vmatmul.mubr.msk.f32.vlgmr.msra.gmra.mxu0 %vm164_vm0, %v6249_v58  ;;  %1594 = vmatprep.subr.mxu0 %v1315_v16 }
 0x723   :  { %1486 = vmatprep.mubr.f32.mxu0 %v6004_v11  ;;  %1595 = vmatpush1.msra.mxu0 %v1314_v18  ;;  %v2113_v18 = vld [vmem:[#allocation14 + $0x188] sm:$0xff] }
 0x724   :  { %1672 = vmatpush1.msra.mxu1 %v1316_v19  ;;  %v2115_v19 = vld [vmem:[#allocation14 + $0x198] sm:$0xff] }
 0x7d6   :  { %v1202_v62 = vpop.f32.mrf.mxu1 }
 0x7d8   :  { %v5674_v63 = vpop.f32.mrf.mxu1 }
 0x7d9   :  { %v1293_v63 = vld [vmem:[#allocation11 + $0xf8] sm:$0xff] }
 0x7da   :  { %v1129_v0 = vpop.f32.mrf.mxu0 }
 0x7db   :  { %v1203_v1 = vadd.f32 %v1202_v62, %v1129_v0  ;;  %v1291_v62 = vld [vmem:[#allocation11 + $0xe8] sm:$0xff]  ;;  %v6291_v0 = vsub.s32 3, %v6288_v61 }
 0x7dc   :  { %v5667_v2 = vpop.f32.mrf.mxu0 }
 0x7dd   :  { %v1214_v3 = vadd.f32 %v6213_v4, %v1203_v1  ;;  %v1299_v4 = vld [vmem:[#allocation11 + $0x128] sm:$0xff]  ;;  %v6294_v1 = vsub.s32 1, %v6288_v61  ;;  %v1290_v2 = vld [vmem:[#allocation11 + $0xe0] sm:$0xff] }
 0x7de   :  { %1596 = vmatprep.subr.mxu0 %v1299_v4 }
 0x7df   :  { %v1216_v5 = vadd.f32 %v1214_v3, %v6129_v10  ;;  %v1301_v10 = vld [vmem:[#allocation11 + $0x138] sm:$0xff]  ;;  %1597 = vmatpush1.msra.mxu0 %v1298_v20  ;;  %v1292_v3 = vld [vmem:[#allocation11 + $0xf0] sm:$0xff]  ;;  %v2112_v20 = vld [vmem:[#allocation14 + $0x180] sm:$0xff] }
 0x7e0   :  { %1673 = vmatprep.subr.mxu1 %v1301_v10  ;;  %1598 = vmatprep.subr.mxu0 %v1283_v21 }
 0x7e1   :  { %v1220_v6 = vsel %vm164_vm0, %v1216_v5, 0.0  ;;  %1674 = vmatpush1.msra.mxu1 %v1300_v9  ;;  %1599 = vmatpush1.msra.mxu0 %v1282_v23  ;;  %v2114_v9 = vld [vmem:[#allocation14 + $0x190] sm:$0xff]  ;;  %v2097_v23 = vld [vmem:[#allocation14 + $0x108] sm:$0xff] }
 0x7e2   :  { %1221 = vadd.xlane.f32.xlu0 %v1220_v6  ;;  %1675 = vmatprep.subr.mxu1 %v1285_v22  ;;  %v6300_v6 = vpop.f32.mrf.mxu0 }
 0x7e3   :  { %1676 = vmatpush1.msra.mxu1 %v1284_v24  ;;  %1600 = vmatprep.subr.mxu0 %v1267_v25  ;;  %v2099_v24 = vld [vmem:[#allocation14 + $0x118] sm:$0xff]  ;;  %v6325_v25 = vsub.s32 2, %v6288_v61 }
 0x7e4   :  { %1677 = vmatprep.subr.mxu1 %v1269_v26  ;;  %1601 = vmatpush1.msra.mxu0 %v1266_v27  ;;  %v1484_v10 = vpop.f32.mrf.mxu0  ;;  %v6328_v26 = vsub.s32 0, %v6288_v61  ;;  %v2096_v27 = vld [vmem:[#allocation14 + $0x100] sm:$0xff] }
 0x7e5   :  { %1678 = vmatpush1.msra.mxu1 %v1268_v28  ;;  %1748 = vmatprep.subr.mxu0 %v1319_v29  ;;  %v2098_v28 = vld [vmem:[#allocation14 + $0x110] sm:$0xff] }
 0x7e6   :  { %1825 = vmatprep.subr.mxu1 %v1321_v30 }
 0x86b   :  { %v1222_v7 = vpop.xlane.xlu0 %1221 }
 0x86c   :  { %v1225_v8 = vmul.f32 0.03125, %v1222_v7  ;;  %v1275_v7 = vld [vmem:[#allocation11 + $0x68] sm:$0xff] }
 0x86e   :  { %v1227_v12 = vsub.f32 %v1216_v5, %v1225_v8  ;;  %v6298_v5 = vpop.f32.mrf.mxu1  ;;  %v1277_v8 = vld [vmem:[#allocation11 + $0x78] sm:$0xff] }
 0x870   :  { %v1229_v13 = vmul.f32 %v1227_v12, %v1227_v12  ;;  %v1561_v4 = vpop.f32.mrf.mxu1 }
 0x872   :  { %v1233_v15 = vsel %vm164_vm0, %v1229_v13, 0.0  ;;  %v1276_v13 = vld [vmem:[#allocation11 + $0x70] sm:$0xff] }
 0x873   :  { %1234 = vadd.xlane.f32.xlu0 %v1233_v15  ;;  %v6306_v15 = vld [vmem:[#allocation12] sm:$0xff] }
 0x874   :  { %v6310_v16 = vrot.slane %v6306_v15, %v6291_v0  ;;  %v6314_v17 = vrot.slane %v6306_v15, %v6294_v1 }
 0x876   :  { %v1562_v21 = vadd.f32 %v1561_v4, %v6310_v16  ;;  %v1485_v22 = vadd.f32 %v1484_v10, %v6314_v17 }
 0x878   :  { %v2035_v29 = vmax.f32 %v1562_v21, 0.0  ;;  %v2033_v30 = vmax.f32 %v1485_v22, 0.0 }
 0x8fc   :  { %v1235_v31 = vpop.xlane.xlu0 %1234 }
 0x8fd   :  { %v1237_v32 = vmul.f32 0.03125, %v1235_v31  ;;  %v2081_v31 = vld [vmem:[#allocation14 + $0x88] sm:$0xff] }
 0x8ff   :  { %v1239_v14 = vadd.f32 1e-05, %v1237_v32  ;;  %v2083_v32 = vld [vmem:[#allocation14 + $0x98] sm:$0xff] }
 0x901   :  { %5792 = vrsqrt.f32 %v1239_v14  ;;  %v6338_v14 = vrot.slane %v6306_v15, %v6325_v25 }
 0x90e   :  { %v5793_v33 = vpop.eup %5792 }
 0x90f   :  { %v1243_v34 = vmul.f32 %v5793_v33, %v1227_v12  ;;  %v1274_v12 = vld [vmem:[#allocation11 + $0x60] sm:$0xff]  ;;  %v6342_v33 = vrot.slane %v6306_v15, %v6328_v26 }
 0x911   :  { %v1252_v35 = vmul.f32 %v6237_v41, %v1243_v34  ;;  %v1302_v41 = vld [vmem:[#allocation11 + $0x140] sm:$0xff] }
 0x912   :  { %v2080_v34 = vld [vmem:[#allocation14 + $0x80] sm:$0xff] }
 0x913   :  { %v6264_v36 = vadd.f32 %v6245_v50, %v1252_v35  ;;  %v1272_v50 = vld [vmem:[#allocation11 + $0x50] sm:$0xff] }
 0x914   :  { %v2082_v35 = vld [vmem:[#allocation14 + $0x90] sm:$0xff] }
 0x915   :  { %5462 = vmatmul.mubr.msk.f32.gmra.mxu0 %vm164_vm0, %v6264_v36  ;;  %5464 = vmatmul.mubr.msk.f32.gmra.mxu1 %vm164_vm0, %v6264_v36 }
 0x916   :  { %1634 = vmatprep.mubr.f32.mxu0 %v6004_v11  ;;  %1711 = vmatprep.mubr.f32.mxu1 %v6004_v11 }
 0x919   :  { %5465 = vmatmul.mubr.msk.f32.vlgmr.msra.gmra.mxu0 %vm164_vm0, %v6249_v58  ;;  %5467 = vmatmul.mubr.msk.f32.vlgmr.msra.gmra.mxu1 %vm164_vm0, %v6249_v58 }
 0x91a   :  { %1749 = vmatpush1.msra.mxu0 %v1318_v37  ;;  %1826 = vmatpush1.msra.mxu1 %v1320_v38  ;;  %v2065_v37 = vld [vmem:[#allocation14 + $0x8] sm:$0xff]  ;;  %v2067_v38 = vld [vmem:[#allocation14 + $0x18] sm:$0xff] }
 0x91b   :  { %1750 = vmatprep.subr.mxu0 %v1303_v39  ;;  %1827 = vmatprep.subr.mxu1 %v1305_v40  ;;  %v1560_v39 = vadd.f32 %v6298_v5, %v6338_v14  ;;  %v1483_v40 = vadd.f32 %v6300_v6, %v6342_v33  ;;  %v6352_v5 = vsub.s32 6, %v6288_v61  ;;  %v6355_v6 = vsub.s32 5, %v6288_v61 }
 0x91c   :  { %1751 = vmatpush1.msra.mxu0 %v1302_v41  ;;  %1828 = vmatpush1.msra.mxu1 %v1304_v42  ;;  %v2064_v41 = vld [vmem:[#allocation14] sm:$0xff]  ;;  %v2066_v42 = vld [vmem:[#allocation14 + $0x10] sm:$0xff] }
 0x91d   :  { %1640 = vmatprep.mubr.f32.mxu0 %v6004_v11  ;;  %1717 = vmatprep.mubr.f32.mxu1 %v6004_v11 }
 0x91e   :  { %1752 = vmatprep.subr.mxu0 %v1287_v43  ;;  %1829 = vmatprep.subr.mxu1 %v1289_v44  ;;  %v2117_v43 = vld [vmem:[#allocation14 + $0x1a8] sm:$0xff]  ;;  %v2119_v44 = vld [vmem:[#allocation14 + $0x1b8] sm:$0xff] }
 0x91f   :  { %5466 = vmatmul.mubr.msk.f32.gmra.mxu0 %vm164_vm0, %v6264_v36  ;;  %5468 = vmatmul.mubr.msk.f32.gmra.mxu1 %vm164_vm0, %v6264_v36 }
 0x920   :  { %1753 = vmatpush1.msra.mxu0 %v1286_v45  ;;  %1830 = vmatpush1.msra.mxu1 %v1288_v46  ;;  %v2034_v45 = vmax.f32 %v1560_v39, 0.0  ;;  %v2032_v46 = vmax.f32 %v1483_v40, 0.0  ;;  %v2120_v40 = vld [vmem:[#allocation14 + $0x1c0] sm:$0xff] }
 0x921   :  { %1754 = vmatprep.subr.mxu0 %v1271_v47  ;;  %1831 = vmatprep.subr.mxu1 %v1273_v48  ;;  %v2116_v47 = vld [vmem:[#allocation14 + $0x1a0] sm:$0xff]  ;;  %v2118_v48 = vld [vmem:[#allocation14 + $0x1b0] sm:$0xff] }
 0x922   :  { %1755 = vmatpush1.msra.mxu0 %v1270_v49  ;;  %1832 = vmatpush1.msra.mxu1 %v1272_v50  ;;  %v2101_v49 = vld [vmem:[#allocation14 + $0x128] sm:$0xff]  ;;  %v2103_v50 = vld [vmem:[#allocation14 + $0x138] sm:$0xff] }
 0x923   :  { %1788 = vmatprep.mubr.f32.mxu0 %v6004_v11  ;;  %1865 = vmatprep.mubr.f32.mxu1 %v6004_v11 }
 0x924   :  { %1902 = vmatprep.subr.mxu0 %v1323_v51  ;;  %1979 = vmatprep.subr.mxu1 %v1325_v52  ;;  %v2100_v51 = vld [vmem:[#allocation14 + $0x120] sm:$0xff]  ;;  %v2102_v52 = vld [vmem:[#allocation14 + $0x130] sm:$0xff] }
 0x925   :  { %5469 = vmatmul.mubr.msk.f32.vlgmr.msra.gmra.mxu0 %vm164_vm0, %v6249_v58  ;;  %5471 = vmatmul.mubr.msk.f32.vlgmr.msra.gmra.mxu1 %vm164_vm0, %v6249_v58 }
 0x926   :  { %1903 = vmatpush1.msra.mxu0 %v1322_v54  ;;  %1980 = vmatpush1.msra.mxu1 %v1324_v55  ;;  %v2087_v54 = vld [vmem:[#allocation14 + $0xb8] sm:$0xff]  ;;  %v2084_v55 = vld [vmem:[#allocation14 + $0xa0] sm:$0xff] }
 0x927   :  { %1904 = vmatprep.subr.mxu0 %v1307_v56  ;;  %1981 = vmatprep.subr.mxu1 %v1309_v57  ;;  %v2086_v56 = vld [vmem:[#allocation14 + $0xb0] sm:$0xff]  ;;  %v2069_v57 = vld [vmem:[#allocation14 + $0x28] sm:$0xff] }
 0x928   :  { %1905 = vmatpush1.msra.mxu0 %v1306_v59  ;;  %1982 = vmatpush1.msra.mxu1 %v1308_v60  ;;  %v2071_v59 = vld [vmem:[#allocation14 + $0x38] sm:$0xff]  ;;  %v2068_v60 = vld [vmem:[#allocation14 + $0x20] sm:$0xff] }
 0x929   :  { %1794 = vmatprep.mubr.f32.mxu0 %v6004_v11  ;;  %1871 = vmatprep.mubr.f32.mxu1 %v6004_v11 }
 0x92a   :  { %1906 = vmatprep.subr.mxu0 %v1291_v62  ;;  %1983 = vmatprep.subr.mxu1 %v1293_v63  ;;  %v2070_v62 = vld [vmem:[#allocation14 + $0x30] sm:$0xff]  ;;  %v2121_v63 = vld [vmem:[#allocation14 + $0x1c8] sm:$0xff] }
 0x92b   :  { %5470 = vmatmul.mubr.msk.f32.gmra.mxu0 %vm164_vm0, %v6264_v36  ;;  %5472 = vmatmul.mubr.msk.f32.gmra.mxu1 %vm164_vm0, %v6264_v36 }
 0x92c   :  { %1907 = vmatpush1.msra.mxu0 %v1290_v2  ;;  %1984 = vmatpush1.msra.mxu1 %v1292_v3  ;;  %v2123_v2 = vld [vmem:[#allocation14 + $0x1d8] sm:$0xff]  ;;  %v6349_v3 = vsub.s32 4, %v6288_v61 }
 0x92d   :  { %1908 = vmatprep.subr.mxu0 %v1275_v7  ;;  %1985 = vmatprep.subr.mxu1 %v1277_v8  ;;  %v6358_v7 = vsub.s32 7, %v6288_v61  ;;  %v1353_v61 = vrot.slane %v6306_v15, %v6355_v6 }
 0x92e   :  { %1909 = vmatpush1.msra.mxu0 %v1274_v12  ;;  %1986 = vmatpush1.msra.mxu1 %v1276_v13  ;;  %v1349_v10 = vrot.slane %v6306_v15, %v6349_v3 }
 0x92f   :  { %1942 = vmatprep.mubr.f32.mxu0 %v6004_v11  ;;  %2019 = vmatprep.mubr.f32.mxu1 %v6004_v11  ;;  %v1361_v22 = vrot.slane %v6306_v15, %v6358_v7 }
 0x930   :  { %2159 = vmatprep.subr.mxu0 %v2113_v18  ;;  %2234 = vmatprep.subr.mxu1 %v2115_v19 }
 0x931   :  { %5473 = vmatmul.mubr.msk.f32.vlgmr.msra.gmra.mxu0 %vm164_vm0, %v6249_v58  ;;  %5475 = vmatmul.mubr.msk.f32.vlgmr.msra.gmra.mxu1 %vm164_vm0, %v6249_v58 }
 0x932   :  { %2160 = vmatpush1.xpose.msra.mxu0 %v2112_v20  ;;  %2235 = vmatpush1.xpose.msra.mxu1 %v2114_v9  ;;  %v1357_v20 = vrot.slane %v6306_v15, %v6352_v5 }
 0x933   :  { %1948 = vmatprep.mubr.f32.mxu0 %v6004_v11  ;;  %2025 = vmatprep.mubr.f32.mxu1 %v6004_v11 }
 0x934   :  { %2161 = vmatprep.subr.mxu0 %v2097_v23  ;;  %2236 = vmatprep.subr.mxu1 %v2099_v24 }
 0x935   :  { %5474 = vmatmul.mubr.msk.f32.gmra.mxu0 %vm164_vm0, %v6264_v36  ;;  %5476 = vmatmul.mubr.msk.f32.gmra.mxu1 %vm164_vm0, %v6264_v36 }
 0x936   :  { %2162 = vmatpush1.xpose.msra.mxu0 %v2096_v27  ;;  %2237 = vmatpush1.xpose.msra.mxu1 %v2098_v28 }
 0x937   :  { %2199 = vmatprep.mubr.f32.mxu0 %v2033_v30  ;;  %2274 = vmatprep.mubr.f32.mxu1 %v2035_v29 }
 0x938   :  { %2163 = vmatprep.subr.mxu0 %v2081_v31  ;;  %2238 = vmatprep.subr.mxu1 %v2083_v32 }
 0x93a   :  { %2164 = vmatpush1.xpose.msra.mxu0 %v2080_v34  ;;  %2239 = vmatpush1.xpose.msra.mxu1 %v2082_v35 }
 0x93b   :  { %2165 = vmatprep.subr.mxu0 %v2065_v37  ;;  %2240 = vmatprep.subr.mxu1 %v2067_v38 }
 0x93e   :  { %2166 = vmatpush1.xpose.msra.mxu0 %v2064_v41  ;;  %2241 = vmatpush1.xpose.msra.mxu1 %v2066_v42  ;;  %v2122_v41 = vld [vmem:[#allocation14 + $0x1d0] sm:$0xff]  ;;  %v2105_v42 = vld [vmem:[#allocation14 + $0x148] sm:$0xff] }
 0x93f   :  { %2309 = vmatprep.subr.mxu0 %v2117_v43  ;;  %2384 = vmatprep.subr.mxu1 %v2119_v44  ;;  %v2107_v43 = vld [vmem:[#allocation14 + $0x158] sm:$0xff] }
 0x941   :  { %2200 = vmatmul.mubr.f32.vlgmr.msra.gmra.mxu0 %v2032_v46  ;;  %2275 = vmatmul.mubr.f32.vlgmr.msra.gmra.mxu1 %v2034_v45 }
 0x942   :  { %2310 = vmatpush1.xpose.msra.mxu0 %v2116_v47  ;;  %2385 = vmatpush1.xpose.msra.mxu1 %v2118_v48 }
 0x943   :  { %2311 = vmatprep.subr.mxu0 %v2101_v49  ;;  %2386 = vmatprep.subr.mxu1 %v2103_v50  ;;  %v6372_v50 = vld [vmem:[#allocation12 + $0x8] sm:$0xff] }
 0x946   :  { %2312 = vmatpush1.xpose.msra.mxu0 %v2100_v51  ;;  %2387 = vmatpush1.xpose.msra.mxu1 %v2102_v52 }
 0x947   :  { %2313 = vmatprep.subr.mxu0 %v2085_v53  ;;  %2388 = vmatprep.subr.mxu1 %v2087_v54  ;;  %v1369_v53 = vrot.slane %v6372_v50, %v6294_v1  ;;  %v1377_v54 = vrot.slane %v6372_v50, %v6291_v0 }
 0x94a   :  { %2314 = vmatpush1.xpose.msra.mxu0 %v2084_v55  ;;  %2389 = vmatpush1.xpose.msra.mxu1 %v2086_v56 }
 0x94b   :  { %2315 = vmatprep.subr.mxu0 %v2069_v57  ;;  %2390 = vmatprep.subr.mxu1 %v2071_v59 }
 0x94e   :  { %2316 = vmatpush1.xpose.msra.mxu0 %v2068_v60  ;;  %2391 = vmatpush1.xpose.msra.mxu1 %v2070_v62  ;;  %v2104_v60 = vld [vmem:[#allocation14 + $0x140] sm:$0xff]  ;;  %v2106_v62 = vld [vmem:[#allocation14 + $0x150] sm:$0xff] }
 0x94f   :  { %2459 = vmatprep.subr.mxu0 %v2121_v63  ;;  %2534 = vmatprep.subr.mxu1 %v2123_v2  ;;  %v2089_v63 = vld [vmem:[#allocation14 + $0xc8] sm:$0xff]  ;;  %v2091_v2 = vld [vmem:[#allocation14 + $0xd8] sm:$0xff] }
 0x9d5   :  { %v1488_v8 = vpop.f32.mrf.mxu0  ;;  %v1565_v12 = vpop.f32.mrf.mxu1 }
 0x9d6   :  { %v1489_v13 = vadd.f32 %v1488_v8, %v6342_v33  ;;  %v1566_v18 = vadd.f32 %v1565_v12, %v6338_v14 }
 0x9d7   :  { %v1490_v19 = vpop.f32.mrf.mxu0  ;;  %v1567_v4 = vpop.f32.mrf.mxu1 }
 0x9d8   :  { %v1491_v9 = vadd.f32 %v1490_v19, %v6314_v17  ;;  %v1568_v21 = vadd.f32 %v1567_v4, %v6310_v16  ;;  %v2048_v29 = vmax.f32 %v1489_v13, 0.0  ;;  %v2050_v30 = vmax.f32 %v1566_v18, 0.0 }
 0x9d9   :  { %v1636_v23 = vpop.f32.mrf.mxu0  ;;  %v1713_v24 = vpop.f32.mrf.mxu1  ;;  %v1365_v19 = vrot.slane %v6372_v50, %v6328_v26  ;;  %v1373_v4 = vrot.slane %v6372_v50, %v6325_v25 }
 0x9da   :  { %v2049_v27 = vmax.f32 %v1491_v9, 0.0  ;;  %v2051_v28 = vmax.f32 %v1568_v21, 0.0  ;;  %v1637_v31 = vadd.f32 %v1636_v23, %v1349_v10  ;;  %v1714_v32 = vadd.f32 %v1713_v24, %v1357_v20  ;;  %v2088_v9 = vld [vmem:[#allocation14 + $0xc0] sm:$0xff]  ;;  %v2090_v21 = vld [vmem:[#allocation14 + $0xd0] sm:$0xff]  ;;  %v2073_v23 = vld [vmem:[#allocation14 + $0x48] sm:$0xff] }
 0x9db   :  { %v1638_v14 = vpop.f32.mrf.mxu0  ;;  %v1715_v33 = vpop.f32.mrf.mxu1  ;;  %v2075_v24 = vld [vmem:[#allocation14 + $0x58] sm:$0xff] }
 0x9dc   :  { %v1639_v34 = vadd.f32 %v1638_v14, %v1353_v61  ;;  %v1716_v17 = vadd.f32 %v1715_v33, %v1361_v22  ;;  %2204 = vmatprep.mubr.f32.mxu0 %v2049_v27  ;;  %2279 = vmatprep.mubr.f32.mxu1 %v2051_v28  ;;  %v2036_v37 = vmax.f32 %v1637_v31, 0.0  ;;  %v2038_v15 = vmax.f32 %v1714_v32, 0.0  ;;  %v2072_v31 = vld [vmem:[#allocation14 + $0x40] sm:$0xff]  ;;  %v2074_v32 = vld [vmem:[#allocation14 + $0x50] sm:$0xff] }
 0x9dd   :  { %2205 = vmatmul.mubr.f32.gmra.mxu0 %v2048_v29  ;;  %2280 = vmatmul.mubr.f32.gmra.mxu1 %v2050_v30 }
 0x9de   :  { %v2037_v16 = vmax.f32 %v1639_v34, 0.0  ;;  %v2039_v35 = vmax.f32 %v1716_v17, 0.0  ;;  %v2125_v34 = vld [vmem:[#allocation14 + $0x1e8] sm:$0xff]  ;;  %v2127_v17 = vld [vmem:[#allocation14 + $0x1f8] sm:$0xff] }
 0x9df   :  { %v1642_v38 = vpop.f32.mrf.mxu0  ;;  %v1719_v39 = vpop.f32.mrf.mxu1 }
 0x9e0   :  { %2349 = vmatprep.mubr.f32.mxu0 %v2037_v16  ;;  %2424 = vmatprep.mubr.f32.mxu1 %v2039_v35  ;;  %v1643_v44 = vadd.f32 %v1642_v38, %v1349_v10  ;;  %v1720_v45 = vadd.f32 %v1719_v39, %v1357_v20  ;;  %v6384_v16 = vrot.slane %v6372_v50, %v6355_v6 }
 0x9e1   :  { %v1644_v46 = vpop.f32.mrf.mxu0  ;;  %v1721_v47 = vpop.f32.mrf.mxu1  ;;  %2350 = vmatmul.mubr.f32.vlgmr.msra.gmra.mxu0 %v2036_v37  ;;  %2425 = vmatmul.mubr.f32.vlgmr.msra.gmra.mxu1 %v2038_v15  ;;  %v6388_v35 = vrot.slane %v6372_v50, %v6358_v7 }
 0x9e2   :  { %v1645_v48 = vadd.f32 %v1644_v46, %v1353_v61  ;;  %v1722_v49 = vadd.f32 %v1721_v47, %v1361_v22  ;;  %2460 = vmatpush1.xpose.msra.mxu0 %v2120_v40  ;;  %2535 = vmatpush1.xpose.msra.mxu1 %v2122_v41  ;;  %v2052_v55 = vmax.f32 %v1643_v44, 0.0  ;;  %v2054_v56 = vmax.f32 %v1720_v45, 0.0  ;;  %v2124_v46 = vld [vmem:[#allocation14 + $0x1e0] sm:$0xff]  ;;  %v2126_v47 = vld [vmem:[#allocation14 + $0x1f0] sm:$0xff] }
 0x9e3   :  { %2461 = vmatprep.subr.mxu0 %v2105_v42  ;;  %2536 = vmatprep.subr.mxu1 %v2107_v43 }
 0x9e4   :  { %v2053_v51 = vmax.f32 %v1645_v48, 0.0  ;;  %v2055_v52 = vmax.f32 %v1722_v49, 0.0 }
 0x9e5   :  { %v1790_v57 = vpop.f32.mrf.mxu0  ;;  %v1867_v59 = vpop.f32.mrf.mxu1 }
 0x9e6   :  { %2354 = vmatprep.mubr.f32.mxu0 %v2053_v51  ;;  %2429 = vmatprep.mubr.f32.mxu1 %v2055_v52  ;;  %v1791_v29 = vadd.f32 %v1790_v57, %v1365_v19  ;;  %v1868_v30 = vadd.f32 %v1867_v59, %v1373_v4  ;;  %v2109_v51 = vld [vmem:[#allocation14 + $0x168] sm:$0xff]  ;;  %v2111_v52 = vld [vmem:[#allocation14 + $0x178] sm:$0xff]  ;;  %v2108_v57 = vld [vmem:[#allocation14 + $0x160] sm:$0xff] }
 0x9e7   :  { %v1792_v8 = vpop.f32.mrf.mxu0  ;;  %v1869_v12 = vpop.f32.mrf.mxu1  ;;  %2355 = vmatmul.mubr.f32.gmra.mxu0 %v2052_v55  ;;  %2430 = vmatmul.mubr.f32.gmra.mxu1 %v2054_v56  ;;  %v2110_v59 = vld [vmem:[#allocation14 + $0x170] sm:$0xff] }
 0x9e8   :  { %v1793_v13 = vadd.f32 %v1792_v8, %v1369_v53  ;;  %v1870_v18 = vadd.f32 %v1869_v12, %v1377_v54  ;;  %2462 = vmatpush1.xpose.msra.mxu0 %v2104_v60  ;;  %2537 = vmatpush1.xpose.msra.mxu1 %v2106_v62  ;;  %v2040_v38 = vmax.f32 %v1791_v29, 0.0  ;;  %v2042_v39 = vmax.f32 %v1868_v30, 0.0  ;;  %v2093_v60 = vld [vmem:[#allocation14 + $0xe8] sm:$0xff]  ;;  %v2095_v62 = vld [vmem:[#allocation14 + $0xf8] sm:$0xff] }
 0x9e9   :  { %2463 = vmatprep.subr.mxu0 %v2089_v63  ;;  %2538 = vmatprep.subr.mxu1 %v2091_v2  ;;  %v1381_v8 = vrot.slane %v6372_v50, %v6349_v3  ;;  %v1389_v12 = vrot.slane %v6372_v50, %v6352_v5  ;;  %v2078_v50 = vld [vmem:[#allocation14 + $0x70] sm:$0xff] }
 0x9ea   :  { %v2041_v10 = vmax.f32 %v1793_v13, 0.0  ;;  %v2043_v20 = vmax.f32 %v1870_v18, 0.0  ;;  %v2092_v13 = vld [vmem:[#allocation14 + $0xe0] sm:$0xff]  ;;  %v2094_v18 = vld [vmem:[#allocation14 + $0xf0] sm:$0xff] }
 0x9eb   :  { %v1796_v61 = vpop.f32.mrf.mxu0  ;;  %v1873_v22 = vpop.f32.mrf.mxu1 }
 0x9ec   :  { %2499 = vmatprep.mubr.f32.mxu0 %v2041_v10  ;;  %2574 = vmatprep.mubr.f32.mxu1 %v2043_v20  ;;  %v1797_v40 = vadd.f32 %v1796_v61, %v1365_v19  ;;  %v1874_v41 = vadd.f32 %v1873_v22, %v1373_v4  ;;  %v2077_v19 = vld [vmem:[#allocation14 + $0x68] sm:$0xff]  ;;  %v2079_v4 = vld [vmem:[#allocation14 + $0x78] sm:$0xff]  ;;  %v2076_v22 = vld [vmem:[#allocation14 + $0x60] sm:$0xff] }
 0x9ed   :  { %v1798_v27 = vpop.f32.mrf.mxu0  ;;  %v1875_v28 = vpop.f32.mrf.mxu1  ;;  %2464 = vmatpush1.xpose.msra.mxu0 %v2088_v9  ;;  %2539 = vmatpush1.xpose.msra.mxu1 %v2090_v21  ;;  %v5477_v61 = vld [vmem:[%s6689_s12] ss:$0 sm:$0xff] }
 0x9ee   :  { %2465 = vmatprep.subr.mxu0 %v2073_v23  ;;  %2540 = vmatprep.subr.mxu1 %v2075_v24  ;;  %v1799_v14 = vadd.f32 %v1798_v27, %v1369_v53  ;;  %v1876_v33 = vadd.f32 %v1875_v28, %v1377_v54  ;;  %v2056_v53 = vmax.f32 %v1797_v40, 0.0  ;;  %v2058_v54 = vmax.f32 %v1874_v41, 0.0 }
 0x9f0   :  { %v2057_v42 = vmax.f32 %v1799_v14, 0.0  ;;  %v2059_v43 = vmax.f32 %v1876_v33, 0.0 }
 0x9f1   :  { %v1944_v37 = vpop.f32.mrf.mxu0  ;;  %v2021_v15 = vpop.f32.mrf.mxu1  ;;  %2466 = vmatpush1.xpose.msra.mxu0 %v2072_v31  ;;  %2541 = vmatpush1.xpose.msra.mxu1 %v2074_v32 }
 0x9f2   :  { %2609 = vmatprep.subr.mxu0 %v2125_v34  ;;  %2684 = vmatprep.subr.mxu1 %v2127_v17  ;;  %v1945_v9 = vadd.f32 %v1944_v37, %v1381_v8  ;;  %v2022_v21 = vadd.f32 %v2021_v15, %v1389_v12 }
 0x9f3   :  { %v1946_v44 = vpop.f32.mrf.mxu0  ;;  %v2023_v45 = vpop.f32.mrf.mxu1 }
 0x9f4   :  { %v1947_v48 = vadd.f32 %v1946_v44, %v6384_v16  ;;  %v2024_v49 = vadd.f32 %v2023_v45, %v6388_v35  ;;  %2500 = vmatmul.mubr.f32.vlgmr.msra.gmra.mxu0 %v2040_v38  ;;  %2575 = vmatmul.mubr.f32.vlgmr.msra.gmra.mxu1 %v2042_v39  ;;  %v2044_v30 = vmax.f32 %v1945_v9, 0.0  ;;  %v2046_v31 = vmax.f32 %v2022_v21, 0.0 }
 0x9f5   :  { %2504 = vmatprep.mubr.f32.mxu0 %v2057_v42  ;;  %2579 = vmatprep.mubr.f32.mxu1 %v2059_v43  ;;  %v1950_v63 = vpop.f32.mrf.mxu0  ;;  %v2027_v2 = vpop.f32.mrf.mxu1 }
 0x9f6   :  { %2610 = vmatpush1.xpose.msra.mxu0 %v2124_v46  ;;  %2685 = vmatpush1.xpose.msra.mxu1 %v2126_v47  ;;  %v2045_v55 = vmax.f32 %v1947_v48, 0.0  ;;  %v2047_v56 = vmax.f32 %v2024_v49, 0.0  ;;  %v1951_v32 = vadd.f32 %v1950_v63, %v1381_v8  ;;  %v2028_v14 = vadd.f32 %v2027_v2, %v1389_v12 }
 0x9f7   :  { %2611 = vmatprep.subr.mxu0 %v2109_v51  ;;  %2686 = vmatprep.subr.mxu1 %v2111_v52  ;;  %v1952_v10 = vpop.f32.mrf.mxu0  ;;  %v2029_v20 = vpop.f32.mrf.mxu1 }
 0x9f8   :  { %2505 = vmatmul.mubr.f32.gmra.mxu0 %v2056_v53  ;;  %2580 = vmatmul.mubr.f32.gmra.mxu1 %v2058_v54  ;;  %v1953_v23 = vadd.f32 %v1952_v10, %v6384_v16  ;;  %v2030_v24 = vadd.f32 %v2029_v20, %v6388_v35  ;;  %v2060_v16 = vmax.f32 %v1951_v32, 0.0  ;;  %v2062_v35 = vmax.f32 %v2028_v14, 0.0 }
 0x9f9   :  { %2649 = vmatprep.mubr.f32.mxu0 %v2045_v55  ;;  %2724 = vmatprep.mubr.f32.mxu1 %v2047_v56 }
 0x9fa   :  { %2612 = vmatpush1.xpose.msra.mxu0 %v2108_v57  ;;  %2687 = vmatpush1.xpose.msra.mxu1 %v2110_v59  ;;  %v2061_v17 = vmax.f32 %v1953_v23, 0.0  ;;  %v2063_v37 = vmax.f32 %v2030_v24, 0.0 }
 0x9fb   :  { %2613 = vmatprep.subr.mxu0 %v2093_v60  ;;  %2688 = vmatprep.subr.mxu1 %v2095_v62 }
 0x9fe   :  { %2614 = vmatpush1.xpose.msra.mxu0 %v2092_v13  ;;  %2689 = vmatpush1.xpose.msra.mxu1 %v2094_v18 }
 0x9ff   :  { %2615 = vmatprep.subr.mxu0 %v2077_v19  ;;  %2690 = vmatprep.subr.mxu1 %v2079_v4 }
 0xa01   :  { %v2201_v27 = vpop.f32.mrf.mxu0  ;;  %v2276_v28 = vpop.f32.mrf.mxu1 }
 0xa02   :  { %v2202_v29 = vadd.f32 %v5477_v61, %v2201_v27  ;;  %2616 = vmatpush1.xpose.msra.mxu0 %v2076_v22  ;;  %2691 = vmatpush1.xpose.msra.mxu1 %v2078_v50 }
 0xa03   :  { %v2203_v33 = vpop.f32.mrf.mxu0  ;;  %v2278_v34 = vpop.f32.mrf.mxu1  ;;  %5686 = vmatprep.subr.mxu1 %v6004_v11 }
 0xa04   :  { %v2277_v15 = vadd.f32 %v2276_v28, %v2202_v29 }
 0xa05   :  { %2650 = vmatmul.mubr.f32.vlgmr.msra.gmra.mxu0 %v2044_v30  ;;  %2725 = vmatmul.mubr.f32.vlgmr.msra.gmra.mxu1 %v2046_v31 }
 0xa06   :  { %2654 = vmatprep.mubr.f32.mxu0 %v2061_v17  ;;  %2729 = vmatprep.mubr.f32.mxu1 %v2063_v37 }
 0xa09   :  { %2655 = vmatmul.mubr.f32.gmra.mxu0 %v2060_v16  ;;  %2730 = vmatmul.mubr.f32.gmra.mxu1 %v2062_v35 }
 0xa0a   :  { %5688 = vmatprep.mubr.msk.f32.mxu1 %vm6005_vm1, %v6004_v11 }
 0xa9d   :  { %v2206_v38 = vpop.f32.mrf.mxu0  ;;  %v2281_v39 = vpop.f32.mrf.mxu1 }
 0xa9e   :  { %v2207_v55 = vadd.f32 %v5477_v61, %v2206_v38 }
 0xa9f   :  { %v2208_v40 = vpop.f32.mrf.mxu0  ;;  %v2283_v41 = vpop.f32.mrf.mxu1 }
 0xaa0   :  { %v2282_v63 = vadd.f32 %v2281_v39, %v2207_v55  ;;  %v2785_v40 = vld [vmem:[#allocation8 + $0x38] sm:$0xff]  ;;  %v2784_v41 = vld [vmem:[#allocation8 + $0x30] sm:$0xff] }
 0xaa1   :  { %v2351_v42 = vpop.f32.mrf.mxu0  ;;  %v2426_v43 = vpop.f32.mrf.mxu1  ;;  %5675 = vmatprep.subr.mxu0 %v2785_v40 }
 0xaa2   :  { %v2352_v59 = vadd.f32 %v2351_v42, %v2277_v15  ;;  %5676 = vmatpush3.msra.mxu0 %v2785_v40  ;;  %v2782_v42 = vld [vmem:[#allocation8 + $0x20] sm:$0xff] }
 0xaa3   :  { %v2353_v44 = vpop.f32.mrf.mxu0  ;;  %v2428_v45 = vpop.f32.mrf.mxu1  ;;  %5677 = vmatprep.subr.mxu0 %v2784_v41  ;;  %v6469_v40 = vld [vmem:[#allocation9 + $0x20] sm:$0xff] }
 0xaa4   :  { %v2427_v2 = vadd.f32 %v2426_v43, %v2352_v59  ;;  %5678 = vmatpush3.msra.mxu0 %v2784_v41  ;;  %v2879_v41 = vld [vmem:[#allocation9 + $0x38] sm:$0xff] }
 0xaa7   :  { %v2356_v46 = vpop.f32.mrf.mxu0  ;;  %v2431_v47 = vpop.f32.mrf.mxu1 }
 0xaa8   :  { %v2357_v8 = vadd.f32 %v2356_v46, %v2282_v63 }
 0xaa9   :  { %v2358_v48 = vpop.f32.mrf.mxu0  ;;  %v2433_v49 = vpop.f32.mrf.mxu1 }
 0xaaa   :  { %v2432_v13 = vadd.f32 %v2431_v47, %v2357_v8 }
 0xab4   :  { %v2501_v51 = vpop.f32.mrf.mxu0  ;;  %v2576_v52 = vpop.f32.mrf.mxu1 }
 0xab5   :  { %v2502_v12 = vadd.f32 %v2501_v51, %v2427_v2  ;;  %v5478_v51 = vld [vmem:[%s6690_s13] ss:$0 sm:$0xff] }
 0xab6   :  { %v2503_v53 = vpop.f32.mrf.mxu0  ;;  %v2578_v54 = vpop.f32.mrf.mxu1 }
 0xab7   :  { %v2577_v18 = vadd.f32 %v2576_v52, %v2502_v12  ;;  %v5479_v53 = vld [vmem:[%s6691_s14] ss:$0 sm:$0xff] }
 0xab8   :  { %v2506_v56 = vpop.f32.mrf.mxu0  ;;  %v2581_v57 = vpop.f32.mrf.mxu1 }
 0xab9   :  { %v2507_v19 = vadd.f32 %v2506_v56, %v2432_v13 }
 0xaba   :  { %v2508_v60 = vpop.f32.mrf.mxu0  ;;  %v2583_v62 = vpop.f32.mrf.mxu1 }
 0xabb   :  { %v2582_v22 = vadd.f32 %v2581_v57, %v2507_v19  ;;  %v5481_v62 = vld [vmem:[%s6681_s4 + $0x1] ss:$0 sm:$0xff] }
 0xac5   :  { %v2651_v4 = vpop.f32.mrf.mxu0  ;;  %v2726_v10 = vpop.f32.mrf.mxu1 }
 0xac6   :  { %v2652_v20 = vadd.f32 %v2651_v4, %v2577_v18 }
 0xac7   :  { %v2653_v9 = vpop.f32.mrf.mxu0  ;;  %v2728_v21 = vpop.f32.mrf.mxu1 }
 0xac8   :  { %v2727_v50 = vadd.f32 %v2726_v10, %v2652_v20 }
 0xac9   :  { %v2656_v61 = vpop.f32.mrf.mxu0  ;;  %v2731_v23 = vpop.f32.mrf.mxu1 }
 0xaca   :  { %v2657_v24 = vadd.f32 %v2656_v61, %v2582_v22  ;;  %v2735_v27 = vadd.f32 %v2727_v50, %v6249_v58 }
 0xacb   :  { %v2658_v28 = vpop.f32.mrf.mxu0  ;;  %v2733_v29 = vpop.f32.mrf.mxu1 }
 0xacc   :  { %v2732_v30 = vadd.f32 %v2731_v23, %v2657_v24  ;;  %v2737_v31 = vsel %vm164_vm0, %v2735_v27, 0.0 }
 0xacd   :  { %2738 = vadd.xlane.f32.xlu1 %v2737_v31 }
 0xace   :  { %v2736_v32 = vadd.f32 %v2732_v30, %v6264_v36  ;;  %v2783_v36 = vld [vmem:[#allocation8 + $0x28] sm:$0xff] }
 0xacf   :  { %5679 = vmatprep.subr.mxu0 %v2783_v36 }
 0xad0   :  { %v2740_v14 = vsel %vm164_vm0, %v2736_v32, 0.0  ;;  %5680 = vmatpush3.msra.mxu0 %v2783_v36  ;;  %v2878_v36 = vld [vmem:[#allocation9 + $0x30] sm:$0xff] }
 0xad1   :  { %2741 = vadd.xlane.f32.xlu0 %v2740_v14  ;;  %5681 = vmatprep.subr.mxu0 %v2782_v42 }
 0xad2   :  { %5682 = vmatpush3.msra.mxu0 %v2782_v42 }
 0xad3   :  { %5691 = vmatprep.subr.mxu0 %v6004_v11 }
 0xb56   :  { %v2739_v33 = vpop.xlane.xlu1 %2738 }
 0xb57   :  { %v2743_v34 = vmul.f32 0.03125, %v2739_v33 }
 0xb59   :  { %v2745_v17 = vsub.f32 %v2735_v27, %v2743_v34 }
 0xb5a   :  { %v2742_v37 = vpop.xlane.xlu0 %2741 }
 0xb5b   :  { %v2744_v15 = vmul.f32 0.03125, %v2742_v37  ;;  %v2747_v16 = vmul.f32 %v2745_v17, %v2745_v17 }
 0xb5d   :  { %v2746_v35 = vsub.f32 %v2736_v32, %v2744_v15  ;;  %v2749_v58 = vsel %vm164_vm0, %v2747_v16, 0.0 }
 0xb5e   :  { %2750 = vadd.xlane.f32.xlu1 %v2749_v58 }
 0xb5f   :  { %v2748_v38 = vmul.f32 %v2746_v35, %v2746_v35 }
 0xb61   :  { %v2752_v39 = vsel %vm164_vm0, %v2748_v38, 0.0 }
 0xb62   :  { %2753 = vadd.xlane.f32.xlu0 %v2752_v39  ;;  %v6462_v39 = vld [vmem:[#allocation9 + $0x28] sm:$0xff] }
 0xbe7   :  { %v2751_v43 = vpop.xlane.xlu1 %2750 }
 0xbe8   :  { %v2755_v44 = vmul.f32 0.03125, %v2751_v43 }
 0xbea   :  { %v2757_v45 = vadd.f32 1e-05, %v2755_v44 }
 0xbeb   :  { %v2754_v46 = vpop.xlane.xlu0 %2753 }
 0xbec   :  { %5794 = vrsqrt.f32 %v2757_v45  ;;  %v2756_v47 = vmul.f32 0.03125, %v2754_v46 }
 0xbee   :  { %v2758_v48 = vadd.f32 1e-05, %v2756_v47 }
 0xbf0   :  { %5796 = vrsqrt.f32 %v2758_v48 }
 0xbf9   :  { %v5795_v49 = vpop.eup %5794 }
 0xbfa   :  { %v2761_v52 = vmul.f32 %v5795_v49, %v2745_v17 }
 0xbfc   :  { %v2770_v54 = vmul.f32 %v5478_v51, %v2761_v52 }
 0xbfd   :  { %v5797_v55 = vpop.eup %5796 }
 0xbfe   :  { %v2762_v56 = vmul.f32 %v5797_v55, %v2746_v35  ;;  %v6417_v57 = vadd.f32 %v5479_v53, %v2770_v54 }
 0xc00   :  { %v2771_v59 = vmul.f32 %v5478_v51, %v2762_v56  ;;  %5683 = vmatprep.mubr.msk.f32.mxu0 %vm164_vm0, %v6417_v57 }
 0xc02   :  { %v6421_v60 = vadd.f32 %v5479_v53, %v2771_v59 }
 0xc04   :  { %5684 = vmatmul.mubr.msk.f32.vlgmr.msra.gmra.mxu0 %vm164_vm0, %v6421_v60 }
 0xc05   :  { %5693 = vmatprep.mubr.msk.f32.mxu0 %vm6005_vm1, %v6004_v11 }
 0xcc4   :  { %v5685_v63 = vpop.f32.mrf.mxu0 }
 0xcc5   :  { %v6430_v2 = vadd.f32 %v5685_v63, %v5481_v62 }
 0xcc6   :  { %v2866_v8 = vpop.f32.mrf.mxu0 }
 0xcc7   :  { %v2867_v12 = vadd.f32 %v5481_v62, %v2866_v8  ;;  %v3357_v33 = vmul.f32 0.25, %v6430_v2 }
 0xcc9   :  { %3048 = vrot.lane.b32.xlu0 %v2867_v12, %s6008_s27  ;;  %2882 = vrot.lane.b32.xlu1 %v2867_v12, %s6006_s5  ;;  %v2880_v13 = vmul.f32 0.25, %v2867_v12 }
 0xccd   :  { %3046 = vrot.lane.b32.xlu1 %v2880_v13, %s6007_s24 }
 0xd3b   :  { %v2883_v18 = vpop.permute.xlu1 %2882  ;;  %v3049_v19 = vpop.permute.xlu0 %3048 }
 0xd3c   :  { %5687 = vmatpush3.xpose.msk.msra.mxu1 %vm254_vm2, %v2883_v18 }
 0xd3d   :  { %5696 = vmatprep.subr.mxu1 %v6004_v11 }
 0xd3f   :  { %5689 = vmatmul.mubr.msk.f32.vlgmr.msra.gmra.mxu1 %vm254_vm2, %v2880_v13  ;;  %v3047_v4 = vpop.permute.xlu1 %3046 }
 0xd40   :  { %5697 = vmatpush3.xpose.msk.msra.mxu1 %vm254_vm2, %v3049_v19  ;;  %5698 = vmatprep.mubr.msk.f32.mxu1 %vm6005_vm1, %v6004_v11 }
 0xd41   :  { %5706 = vmatprep.subr.mxu1 %v6004_v11 }
 0xd43   :  { %5699 = vmatmul.mubr.msk.f32.vlgmr.msra.gmra.mxu1 %vm254_vm2, %v3047_v4 }
 0xd44   :  { %5710 = vmatprep.mubr.msk.f32.mxu1 %vm6005_vm1, %v6004_v11  ;;  %5707 = vmatpush3.msra.mxu1 %v2879_v41 }
 0xd45   :  { %5708 = vmatprep.subr.mxu1 %v6004_v11 }
 0xd46   :  { %5709 = vmatpush3.msra.mxu1 %v2878_v36 }
 0xd47   :  { %5720 = vmatprep.subr.mxu1 %v6004_v11 }
 0xdff   :  { %v2955_v10 = vpop.f32.mrf.mxu1 }
 0xe00   :  { %v2959_v20 = vsel %vm330_vm3, %v2955_v10, -inf }
 0xe01   :  { %2960 = vmax.xlane.f32.xlu1 %v2959_v20  ;;  %v5690_v9 = vpop.f32.mrf.mxu1 }
 0xe03   :  { %v3120_v21 = vpop.f32.mrf.mxu1 }
 0xe04   :  { %v3124_v22 = vsel %vm330_vm3, %v3120_v21, -inf }
 0xe05   :  { %3125 = vmax.xlane.f32.xlu0 %v3124_v22  ;;  %v5700_v50 = vpop.f32.mrf.mxu1 }
 0xe8a   :  { %v2961_v61 = vpop.xlane.xlu1 %2960 }
 0xe8b   :  { %v2962_v23 = vsub.f32 %v2955_v10, %v2961_v61 }
 0xe8d   :  { %v2963_v24 = vmul.f32 1.442695, %v2962_v23 }
 0xe8e   :  { %v3126_v27 = vpop.xlane.xlu0 %3125 }
 0xe8f   :  { %5798 = vpow2.f32 %v2963_v24  ;;  %v3127_v28 = vsub.f32 %v3120_v21, %v3126_v27 }
 0xe91   :  { %v3128_v29 = vmul.f32 1.442695, %v3127_v28 }
 0xe93   :  { %5800 = vpow2.f32 %v3128_v29 }
 0xe9c   :  { %v5799_v30 = vpop.eup %5798 }
 0xe9d   :  { %v2965_v31 = vsel %vm330_vm3, %v5799_v30, 0.0 }
 0xe9e   :  { %2966 = vadd.xlane.f32.xlu0 %v2965_v31 }
 0xea0   :  { %v5801_v32 = vpop.eup %5800 }
 0xea1   :  { %v3130_v14 = vsel %vm330_vm3, %v5801_v32, 0.0 }
 0xea2   :  { %3131 = vadd.xlane.f32.xlu1 %v3130_v14 }
 0xeb3   :  { %3135 = vrot.lane.b32.xlu1 %v2867_v12, %s6009_s10 }
 0xeb4   :  { %2970 = vrot.lane.b32.xlu0 %v2867_v12, %s6010_s26  ;;  %v6499_v12 = vld [vmem:[%s6683_s6 + $0x1] ss:$0 sm:$0xff] }
 0xeb7   :  { %3359 = vrot.lane.b32.xlu1 %v6430_v2, %s6006_s5 }
 0xeb8   :  { %3525 = vrot.lane.b32.xlu0 %v6430_v2, %s6008_s27 }
 0xebb   :  { %3523 = vrot.lane.b32.xlu1 %v3357_v33, %s6007_s24 }
 0xf27   :  { %v2967_v34 = vpop.xlane.xlu0 %2966 }
 0xf28   :  { %5802 = vrcp.f32 %v2967_v34 }
 0xf2b   :  { %v3132_v17 = vpop.xlane.xlu1 %3131  ;;  %v2971_v37 = vpop.permute.xlu0 %2970 }
 0xf2c   :  { %5804 = vrcp.f32 %v3132_v17  ;;  %5692 = vmatpush3.msra.mxu0 %v2971_v37 }
 0xf2d   :  { %5701 = vmatprep.subr.mxu0 %v6004_v11 }
 0xf2f   :  { %v3136_v35 = vpop.permute.xlu1 %3135  ;;  %v3526_v47 = vpop.permute.xlu0 %3525 }
 0xf33   :  { %v3360_v45 = vpop.permute.xlu1 %3359 }
 0xf35   :  { %v5803_v15 = vpop.eup %5802 }
 0xf36   :  { %v2969_v16 = vmul.f32 %v5803_v15, %v5799_v30  ;;  %v3944_v15 = vld [vmem:[#allocation11 + $0x398] sm:$0xff] }
 0xf37   :  { %v3524_v48 = vpop.permute.xlu1 %3523 }
 0xf38   :  { %5694 = vmatmul.mubr.msk.f32.vlgmr.msra.gmra.mxu0 %vm330_vm3, %v2969_v16  ;;  %v3942_v16 = vld [vmem:[#allocation11 + $0x388] sm:$0xff] }
 0xf39   :  { %v5805_v58 = vpop.eup %5804  ;;  %5702 = vmatpush3.msra.mxu0 %v3136_v35  ;;  %5703 = vmatprep.mubr.msk.f32.mxu0 %vm6005_vm1, %v6004_v11 }
 0xf3a   :  { %v3134_v38 = vmul.f32 %v5805_v58, %v5801_v32  ;;  %5713 = vmatprep.subr.mxu0 %v6004_v11 }
 0xf3c   :  { %5704 = vmatmul.mubr.msk.f32.vlgmr.msra.gmra.mxu0 %vm330_vm3, %v3134_v38 }
 0xf3d   :  { %5714 = vmatpush3.msra.mxu0 %v6462_v39  ;;  %5717 = vmatprep.mubr.msk.f32.mxu0 %vm6005_vm1, %v6004_v11 }
 0xf3e   :  { %5715 = vmatprep.subr.mxu0 %v6004_v11 }
 0xf3f   :  { %5716 = vmatpush3.msra.mxu0 %v6469_v40 }
 0xf40   :  { %5725 = vmatprep.subr.mxu0 %v6004_v11 }
 0xff8   :  { %v3042_v42 = vpop.f32.mrf.mxu0 }
 0xff9   :  { %5718 = vmatmul.mubr.msk.f32.vlgmr.msra.gmra.mxu0 %vm254_vm2, %v3042_v42  ;;  %v3943_v42 = vld [vmem:[#allocation11 + $0x390] sm:$0xff] }
 0xffa   :  { %v5695_v43 = vpop.f32.mrf.mxu0  ;;  %5727 = vmatprep.mubr.msk.f32.mxu0 %vm6005_vm1, %v6004_v11 }
 0xffc   :  { %v3207_v44 = vpop.f32.mrf.mxu0 }
 0xffd   :  { %5711 = vmatmul.mubr.msk.f32.vlgmr.msra.gmra.mxu1 %vm254_vm2, %v3207_v44  ;;  %v3928_v44 = vld [vmem:[#allocation11 + $0x318] sm:$0xff] }
 0xffe   :  { %5721 = vmatpush3.xpose.msk.msra.mxu1 %vm254_vm2, %v3360_v45  ;;  %v5705_v46 = vpop.f32.mrf.mxu0  ;;  %5722 = vmatprep.mubr.msk.f32.mxu1 %vm6005_vm1, %v6004_v11 }
 0xfff   :  { %5730 = vmatprep.subr.mxu1 %v6004_v11  ;;  %v3912_v46 = vld [vmem:[#allocation11 + $0x298] sm:$0xff] }
0x1001   :  { %5723 = vmatmul.mubr.msk.f32.vlgmr.msra.gmra.mxu1 %vm254_vm2, %v3357_v33 }
0x1002   :  { %5731 = vmatpush3.xpose.msk.msra.mxu1 %vm254_vm2, %v3526_v47  ;;  %5732 = vmatprep.mubr.msk.f32.mxu1 %vm6005_vm1, %v6004_v11 }
0x1003   :  { %5740 = vmatprep.subr.mxu1 %v6004_v11 }
0x1005   :  { %5733 = vmatmul.mubr.msk.f32.vlgmr.msra.gmra.mxu1 %vm254_vm2, %v3524_v48  ;;  %v3941_v48 = vld [vmem:[#allocation11 + $0x380] sm:$0xff] }
0x1006   :  { %5741 = vmatpush3.msra.mxu1 %v2879_v41  ;;  %5744 = vmatprep.mubr.msk.f32.mxu1 %vm6005_vm1, %v6004_v11 }
0x1007   :  { %5742 = vmatprep.subr.mxu1 %v6004_v11 }
0x1008   :  { %5743 = vmatpush3.msra.mxu1 %v2878_v36 }
0x1009   :  { %4072 = vmatprep.subr.mxu1 %v3942_v16  ;;  %v3897_v16 = vld [vmem:[#allocation11 + $0x220] sm:$0xff] }
0x10b9   :  { %v3353_v49 = vpop.f32.mrf.mxu0 }
0x10bb   :  { %v5719_v51 = vpop.f32.mrf.mxu0 }
0x10bc   :  { %v6531_v51 = vld [vmem:[%s6685_s8 + $0x1] ss:$0 sm:$0xff] }
0x10bd   :  { %v3280_v52 = vpop.f32.mrf.mxu1 }
0x10be   :  { %v3354_v8 = vadd.f32 %v3353_v49, %v3280_v52  ;;  %v3911_v49 = vld [vmem:[#allocation11 + $0x290] sm:$0xff] }
0x10bf   :  { %v5712_v53 = vpop.f32.mrf.mxu1 }
0x10c0   :  { %v3842_v13 = vadd.f32 %v6499_v12, %v3354_v8  ;;  %v3926_v53 = vld [vmem:[#allocation11 + $0x308] sm:$0xff]  ;;  %v3909_v8 = vld [vmem:[#allocation11 + $0x280] sm:$0xff] }
0x10c1   :  { %v3432_v54 = vpop.f32.mrf.mxu1 }
0x10c2   :  { %v3436_v55 = vsel %vm330_vm3, %v3432_v54, -inf  ;;  %v3844_v18 = vadd.f32 %v3842_v13, %v6417_v57  ;;  %v3894_v13 = vld [vmem:[#allocation11 + $0x208] sm:$0xff] }
0x10c3   :  { %3437 = vmax.xlane.f32.xlu0 %v3436_v55  ;;  %v5724_v56 = vpop.f32.mrf.mxu1  ;;  %v3925_v55 = vld [vmem:[#allocation11 + $0x300] sm:$0xff] }
0x10c4   :  { %v3846_v19 = vsel %vm164_vm0, %v3844_v18, 0.0  ;;  %v3895_v56 = vld [vmem:[#allocation11 + $0x210] sm:$0xff] }
0x10c5   :  { %v3597_v59 = vpop.f32.mrf.mxu1 }
0x10c6   :  { %v3601_v62 = vsel %vm330_vm3, %v3597_v59, -inf }
0x10c7   :  { %3602 = vmax.xlane.f32.xlu1 %v3601_v62  ;;  %v5734_v63 = vpop.f32.mrf.mxu1  ;;  %v3910_v62 = vld [vmem:[#allocation11 + $0x288] sm:$0xff] }
0x10d8   :  { %3447 = vrot.lane.b32.xlu1 %v6430_v2, %s6010_s26 }
0x10fc   :  { %3847 = vadd.xlane.f32.xlu1 %v3846_v19 }
0x114c   :  { %v3438_v4 = vpop.xlane.xlu0 %3437 }
0x114d   :  { %v3439_v10 = vsub.f32 %v3432_v54, %v3438_v4  ;;  %v3896_v54 = vld [vmem:[#allocation11 + $0x218] sm:$0xff] }
0x114f   :  { %v3440_v20 = vmul.f32 1.442695, %v3439_v10 }
0x1150   :  { %v3603_v9 = vpop.xlane.xlu1 %3602 }
0x1151   :  { %5806 = vpow2.f32 %v3440_v20  ;;  %v3604_v21 = vsub.f32 %v3597_v59, %v3603_v9 }
0x1153   :  { %v3605_v22 = vmul.f32 1.442695, %v3604_v21 }
0x1154   :  { %v3448_v50 = vpop.permute.xlu1 %3447 }
0x1155   :  { %5808 = vpow2.f32 %v3605_v22  ;;  %5726 = vmatpush3.msra.mxu0 %v3448_v50 }
0x1156   :  { %5735 = vmatprep.subr.mxu0 %v6004_v11 }
0x115e   :  { %v5807_v61 = vpop.eup %5806 }
0x115f   :  { %v3442_v23 = vsel %vm330_vm3, %v5807_v61, 0.0 }
0x1160   :  { %3443 = vadd.xlane.f32.xlu0 %v3442_v23 }
0x1162   :  { %v5809_v57 = vpop.eup %5808 }
0x1163   :  { %v3607_v24 = vsel %vm330_vm3, %v5809_v57, 0.0 }
0x1164   :  { %3608 = vadd.xlane.f32.xlu0 %v3607_v24 }
0x117a   :  { %3612 = vrot.lane.b32.xlu0 %v6430_v2, %s6009_s10 }
0x1185   :  { %v3848_v27 = vpop.xlane.xlu1 %3847 }
0x1186   :  { %v3852_v28 = vmul.f32 0.03125, %v3848_v27 }
0x1188   :  { %v3854_v29 = vsub.f32 %v3844_v18, %v3852_v28  ;;  %v3893_v18 = vld [vmem:[#allocation11 + $0x200] sm:$0xff]  ;;  %v3946_v28 = vld [vmem:[#allocation11 + $0x3a8] sm:$0xff] }
0x118a   :  { %v3856_v30 = vmul.f32 %v3854_v29, %v3854_v29 }
0x118c   :  { %v3858_v31 = vsel %vm164_vm0, %v3856_v30, 0.0  ;;  %v3945_v30 = vld [vmem:[#allocation11 + $0x3a0] sm:$0xff] }
0x118d   :  { %3859 = vadd.xlane.f32.xlu1 %v3858_v31  ;;  %v3947_v31 = vld [vmem:[#allocation11 + $0x3b0] sm:$0xff] }
0x11e9   :  { %v3444_v32 = vpop.xlane.xlu0 %3443 }
0x11ea   :  { %5810 = vrcp.f32 %v3444_v32  ;;  %v3930_v32 = vld [vmem:[#allocation11 + $0x328] sm:$0xff] }
0x11ed   :  { %v3609_v14 = vpop.xlane.xlu0 %3608 }
0x11ee   :  { %5812 = vrcp.f32 %v3609_v14  ;;  %v3931_v14 = vld [vmem:[#allocation11 + $0x330] sm:$0xff] }
0x11f1   :  { %v3613_v17 = vpop.permute.xlu0 %3612 }
0x11f7   :  { %v5811_v33 = vpop.eup %5810 }
0x11f8   :  { %v3446_v34 = vmul.f32 %v5811_v33, %v5807_v61  ;;  %v3914_v33 = vld [vmem:[#allocation11 + $0x2a8] sm:$0xff] }
0x11fa   :  { %5728 = vmatmul.mubr.msk.f32.vlgmr.msra.gmra.mxu0 %vm330_vm3, %v3446_v34  ;;  %v3916_v34 = vld [vmem:[#allocation11 + $0x2b8] sm:$0xff] }
0x11fb   :  { %v5813_v37 = vpop.eup %5812  ;;  %5736 = vmatpush3.msra.mxu0 %v3613_v17  ;;  %5737 = vmatprep.mubr.msk.f32.mxu0 %vm6005_vm1, %v6004_v11  ;;  %v3913_v17 = vld [vmem:[#allocation11 + $0x2a0] sm:$0xff] }
0x11fc   :  { %v3611_v2 = vmul.f32 %v5813_v37, %v5809_v57  ;;  %5747 = vmatprep.subr.mxu0 %v6004_v11  ;;  %v3915_v37 = vld [vmem:[#allocation11 + $0x2b0] sm:$0xff] }
0x11fe   :  { %5738 = vmatmul.mubr.msk.f32.vlgmr.msra.gmra.mxu0 %vm330_vm3, %v3611_v2  ;;  %v3898_v2 = vld [vmem:[#allocation11 + $0x228] sm:$0xff] }
0x11ff   :  { %5748 = vmatpush3.msra.mxu0 %v6462_v39  ;;  %5751 = vmatprep.mubr.msk.f32.mxu0 %vm6005_vm1, %v6004_v11  ;;  %v6523_v39 = vld [vmem:[%s6684_s7 + $0x1] ss:$0 sm:$0xff] }
0x1200   :  { %5749 = vmatprep.subr.mxu0 %v6004_v11 }
0x1201   :  { %5750 = vmatpush3.msra.mxu0 %v6469_v40  ;;  %v3927_v40 = vld [vmem:[#allocation11 + $0x310] sm:$0xff] }
0x1202   :  { %4149 = vmatprep.subr.mxu0 %v3944_v15  ;;  %v3900_v15 = vld [vmem:[#allocation11 + $0x238] sm:$0xff] }
0x1216   :  { %v3860_v35 = vpop.xlane.xlu1 %3859 }
0x1217   :  { %v3864_v58 = vmul.f32 0.03125, %v3860_v35  ;;  %v3899_v35 = vld [vmem:[#allocation11 + $0x230] sm:$0xff] }
0x1219   :  { %v3866_v38 = vadd.f32 1e-05, %v3864_v58  ;;  %v3950_v58 = vld [vmem:[#allocation11 + $0x3c8] sm:$0xff] }
0x121b   :  { %5814 = vrsqrt.f32 %v3866_v38  ;;  %v3952_v38 = vld [vmem:[#allocation11 + $0x3d8] sm:$0xff] }
0x1228   :  { %v5815_v41 = vpop.eup %5814 }
0x1229   :  { %v3870_v36 = vmul.f32 %v5815_v41, %v3854_v29  ;;  %v3948_v29 = vld [vmem:[#allocation11 + $0x3b8] sm:$0xff] }
0x122b   :  { %v3880_v47 = vmul.f32 %v6523_v39, %v3870_v36 }
0x122d   :  { %v6535_v63 = vadd.f32 %v6531_v51, %v3880_v47  ;;  %v3951_v47 = vld [vmem:[#allocation11 + $0x3d0] sm:$0xff] }
0x12ba   :  { %v3519_v43 = vpop.f32.mrf.mxu0 }
0x12bb   :  { %5752 = vmatmul.mubr.msk.f32.vlgmr.msra.gmra.mxu0 %vm254_vm2, %v3519_v43 }
0x12bc   :  { %4150 = vmatpush1.msra.mxu0 %v3943_v42  ;;  %v5729_v45 = vpop.f32.mrf.mxu0  ;;  %4189 = vmatprep.mubr.f32.mxu0 %v6004_v11 }
0x12bd   :  { %4151 = vmatprep.subr.mxu0 %v3928_v44 }
0x12be   :  { %4152 = vmatpush1.msra.mxu0 %v3927_v40  ;;  %v3684_v52 = vpop.f32.mrf.mxu0 }
0x12bf   :  { %4153 = vmatprep.subr.mxu0 %v3912_v46  ;;  %5745 = vmatmul.mubr.msk.f32.vlgmr.msra.gmra.mxu1 %vm254_vm2, %v3684_v52  ;;  %v3949_v46 = vld [vmem:[#allocation11 + $0x3c0] sm:$0xff]  ;;  %v3918_v52 = vld [vmem:[#allocation11 + $0x2c8] sm:$0xff] }
0x12c0   :  { %4073 = vmatpush1.msra.mxu1 %v3941_v48  ;;  %4154 = vmatpush1.msra.mxu0 %v3911_v49  ;;  %v5739_v59 = vpop.f32.mrf.mxu0  ;;  %v3934_v48 = vld [vmem:[#allocation11 + $0x348] sm:$0xff]  ;;  %v3936_v49 = vld [vmem:[#allocation11 + $0x358] sm:$0xff] }
0x12c1   :  { %4074 = vmatprep.subr.mxu1 %v3926_v53  ;;  %4155 = vmatprep.subr.mxu0 %v3896_v54  ;;  %v3920_v53 = vld [vmem:[#allocation11 + $0x2d8] sm:$0xff]  ;;  %v3917_v54 = vld [vmem:[#allocation11 + $0x2c0] sm:$0xff] }
0x12c2   :  { %4075 = vmatpush1.msra.mxu1 %v3925_v55  ;;  %4156 = vmatpush1.msra.mxu0 %v3895_v56  ;;  %v3919_v55 = vld [vmem:[#allocation11 + $0x2d0] sm:$0xff]  ;;  %v3902_v56 = vld [vmem:[#allocation11 + $0x248] sm:$0xff]  ;;  %v3904_v59 = vld [vmem:[#allocation11 + $0x258] sm:$0xff] }
0x12c3   :  { %4076 = vmatprep.subr.mxu1 %v3910_v62  ;;  %5508 = vmatmul.mubr.msk.f32.vlgmr.msra.gmra.mxu0 %vm164_vm0, %v6535_v63  ;;  %v3901_v62 = vld [vmem:[#allocation11 + $0x240] sm:$0xff] }
0x12c4   :  { %4077 = vmatpush1.msra.mxu1 %v3909_v8  ;;  %4112 = vmatprep.mubr.f32.mxu1 %v6004_v11  ;;  %v3903_v8 = vld [vmem:[#allocation11 + $0x250] sm:$0xff] }
0x12c5   :  { %4078 = vmatprep.subr.mxu1 %v3894_v13  ;;  %4195 = vmatprep.mubr.f32.mxu0 %v6004_v11  ;;  %v3954_v13 = vld [vmem:[#allocation11 + $0x3e8] sm:$0xff] }
0x12c6   :  { %4079 = vmatpush1.msra.mxu1 %v3893_v18  ;;  %4303 = vmatprep.subr.mxu0 %v3948_v29  ;;  %v3956_v18 = vld [vmem:[#allocation11 + $0x3f8] sm:$0xff]  ;;  %v3905_v29 = vld [vmem:[#allocation11 + $0x260] sm:$0xff] }
0x12c7   :  { %5506 = vmatmul.mubr.msk.f32.vlgmr.msra.gmra.mxu1 %vm164_vm0, %v6535_v63  ;;  %4226 = vmatprep.subr.mxu1 %v3946_v28  ;;  %v3908_v28 = vld [vmem:[#allocation11 + $0x278] sm:$0xff] }
0x12c8   :  { %4118 = vmatprep.mubr.f32.mxu1 %v6004_v11  ;;  %4227 = vmatpush1.msra.mxu1 %v3945_v30  ;;  %v3907_v30 = vld [vmem:[#allocation11 + $0x270] sm:$0xff] }
0x12c9   :  { %4304 = vmatpush1.msra.mxu0 %v3947_v31  ;;  %4228 = vmatprep.subr.mxu1 %v3930_v32  ;;  %v6584_v31 = vld [vmem:[#allocation12 + $0x10] sm:$0xff] }
0x12ca   :  { %v6588_v32 = vrot.slane %v6584_v31, %v6291_v0 }
0x137b   :  { %v3830_v19 = vpop.f32.mrf.mxu0 }
0x137d   :  { %v5753_v4 = vpop.f32.mrf.mxu0 }
0x137e   :  { %v3955_v4 = vld [vmem:[#allocation11 + $0x3f0] sm:$0xff] }
0x137f   :  { %v3757_v10 = vpop.f32.mrf.mxu1 }
0x1380   :  { %v3831_v20 = vadd.f32 %v3830_v19, %v3757_v10  ;;  %v3953_v19 = vld [vmem:[#allocation11 + $0x3e0] sm:$0xff]  ;;  %v3938_v10 = vld [vmem:[#allocation11 + $0x368] sm:$0xff] }
0x1381   :  { %v5746_v9 = vpop.f32.mrf.mxu1 }
0x1382   :  { %v3843_v21 = vadd.f32 %v6499_v12, %v3831_v20  ;;  %v3932_v12 = vld [vmem:[#allocation11 + $0x338] sm:$0xff]  ;;  %v3937_v9 = vld [vmem:[#allocation11 + $0x360] sm:$0xff] }
0x1383   :  { %4305 = vmatprep.subr.mxu0 %v3932_v12  ;;  %v3940_v20 = vld [vmem:[#allocation11 + $0x378] sm:$0xff]  ;;  %v6592_v12 = vrot.slane %v6584_v31, %v6294_v1 }
0x1384   :  { %v3845_v22 = vadd.f32 %v3843_v21, %v6421_v60  ;;  %v3929_v60 = vld [vmem:[#allocation11 + $0x320] sm:$0xff]  ;;  %4306 = vmatpush1.msra.mxu0 %v3931_v14  ;;  %v3939_v21 = vld [vmem:[#allocation11 + $0x370] sm:$0xff]  ;;  %v4748_v14 = vld [vmem:[#allocation14 + $0x398] sm:$0xff] }
0x1385   :  { %4229 = vmatpush1.msra.mxu1 %v3929_v60  ;;  %4307 = vmatprep.subr.mxu0 %v3916_v34  ;;  %v4746_v60 = vld [vmem:[#allocation14 + $0x388] sm:$0xff] }
0x1386   :  { %v3849_v50 = vsel %vm164_vm0, %v3845_v22, 0.0  ;;  %4230 = vmatprep.subr.mxu1 %v3914_v33  ;;  %4308 = vmatpush1.msra.mxu0 %v3915_v37  ;;  %v4747_v37 = vld [vmem:[#allocation14 + $0x390] sm:$0xff] }
0x1387   :  { %3850 = vadd.xlane.f32.xlu0 %v3849_v50  ;;  %4231 = vmatpush1.msra.mxu1 %v3913_v17  ;;  %v3924_v50 = vld [vmem:[#allocation11 + $0x2f8] sm:$0xff]  ;;  %v4745_v17 = vld [vmem:[#allocation14 + $0x380] sm:$0xff] }
0x1388   :  { %4232 = vmatprep.subr.mxu1 %v3898_v2  ;;  %4309 = vmatprep.subr.mxu0 %v3900_v15 }
0x1389   :  { %4233 = vmatpush1.msra.mxu1 %v3897_v16  ;;  %4310 = vmatpush1.msra.mxu0 %v3899_v35  ;;  %v4730_v16 = vld [vmem:[#allocation14 + $0x308] sm:$0xff]  ;;  %v4732_v35 = vld [vmem:[#allocation14 + $0x318] sm:$0xff] }
0x138a   :  { %4380 = vmatprep.subr.mxu1 %v3950_v58  ;;  %4457 = vmatprep.subr.mxu0 %v3952_v38  ;;  %v4729_v58 = vld [vmem:[#allocation14 + $0x300] sm:$0xff]  ;;  %v4731_v38 = vld [vmem:[#allocation14 + $0x310] sm:$0xff] }
0x1410   :  { %v3851_v61 = vpop.xlane.xlu0 %3850 }
0x1411   :  { %v3853_v23 = vmul.f32 0.03125, %v3851_v61  ;;  %v3921_v61 = vld [vmem:[#allocation11 + $0x2e0] sm:$0xff] }
0x1413   :  { %v3855_v57 = vsub.f32 %v3845_v22, %v3853_v23  ;;  %v3922_v22 = vld [vmem:[#allocation11 + $0x2e8] sm:$0xff]  ;;  %v3923_v23 = vld [vmem:[#allocation11 + $0x2f0] sm:$0xff] }
0x1415   :  { %v3857_v24 = vmul.f32 %v3855_v57, %v3855_v57 }
0x1417   :  { %v3861_v27 = vsel %vm164_vm0, %v3857_v24, 0.0  ;;  %v6578_v24 = vpop.f32.mrf.mxu1 }
0x1418   :  { %3862 = vadd.xlane.f32.xlu0 %v3861_v27  ;;  %v3906_v27 = vld [vmem:[#allocation11 + $0x268] sm:$0xff] }
0x1419   :  { %v4116_v34 = vpop.f32.mrf.mxu1 }
0x141a   :  { %v4117_v15 = vadd.f32 %v4116_v34, %v6592_v12 }
0x14a1   :  { %v3863_v41 = vpop.xlane.xlu0 %3862 }
0x14a2   :  { %v3865_v36 = vmul.f32 0.03125, %v3863_v41 }
0x14a4   :  { %v3867_v42 = vadd.f32 1e-05, %v3865_v36  ;;  %v4665_v36 = vmax.f32 %v4117_v15, 0.0 }
0x14a6   :  { %5816 = vrsqrt.f32 %v3867_v42  ;;  %v4714_v42 = vld [vmem:[#allocation14 + $0x288] sm:$0xff] }
0x14b3   :  { %v5817_v43 = vpop.eup %5816 }
0x14b4   :  { %v3871_v44 = vmul.f32 %v5817_v43, %v3855_v57  ;;  %v6576_v57 = vpop.f32.mrf.mxu0  ;;  %v4716_v43 = vld [vmem:[#allocation14 + $0x298] sm:$0xff] }
0x14b6   :  { %v3881_v40 = vmul.f32 %v6523_v39, %v3871_v44  ;;  %v3933_v39 = vld [vmem:[#allocation11 + $0x340] sm:$0xff]  ;;  %v4193_v33 = vpop.f32.mrf.mxu0  ;;  %v6610_v44 = vrot.slane %v6584_v31, %v6325_v25 }
0x14b7   :  { %v4194_v2 = vadd.f32 %v4193_v33, %v6588_v32  ;;  %v3989_v33 = vrot.slane %v6584_v31, %v6352_v5 }
0x14b8   :  { %v6550_v45 = vadd.f32 %v6531_v51, %v3881_v40  ;;  %v3935_v51 = vld [vmem:[#allocation11 + $0x350] sm:$0xff]  ;;  %v4713_v40 = vld [vmem:[#allocation14 + $0x280] sm:$0xff] }
0x14b9   :  { %v4667_v41 = vmax.f32 %v4194_v2, 0.0  ;;  %v3993_v2 = vrot.slane %v6584_v31, %v6358_v7 }
0x14ba   :  { %5507 = vmatmul.mubr.msk.f32.gmra.mxu1 %vm164_vm0, %v6550_v45  ;;  %5509 = vmatmul.mubr.msk.f32.gmra.mxu0 %vm164_vm0, %v6550_v45 }
0x14bb   :  { %4266 = vmatprep.mubr.f32.mxu1 %v6004_v11  ;;  %4343 = vmatprep.mubr.f32.mxu0 %v6004_v11 }
0x14be   :  { %5510 = vmatmul.mubr.msk.f32.vlgmr.msra.gmra.mxu1 %vm164_vm0, %v6535_v63  ;;  %5512 = vmatmul.mubr.msk.f32.vlgmr.msra.gmra.mxu0 %vm164_vm0, %v6535_v63 }
0x14bf   :  { %4381 = vmatpush1.msra.mxu1 %v3949_v46  ;;  %4458 = vmatpush1.msra.mxu0 %v3951_v47  ;;  %v4715_v46 = vld [vmem:[#allocation14 + $0x290] sm:$0xff]  ;;  %v4698_v47 = vld [vmem:[#allocation14 + $0x208] sm:$0xff] }
0x14c0   :  { %4382 = vmatprep.subr.mxu1 %v3934_v48  ;;  %4459 = vmatprep.subr.mxu0 %v3936_v49  ;;  %v4700_v48 = vld [vmem:[#allocation14 + $0x218] sm:$0xff]  ;;  %v4192_v49 = vadd.f32 %v6576_v57, %v6610_v44 }
0x14c1   :  { %4383 = vmatpush1.msra.mxu1 %v3933_v39  ;;  %4460 = vmatpush1.msra.mxu0 %v3935_v51  ;;  %v4697_v51 = vld [vmem:[#allocation14 + $0x200] sm:$0xff]  ;;  %v4756_v57 = vld [vmem:[#allocation14 + $0x3d8] sm:$0xff] }
0x14c2   :  { %4272 = vmatprep.mubr.f32.mxu1 %v6004_v11  ;;  %4349 = vmatprep.mubr.f32.mxu0 %v6004_v11 }
0x14c3   :  { %4384 = vmatprep.subr.mxu1 %v3918_v52  ;;  %4461 = vmatprep.subr.mxu0 %v3920_v53  ;;  %v4699_v52 = vld [vmem:[#allocation14 + $0x210] sm:$0xff]  ;;  %v4750_v53 = vld [vmem:[#allocation14 + $0x3a8] sm:$0xff] }
0x14c4   :  { %5511 = vmatmul.mubr.msk.f32.gmra.mxu1 %vm164_vm0, %v6550_v45  ;;  %5513 = vmatmul.mubr.msk.f32.gmra.mxu0 %vm164_vm0, %v6550_v45 }
0x14c5   :  { %4385 = vmatpush1.msra.mxu1 %v3917_v54  ;;  %4462 = vmatpush1.msra.mxu0 %v3919_v55  ;;  %v4752_v54 = vld [vmem:[#allocation14 + $0x3b8] sm:$0xff]  ;;  %v4666_v55 = vmax.f32 %v4192_v49, 0.0  ;;  %v4753_v49 = vld [vmem:[#allocation14 + $0x3c0] sm:$0xff] }
0x14c6   :  { %4386 = vmatprep.subr.mxu1 %v3902_v56  ;;  %4463 = vmatprep.subr.mxu0 %v3904_v59  ;;  %v4749_v59 = vld [vmem:[#allocation14 + $0x3a0] sm:$0xff] }
0x14c7   :  { %4387 = vmatpush1.msra.mxu1 %v3901_v62  ;;  %4464 = vmatpush1.msra.mxu0 %v3903_v8  ;;  %v4751_v62 = vld [vmem:[#allocation14 + $0x3b0] sm:$0xff]  ;;  %v4734_v8 = vld [vmem:[#allocation14 + $0x328] sm:$0xff] }
0x14c8   :  { %4420 = vmatprep.mubr.f32.mxu1 %v6004_v11  ;;  %4497 = vmatprep.mubr.f32.mxu0 %v6004_v11 }
0x14c9   :  { %4534 = vmatprep.subr.mxu1 %v3954_v13  ;;  %4611 = vmatprep.subr.mxu0 %v3956_v18  ;;  %v4736_v13 = vld [vmem:[#allocation14 + $0x338] sm:$0xff]  ;;  %v4733_v18 = vld [vmem:[#allocation14 + $0x320] sm:$0xff] }
0x14ca   :  { %5514 = vmatmul.mubr.msk.f32.vlgmr.msra.gmra.mxu1 %vm164_vm0, %v6535_v63  ;;  %5516 = vmatmul.mubr.msk.f32.vlgmr.msra.gmra.mxu0 %vm164_vm0, %v6535_v63 }
0x14cb   :  { %4535 = vmatpush1.msra.mxu1 %v3953_v19  ;;  %4612 = vmatpush1.msra.mxu0 %v3955_v4  ;;  %v4735_v19 = vld [vmem:[#allocation14 + $0x330] sm:$0xff]  ;;  %v4718_v4 = vld [vmem:[#allocation14 + $0x2a8] sm:$0xff] }
0x14cc   :  { %4536 = vmatprep.subr.mxu1 %v3938_v10  ;;  %4613 = vmatprep.subr.mxu0 %v3940_v20  ;;  %v4720_v10 = vld [vmem:[#allocation14 + $0x2b8] sm:$0xff]  ;;  %v4717_v20 = vld [vmem:[#allocation14 + $0x2a0] sm:$0xff] }
0x14cd   :  { %4537 = vmatpush1.msra.mxu1 %v3937_v9  ;;  %4614 = vmatpush1.msra.mxu0 %v3939_v21  ;;  %v4719_v9 = vld [vmem:[#allocation14 + $0x2b0] sm:$0xff]  ;;  %v4702_v21 = vld [vmem:[#allocation14 + $0x228] sm:$0xff] }
0x14ce   :  { %4426 = vmatprep.mubr.f32.mxu1 %v6004_v11  ;;  %4503 = vmatprep.mubr.f32.mxu0 %v6004_v11 }
0x14cf   :  { %4538 = vmatprep.subr.mxu1 %v3922_v22  ;;  %4615 = vmatprep.subr.mxu0 %v3924_v50  ;;  %v4704_v22 = vld [vmem:[#allocation14 + $0x238] sm:$0xff]  ;;  %v4701_v50 = vld [vmem:[#allocation14 + $0x220] sm:$0xff] }
0x14d0   :  { %5515 = vmatmul.mubr.msk.f32.gmra.mxu1 %vm164_vm0, %v6550_v45  ;;  %5517 = vmatmul.mubr.msk.f32.gmra.mxu0 %vm164_vm0, %v6550_v45 }
0x14d1   :  { %4539 = vmatpush1.msra.mxu1 %v3921_v61  ;;  %4616 = vmatpush1.msra.mxu0 %v3923_v23  ;;  %v4703_v61 = vld [vmem:[#allocation14 + $0x230] sm:$0xff]  ;;  %v4754_v23 = vld [vmem:[#allocation14 + $0x3c8] sm:$0xff] }
0x14d2   :  { %4540 = vmatprep.subr.mxu1 %v3906_v27  ;;  %4617 = vmatprep.subr.mxu0 %v3908_v28 }
0x14d3   :  { %4541 = vmatpush1.msra.mxu1 %v3905_v29  ;;  %4618 = vmatpush1.msra.mxu0 %v3907_v30 }
0x14d4   :  { %4574 = vmatprep.mubr.f32.mxu1 %v6004_v11  ;;  %4651 = vmatprep.mubr.f32.mxu0 %v6004_v11 }
0x14d5   :  { %4793 = vmatprep.subr.mxu1 %v4746_v60  ;;  %4868 = vmatprep.subr.mxu0 %v4748_v14  ;;  %v3981_v14 = vrot.slane %v6584_v31, %v6349_v3 }
0x14d6   :  { %5518 = vmatmul.mubr.msk.f32.vlgmr.msra.gmra.mxu1 %vm164_vm0, %v6535_v63  ;;  %5520 = vmatmul.mubr.msk.f32.vlgmr.msra.gmra.mxu0 %vm164_vm0, %v6535_v63 }
0x14d7   :  { %4794 = vmatpush1.xpose.msra.mxu1 %v4745_v17  ;;  %4869 = vmatpush1.xpose.msra.mxu0 %v4747_v37  ;;  %v3985_v37 = vrot.slane %v6584_v31, %v6355_v6 }
0x14d8   :  { %4580 = vmatprep.mubr.f32.mxu1 %v6004_v11  ;;  %4657 = vmatprep.mubr.f32.mxu0 %v6004_v11  ;;  %v3965_v11 = vrot.slane %v6584_v31, %v6328_v26 }
0x14d9   :  { %4795 = vmatprep.subr.mxu1 %v4730_v16  ;;  %4870 = vmatprep.subr.mxu0 %v4732_v35 }
0x14da   :  { %5519 = vmatmul.mubr.msk.f32.gmra.mxu1 %vm164_vm0, %v6550_v45  ;;  %5521 = vmatmul.mubr.msk.f32.gmra.mxu0 %vm164_vm0, %v6550_v45  ;;  %v4115_v39 = vadd.f32 %v6578_v24, %v3965_v11 }
0x14db   :  { %4796 = vmatpush1.xpose.msra.mxu1 %v4729_v58  ;;  %4871 = vmatpush1.xpose.msra.mxu0 %v4731_v38 }
0x14dc   :  { %4833 = vmatprep.mubr.f32.mxu1 %v4665_v36  ;;  %4908 = vmatprep.mubr.f32.mxu0 %v4667_v41  ;;  %v4664_v56 = vmax.f32 %v4115_v39, 0.0  ;;  %v4755_v39 = vld [vmem:[#allocation14 + $0x3d0] sm:$0xff] }
0x14dd   :  { %4797 = vmatprep.subr.mxu1 %v4714_v42  ;;  %4872 = vmatprep.subr.mxu0 %v4716_v43 }
0x14df   :  { %4798 = vmatpush1.xpose.msra.mxu1 %v4713_v40  ;;  %4873 = vmatpush1.xpose.msra.mxu0 %v4715_v46 }
0x14e0   :  { %4799 = vmatprep.subr.mxu1 %v4698_v47  ;;  %4874 = vmatprep.subr.mxu0 %v4700_v48 }
0x14e3   :  { %4800 = vmatpush1.xpose.msra.mxu1 %v4697_v51  ;;  %4875 = vmatpush1.xpose.msra.mxu0 %v4699_v52  ;;  %v4738_v51 = vld [vmem:[#allocation14 + $0x348] sm:$0xff]  ;;  %v4740_v52 = vld [vmem:[#allocation14 + $0x358] sm:$0xff] }
0x14e4   :  { %4943 = vmatprep.subr.mxu1 %v4750_v53  ;;  %5018 = vmatprep.subr.mxu0 %v4752_v54 }
0x14e6   :  { %4834 = vmatmul.mubr.f32.vlgmr.msra.gmra.mxu1 %v4664_v56  ;;  %4909 = vmatmul.mubr.f32.vlgmr.msra.gmra.mxu0 %v4666_v55 }
0x14e7   :  { %4944 = vmatpush1.xpose.msra.mxu1 %v4749_v59  ;;  %5019 = vmatpush1.xpose.msra.mxu0 %v4751_v62 }
0x14e8   :  { %4945 = vmatprep.subr.mxu1 %v4734_v8  ;;  %5020 = vmatprep.subr.mxu0 %v4736_v13  ;;  %v6628_v8 = vld [vmem:[#allocation12 + $0x18] sm:$0xff] }
0x14eb   :  { %4946 = vmatpush1.xpose.msra.mxu1 %v4733_v18  ;;  %5021 = vmatpush1.xpose.msra.mxu0 %v4735_v19  ;;  %v4001_v19 = vrot.slane %v6628_v8, %v6294_v1  ;;  %v4005_v1 = vrot.slane %v6628_v8, %v6325_v25  ;;  %v4707_v25 = vld [vmem:[#allocation14 + $0x250] sm:$0xff] }
0x14ec   :  { %4947 = vmatprep.subr.mxu1 %v4718_v4  ;;  %5022 = vmatprep.subr.mxu0 %v4720_v10  ;;  %v4009_v4 = vrot.slane %v6628_v8, %v6291_v0  ;;  %v3997_v0 = vrot.slane %v6628_v8, %v6328_v26  ;;  %v4705_v26 = vld [vmem:[#allocation14 + $0x240] sm:$0xff] }
0x14ef   :  { %4948 = vmatpush1.xpose.msra.mxu1 %v4717_v20  ;;  %5023 = vmatpush1.xpose.msra.mxu0 %v4719_v9 }
0x14f0   :  { %4949 = vmatprep.subr.mxu1 %v4702_v21  ;;  %5024 = vmatprep.subr.mxu0 %v4704_v22  ;;  %v4737_v22 = vld [vmem:[#allocation14 + $0x340] sm:$0xff] }
0x14f3   :  { %4950 = vmatpush1.xpose.msra.mxu1 %v4701_v50  ;;  %5025 = vmatpush1.xpose.msra.mxu0 %v4703_v61  ;;  %v4739_v50 = vld [vmem:[#allocation14 + $0x350] sm:$0xff]  ;;  %v4722_v61 = vld [vmem:[#allocation14 + $0x2c8] sm:$0xff] }
0x14f4   :  { %5093 = vmatprep.subr.mxu1 %v4754_v23  ;;  %5168 = vmatprep.subr.mxu0 %v4756_v57  ;;  %v4724_v23 = vld [vmem:[#allocation14 + $0x2d8] sm:$0xff] }
0x157a   :  { %v4120_v24 = vpop.f32.mrf.mxu1  ;;  %v4197_v27 = vpop.f32.mrf.mxu0 }
0x157b   :  { %v4121_v28 = vadd.f32 %v4120_v24, %v3965_v11  ;;  %v4198_v29 = vadd.f32 %v4197_v27, %v6610_v44 }
0x157c   :  { %v4122_v30 = vpop.f32.mrf.mxu1  ;;  %v4199_v60 = vpop.f32.mrf.mxu0 }
0x157d   :  { %v4123_v34 = vadd.f32 %v4122_v30, %v6592_v12  ;;  %v4200_v17 = vadd.f32 %v4199_v60, %v6588_v32  ;;  %v4680_v38 = vmax.f32 %v4121_v28, 0.0  ;;  %v4682_v41 = vmax.f32 %v4198_v29, 0.0  ;;  %v4721_v60 = vld [vmem:[#allocation14 + $0x2c0] sm:$0xff] }
0x157e   :  { %v4268_v15 = vpop.f32.mrf.mxu1  ;;  %v4345_v16 = vpop.f32.mrf.mxu0 }
0x157f   :  { %v4681_v35 = vmax.f32 %v4123_v34, 0.0  ;;  %v4683_v58 = vmax.f32 %v4200_v17, 0.0  ;;  %v4269_v36 = vadd.f32 %v4268_v15, %v3981_v14  ;;  %v4346_v42 = vadd.f32 %v4345_v16, %v3989_v33  ;;  %v4706_v17 = vld [vmem:[#allocation14 + $0x248] sm:$0xff] }
0x1580   :  { %v4270_v43 = vpop.f32.mrf.mxu1  ;;  %v4347_v44 = vpop.f32.mrf.mxu0 }
0x1581   :  { %v4271_v11 = vadd.f32 %v4270_v43, %v3985_v37  ;;  %v4348_v12 = vadd.f32 %v4347_v44, %v3993_v2  ;;  %4838 = vmatprep.mubr.f32.mxu1 %v4681_v35  ;;  %4913 = vmatprep.mubr.f32.mxu0 %v4683_v58  ;;  %v4668_v46 = vmax.f32 %v4269_v36, 0.0  ;;  %v4670_v31 = vmax.f32 %v4346_v42, 0.0  ;;  %v4760_v36 = vld [vmem:[#allocation14 + $0x3f8] sm:$0xff] }
0x1582   :  { %4839 = vmatmul.mubr.f32.gmra.mxu1 %v4680_v38  ;;  %4914 = vmatmul.mubr.f32.gmra.mxu0 %v4682_v41  ;;  %v4758_v41 = vld [vmem:[#allocation14 + $0x3e8] sm:$0xff]  ;;  %v6640_v42 = vrot.slane %v6628_v8, %v6355_v6  ;;  %v6644_v43 = vrot.slane %v6628_v8, %v6358_v7  ;;  %v4757_v6 = vld [vmem:[#allocation14 + $0x3e0] sm:$0xff] }
0x1583   :  { %v4669_v32 = vmax.f32 %v4271_v11, 0.0  ;;  %v4671_v40 = vmax.f32 %v4348_v12, 0.0 }
0x1584   :  { %v4274_v47 = vpop.f32.mrf.mxu1  ;;  %v4351_v48 = vpop.f32.mrf.mxu0 }
0x1585   :  { %4983 = vmatprep.mubr.f32.mxu1 %v4669_v32  ;;  %5058 = vmatprep.mubr.f32.mxu0 %v4671_v40  ;;  %v4275_v53 = vadd.f32 %v4274_v47, %v3981_v14  ;;  %v4352_v54 = vadd.f32 %v4351_v48, %v3989_v33  ;;  %v4723_v14 = vld [vmem:[#allocation14 + $0x2d0] sm:$0xff] }
0x1586   :  { %v4276_v55 = vpop.f32.mrf.mxu1  ;;  %v4353_v56 = vpop.f32.mrf.mxu0  ;;  %4984 = vmatmul.mubr.f32.vlgmr.msra.gmra.mxu1 %v4668_v46  ;;  %5059 = vmatmul.mubr.f32.vlgmr.msra.gmra.mxu0 %v4670_v31 }
0x1587   :  { %v4277_v59 = vadd.f32 %v4276_v55, %v3985_v37  ;;  %v4354_v62 = vadd.f32 %v4353_v56, %v3993_v2  ;;  %5094 = vmatpush1.xpose.msra.mxu1 %v4753_v49  ;;  %5169 = vmatpush1.xpose.msra.mxu0 %v4755_v39  ;;  %v4684_v10 = vmax.f32 %v4275_v53, 0.0  ;;  %v4686_v20 = vmax.f32 %v4352_v54, 0.0  ;;  %v4708_v37 = vld [vmem:[#allocation14 + $0x258] sm:$0xff]  ;;  %v4759_v39 = vld [vmem:[#allocation14 + $0x3f0] sm:$0xff] }
0x1588   :  { %5095 = vmatprep.subr.mxu1 %v4738_v51  ;;  %5170 = vmatprep.subr.mxu0 %v4740_v52  ;;  %v4742_v52 = vld [vmem:[#allocation14 + $0x368] sm:$0xff]  ;;  %v4744_v53 = vld [vmem:[#allocation14 + $0x378] sm:$0xff] }
0x1589   :  { %v4685_v13 = vmax.f32 %v4277_v59, 0.0  ;;  %v4687_v18 = vmax.f32 %v4354_v62, 0.0  ;;  %v4741_v62 = vld [vmem:[#allocation14 + $0x360] sm:$0xff] }
0x158a   :  { %v4422_v9 = vpop.f32.mrf.mxu1  ;;  %v4499_v21 = vpop.f32.mrf.mxu0 }
0x158b   :  { %4988 = vmatprep.mubr.f32.mxu1 %v4685_v13  ;;  %5063 = vmatprep.mubr.f32.mxu0 %v4687_v18  ;;  %v4423_v16 = vadd.f32 %v4422_v9, %v3997_v0  ;;  %v4500_v35 = vadd.f32 %v4499_v21, %v4005_v1  ;;  %v4743_v13 = vld [vmem:[#allocation14 + $0x370] sm:$0xff]  ;;  %v4726_v18 = vld [vmem:[#allocation14 + $0x2e8] sm:$0xff]  ;;  %v4021_v9 = vrot.slane %v6628_v8, %v6352_v5  ;;  %v4725_v21 = vld [vmem:[#allocation14 + $0x2e0] sm:$0xff] }
0x158c   :  { %v4424_v57 = vpop.f32.mrf.mxu1  ;;  %v4501_v24 = vpop.f32.mrf.mxu0  ;;  %4989 = vmatmul.mubr.f32.gmra.mxu1 %v4684_v10  ;;  %5064 = vmatmul.mubr.f32.gmra.mxu0 %v4686_v20  ;;  %v4013_v20 = vrot.slane %v6628_v8, %v6349_v3  ;;  %v4709_v3 = vld [vmem:[#allocation14 + $0x260] sm:$0xff]  ;;  %v4711_v5 = vld [vmem:[#allocation14 + $0x270] sm:$0xff] }
0x158d   :  { %v4425_v27 = vadd.f32 %v4424_v57, %v4001_v19  ;;  %v4502_v28 = vadd.f32 %v4501_v24, %v4009_v4  ;;  %5096 = vmatpush1.xpose.msra.mxu1 %v4737_v22  ;;  %5171 = vmatpush1.xpose.msra.mxu0 %v4739_v50  ;;  %v4672_v12 = vmax.f32 %v4423_v16, 0.0  ;;  %v4674_v32 = vmax.f32 %v4500_v35, 0.0  ;;  %v4727_v22 = vld [vmem:[#allocation14 + $0x2f0] sm:$0xff]  ;;  %v4710_v50 = vld [vmem:[#allocation14 + $0x268] sm:$0xff] }
0x158e   :  { %5097 = vmatprep.subr.mxu1 %v4722_v61  ;;  %5172 = vmatprep.subr.mxu0 %v4724_v23  ;;  %v4712_v61 = vld [vmem:[#allocation14 + $0x278] sm:$0xff] }
0x158f   :  { %v4673_v29 = vmax.f32 %v4425_v27, 0.0  ;;  %v4675_v30 = vmax.f32 %v4502_v28, 0.0  ;;  %v5523_v28 = vld [vmem:[%s6689_s12 + $0x1] ss:$0 sm:$0xff] }
0x1590   :  { %v4428_v33 = vpop.f32.mrf.mxu1  ;;  %v4505_v34 = vpop.f32.mrf.mxu0 }
0x1591   :  { %5133 = vmatprep.mubr.f32.mxu1 %v4673_v29  ;;  %5208 = vmatprep.mubr.f32.mxu0 %v4675_v30  ;;  %v4429_v40 = vadd.f32 %v4428_v33, %v3997_v0  ;;  %v4506_v46 = vadd.f32 %v4505_v34, %v4005_v1 }
0x1592   :  { %v4430_v2 = vpop.f32.mrf.mxu1  ;;  %v4507_v15 = vpop.f32.mrf.mxu0  ;;  %5098 = vmatpush1.xpose.msra.mxu1 %v4721_v60  ;;  %5173 = vmatpush1.xpose.msra.mxu0 %v4723_v14 }
0x1593   :  { %5099 = vmatprep.subr.mxu1 %v4706_v17  ;;  %5174 = vmatprep.subr.mxu0 %v4708_v37  ;;  %v4431_v58 = vadd.f32 %v4430_v2, %v4001_v19  ;;  %v4508_v38 = vadd.f32 %v4507_v15, %v4009_v4  ;;  %v4688_v54 = vmax.f32 %v4429_v40, 0.0  ;;  %v4690_v55 = vmax.f32 %v4506_v46, 0.0  ;;  %v4728_v19 = vld [vmem:[#allocation14 + $0x2f8] sm:$0xff] }
0x1595   :  { %v4689_v31 = vmax.f32 %v4431_v58, 0.0  ;;  %v4691_v47 = vmax.f32 %v4508_v38, 0.0 }
0x1596   :  { %v4576_v44 = vpop.f32.mrf.mxu1  ;;  %v4653_v11 = vpop.f32.mrf.mxu0  ;;  %5100 = vmatpush1.xpose.msra.mxu1 %v4705_v26  ;;  %5175 = vmatpush1.xpose.msra.mxu0 %v4707_v25 }
0x1597   :  { %5243 = vmatprep.subr.mxu1 %v4758_v41  ;;  %5318 = vmatprep.subr.mxu0 %v4760_v36  ;;  %v4577_v24 = vadd.f32 %v4576_v44, %v4013_v20  ;;  %v4654_v27 = vadd.f32 %v4653_v11, %v4021_v9 }
0x1598   :  { %v4578_v48 = vpop.f32.mrf.mxu1  ;;  %v4655_v49 = vpop.f32.mrf.mxu0 }
0x1599   :  { %v4579_v51 = vadd.f32 %v4578_v48, %v6640_v42  ;;  %v4656_v7 = vadd.f32 %v4655_v49, %v6644_v43  ;;  %5134 = vmatmul.mubr.f32.vlgmr.msra.gmra.mxu1 %v4672_v12  ;;  %5209 = vmatmul.mubr.f32.vlgmr.msra.gmra.mxu0 %v4674_v32  ;;  %v4676_v60 = vmax.f32 %v4577_v24, 0.0  ;;  %v4678_v14 = vmax.f32 %v4654_v27, 0.0 }
0x159a   :  { %5138 = vmatprep.mubr.f32.mxu1 %v4689_v31  ;;  %5213 = vmatprep.mubr.f32.mxu0 %v4691_v47  ;;  %v4582_v4 = vpop.f32.mrf.mxu1  ;;  %v4659_v10 = vpop.f32.mrf.mxu0 }
0x159b   :  { %5244 = vmatpush1.xpose.msra.mxu1 %v4757_v6  ;;  %5319 = vmatpush1.xpose.msra.mxu0 %v4759_v39  ;;  %v4677_v56 = vmax.f32 %v4579_v51, 0.0  ;;  %v4679_v59 = vmax.f32 %v4656_v7, 0.0  ;;  %v4583_v33 = vadd.f32 %v4582_v4, %v4013_v20  ;;  %v4660_v34 = vadd.f32 %v4659_v10, %v4021_v9 }
0x159c   :  { %5245 = vmatprep.subr.mxu1 %v4742_v52  ;;  %5320 = vmatprep.subr.mxu0 %v4744_v53  ;;  %v4584_v23 = vpop.f32.mrf.mxu1  ;;  %v4661_v57 = vpop.f32.mrf.mxu0 }
0x159d   :  { %5139 = vmatmul.mubr.f32.gmra.mxu1 %v4688_v54  ;;  %5214 = vmatmul.mubr.f32.gmra.mxu0 %v4690_v55  ;;  %v4585_v8 = vadd.f32 %v4584_v23, %v6640_v42  ;;  %v4662_v0 = vadd.f32 %v4661_v57, %v6644_v43  ;;  %v4692_v35 = vmax.f32 %v4583_v33, 0.0  ;;  %v4694_v26 = vmax.f32 %v4660_v34, 0.0 }
0x159e   :  { %5283 = vmatprep.mubr.f32.mxu1 %v4677_v56  ;;  %5358 = vmatprep.mubr.f32.mxu0 %v4679_v59 }
0x159f   :  { %5246 = vmatpush1.xpose.msra.mxu1 %v4741_v62  ;;  %5321 = vmatpush1.xpose.msra.mxu0 %v4743_v13  ;;  %v4693_v2 = vmax.f32 %v4585_v8, 0.0  ;;  %v4695_v15 = vmax.f32 %v4662_v0, 0.0 }
0x15a0   :  { %5247 = vmatprep.subr.mxu1 %v4726_v18  ;;  %5322 = vmatprep.subr.mxu0 %v4728_v19 }
0x15a3   :  { %5248 = vmatpush1.xpose.msra.mxu1 %v4725_v21  ;;  %5323 = vmatpush1.xpose.msra.mxu0 %v4727_v22 }
0x15a4   :  { %5249 = vmatprep.subr.mxu1 %v4710_v50  ;;  %5324 = vmatprep.subr.mxu0 %v4712_v61 }
0x15a6   :  { %v4835_v1 = vpop.f32.mrf.mxu1  ;;  %v4910_v29 = vpop.f32.mrf.mxu0 }
0x15a7   :  { %v4836_v30 = vadd.f32 %v5523_v28, %v4835_v1  ;;  %5250 = vmatpush1.xpose.msra.mxu1 %v4709_v3  ;;  %5325 = vmatpush1.xpose.msra.mxu0 %v4711_v5 }
0x15a8   :  { %v4837_v17 = vpop.f32.mrf.mxu1  ;;  %v4912_v37 = vpop.f32.mrf.mxu0 }
0x15a9   :  { %v4911_v16 = vadd.f32 %v4910_v29, %v4836_v30 }
0x15aa   :  { %5284 = vmatmul.mubr.f32.vlgmr.msra.gmra.mxu1 %v4676_v60  ;;  %5359 = vmatmul.mubr.f32.vlgmr.msra.gmra.mxu0 %v4678_v14 }
0x15ab   :  { %5288 = vmatprep.mubr.f32.mxu1 %v4693_v2  ;;  %5363 = vmatprep.mubr.f32.mxu0 %v4695_v15 }
0x15ae   :  { %5289 = vmatmul.mubr.f32.gmra.mxu1 %v4692_v35  ;;  %5364 = vmatmul.mubr.f32.gmra.mxu0 %v4694_v26  ;;  %v5525_v26 = vld [vmem:[%s6690_s13 + $0x1] ss:$0 sm:$0xff] }
0x1642   :  { %v4840_v25 = vpop.f32.mrf.mxu1  ;;  %v4915_v58 = vpop.f32.mrf.mxu0 }
0x1643   :  { %v4841_v49 = vadd.f32 %v5523_v28, %v4840_v25 }
0x1644   :  { %v4842_v38 = vpop.f32.mrf.mxu1  ;;  %v4917_v41 = vpop.f32.mrf.mxu0 }
0x1645   :  { %v4916_v53 = vadd.f32 %v4915_v58, %v4841_v49  ;;  %v5527_v58 = vld [vmem:[%s6691_s14 + $0x1] ss:$0 sm:$0xff] }
0x1646   :  { %v4985_v36 = vpop.f32.mrf.mxu1  ;;  %v5060_v42 = vpop.f32.mrf.mxu0 }
0x1647   :  { %v4986_v51 = vadd.f32 %v4985_v36, %v4911_v16 }
0x1648   :  { %v4987_v43 = vpop.f32.mrf.mxu1  ;;  %v5062_v44 = vpop.f32.mrf.mxu0 }
0x1649   :  { %v5061_v54 = vadd.f32 %v5060_v42, %v4986_v51 }
0x164c   :  { %v4990_v11 = vpop.f32.mrf.mxu1  ;;  %v5065_v12 = vpop.f32.mrf.mxu0 }
0x164d   :  { %v4991_v55 = vadd.f32 %v4990_v11, %v4916_v53 }
0x164e   :  { %v4992_v32 = vpop.f32.mrf.mxu1  ;;  %v5067_v40 = vpop.f32.mrf.mxu0 }
0x164f   :  { %v5066_v59 = vadd.f32 %v5065_v12, %v4991_v55 }
0x1659   :  { %v5135_v46 = vpop.f32.mrf.mxu1  ;;  %v5210_v31 = vpop.f32.mrf.mxu0 }
0x165a   :  { %v5136_v56 = vadd.f32 %v5135_v46, %v5061_v54 }
0x165b   :  { %v5137_v47 = vpop.f32.mrf.mxu1  ;;  %v5212_v48 = vpop.f32.mrf.mxu0 }
0x165c   :  { %v5211_v62 = vadd.f32 %v5210_v31, %v5136_v56 }
0x165d   :  { %v5140_v6 = vpop.f32.mrf.mxu1  ;;  %v5215_v39 = vpop.f32.mrf.mxu0 }
0x165e   :  { %v5141_v13 = vadd.f32 %v5140_v6, %v5066_v59 }
0x165f   :  { %v5142_v7 = vpop.f32.mrf.mxu1  ;;  %v5217_v52 = vpop.f32.mrf.mxu0 }
0x1660   :  { %v5216_v9 = vadd.f32 %v5215_v39, %v5141_v13 }
0x166a   :  { %v5285_v18 = vpop.f32.mrf.mxu1  ;;  %v5360_v19 = vpop.f32.mrf.mxu0 }
0x166b   :  { %v5286_v4 = vadd.f32 %v5285_v18, %v5211_v62 }
0x166c   :  { %v5287_v10 = vpop.f32.mrf.mxu1  ;;  %v5362_v20 = vpop.f32.mrf.mxu0 }
0x166d   :  { %v5361_v21 = vadd.f32 %v5360_v19, %v5286_v4 }
0x166e   :  { %v5290_v22 = vpop.f32.mrf.mxu1  ;;  %v5365_v50 = vpop.f32.mrf.mxu0 }
0x166f   :  { %v5291_v61 = vadd.f32 %v5290_v22, %v5216_v9  ;;  %v5369_v23 = vadd.f32 %v5361_v21, %v6535_v63 }
0x1670   :  { %v5292_v57 = vpop.f32.mrf.mxu1  ;;  %v5367_v24 = vpop.f32.mrf.mxu0 }
0x1671   :  { %v5366_v27 = vadd.f32 %v5365_v50, %v5291_v61  ;;  %v5371_v28 = vsel %vm164_vm0, %v5369_v23, 0.0 }
0x1672   :  { %5372 = vadd.xlane.f32.xlu1 %v5371_v28 }
0x1673   :  { %v5370_v3 = vadd.f32 %v5366_v27, %v6550_v45 }
0x1675   :  { %v5374_v5 = vsel %vm164_vm0, %v5370_v3, 0.0 }
0x1676   :  { %5375 = vadd.xlane.f32.xlu0 %v5374_v5 }
0x16fb   :  { %v5373_v8 = vpop.xlane.xlu1 %5372 }
0x16fc   :  { %v5377_v0 = vmul.f32 0.03125, %v5373_v8 }
0x16fe   :  { %v5379_v1 = vsub.f32 %v5369_v23, %v5377_v0 }
0x16ff   :  { %v5376_v29 = vpop.xlane.xlu0 %5375 }
0x1700   :  { %v5378_v30 = vmul.f32 0.03125, %v5376_v29  ;;  %v5381_v60 = vmul.f32 %v5379_v1, %v5379_v1 }
0x1702   :  { %v5380_v14 = vsub.f32 %v5370_v3, %v5378_v30  ;;  %v5383_v63 = vsel %vm164_vm0, %v5381_v60, 0.0 }
0x1703   :  { %5384 = vadd.xlane.f32.xlu1 %v5383_v63 }
0x1704   :  { %v5382_v33 = vmul.f32 %v5380_v14, %v5380_v14 }
0x1706   :  { %v5386_v34 = vsel %vm164_vm0, %v5382_v33, 0.0 }
0x1707   :  { %5387 = vadd.xlane.f32.xlu0 %v5386_v34 }
0x178c   :  { %v5385_v17 = vpop.xlane.xlu1 %5384 }
0x178d   :  { %v5389_v37 = vmul.f32 0.03125, %v5385_v17 }
0x178f   :  { %v5391_v45 = vadd.f32 1e-05, %v5389_v37 }
0x1790   :  { %v5388_v2 = vpop.xlane.xlu0 %5387 }
0x1791   :  { %5818 = vrsqrt.f32 %v5391_v45  ;;  %v5390_v15 = vmul.f32 0.03125, %v5388_v2 }
0x1793   :  { %v5392_v16 = vadd.f32 1e-05, %v5390_v15 }
0x1795   :  { %5820 = vrsqrt.f32 %v5392_v16 }
0x179e   :  { %v5819_v35 = vpop.eup %5818 }
0x179f   :  { %v5395_v25 = vmul.f32 %v5819_v35, %v5379_v1 }
0x17a1   :  { %v5405_v38 = vmul.f32 %v5525_v26, %v5395_v25 }
0x17a2   :  { %v5821_v41 = vpop.eup %5820 }
0x17a3   :  { %v5396_v36 = vmul.f32 %v5821_v41, %v5380_v14  ;;  %v5415_v42 = vadd.f32 %v5527_v58, %v5405_v38 }
0x17a5   :  { %v5406_v43 = vmul.f32 %v5525_v26, %v5396_v36  ;;  %5417 = vst.msk [vmem:[#allocation15] sm:$0xff] %vm164_vm0, %v5415_v42 }
0x17a7   :  { %v5416_v44 = vadd.f32 %v5527_v58, %v5406_v43 }
0x17a9   :  { %5418 = vst.msk [vmem:[#allocation15 + $0x8] sm:$0xff] %vm164_vm0, %v5416_v44 }
0x17aa   :  { %5973 = shalt.err (!%p5970_p11)
}
0x17ab   :  { %5430 = dma.vmem_to_hbm [thread:$0]  %s5425_s16, 256, %s6692_s15, [#allocation5], %s5995_s28, %s5995_s28, %s5996_s29  }
0x17ac   :  { %5990 = dma.done.wait [#allocation5], 256  }
0x17ad   :  { %5991 = vsyncadd [#allocation5], 4294967040 }
0x17ae   :  { %5434 = vsyncpa [#allocation4], 1 }
0x17af   :  { %5435 = vsyncpa [#allocation7], 1 }
0x17b0   :  { %5436 = vsyncpa [#allocation10], 1 }
0x17b1   :  { %5437 = vsyncpa [#allocation13], 1 }
0x17b2   :  { %5438 = vsyncpa [#allocation5], 1 }

</bundles_post_ra>
